<compile_context>
chip_gen: v6e
topology: v6e:2x2x1
jax: 0.10.0
libtpu: 0.0.40
codegen_flags: <defaults>
</compile_context>

<pallas_src>
import jax
import jax.numpy as jnp
from jax import lax
from jax.experimental import pallas as pl
from jax.experimental.pallas import tpu as pltpu

# ---- model / problem sizes (small, consistent with the module defaults) ----
B, T, D = 2, 8, 32          # batch, seq len, hidden (input_dim)
H = 8                       # num_heads
DH = D // H                 # per-head attention dim (attention_dim default)
DV = D // H                 # per-head value dim (value_dim default)
A = DH * H                  # total attention dim
V = DV * H                  # total value dim
F = D                       # feedforward_hidden_dim default = hidden_dim
MAX_LAYERS = 3              # max_num_layers (kept small for the demo)
LN_EPS = 1e-6               # AllenNLP LayerNorm eps
INV_SCALE = 1.0 / float((D // H) ** 0.5)


def _layer_norm(x, gamma, beta):
    # AllenNLP LayerNorm: unbiased std (torch.std default, ddof=1) over last
    # dim; exact sqrt + exact divide (no approx reciprocal here).
    mean = jnp.mean(x, axis=-1, keepdims=True)
    var = jnp.sum((x - mean) ** 2, axis=-1, keepdims=True) / (x.shape[-1] - 1)
    std = jnp.sqrt(var)
    return gamma * (x - mean) / (std + LN_EPS) + beta


def ut_encoder_kernel(sin_ref, x_ref, mask_ref,
                      wqkv_ref, bqkv_ref, wo_ref, bo_ref,
                      g1_ref, be1_ref, wf1_ref, bf1_ref,
                      wf2_ref, bf2_ref, g2_ref, be2_ref,
                      out_ref):
    # One batch element per grid step (parallel axis); weights are full
    # resident blocks loaded once.
    mask = mask_ref[...]                     # (1, T) float {0,1}
    wqkv = wqkv_ref[...]; bqkv = bqkv_ref[...]
    wo = wo_ref[...]; bo = bo_ref[...]
    g1 = g1_ref[...]; be1 = be1_ref[...]
    wf1 = wf1_ref[...]; bf1 = bf1_ref[...]
    wf2 = wf2_ref[...]; bf2 = bf2_ref[...]
    g2 = g2_ref[...]; be2 = be2_ref[...]

    def layer(t, act):
        # Add position + timestep sinusoid for this timestep.
        x_in = act + sin_ref[t]                                      # (T, D)

        # Fused Q/K/V projection: one (T, D) x (D, 2A+V) matmul.
        qkv = jnp.dot(x_in, wqkv, preferred_element_type=jnp.float32) + bqkv
        q = qkv[:, :A] * INV_SCALE                                   # (T, A)
        k = qkv[:, A:2 * A]                                          # (T, A)
        v = qkv[:, 2 * A:]                                           # (T, V)

        # Split heads onto a leading batch axis (lane slices + stack only;
        # no in-kernel transposes of minor dims).
        qh = jnp.stack([q[:, h * DH:(h + 1) * DH] for h in range(H)], axis=0)
        kh = jnp.stack([k[:, h * DH:(h + 1) * DH] for h in range(H)], axis=0)
        vh = jnp.stack([v[:, h * DV:(h + 1) * DV] for h in range(H)], axis=0)

        # Scores for all heads at once: (H, T, T).
        s = jnp.einsum('hqd,hkd->hqk', qh, kh,
                       preferred_element_type=jnp.float32)

        # AllenNLP masked_softmax (multiplicative variant), fused over heads.
        sm = s * mask                                   # mask bcast -> keys
        sm = sm - jnp.max(sm, axis=-1, keepdims=True)
        e = jnp.exp(sm)
        p = e * pl.reciprocal(jnp.sum(e, axis=-1, keepdims=True), approx=True)
        p = p * mask
        p = p / (jnp.sum(p, axis=-1, keepdims=True) + 1e-13)

        # Weighted sum of values: (H, T, DV), one batched matmul.
        oh = jnp.einsum('hqk,hkd->hqd', p, vh,
                        preferred_element_type=jnp.float32)

        # Head reduction inside the MXU: concat heads along lanes -> (T, V)
        # and hit the original (V, D) output projection in one matmul.
        o_cat = jnp.concatenate([oh[h] for h in range(H)], axis=-1)  # (T, V)
        attn = jnp.dot(o_cat, wo, preferred_element_type=jnp.float32) + bo

        # Residual + LayerNorm (residual dropout is identity in eval mode).
        h1 = _layer_norm(attn + x_in, g1, be1)

        # FeedForward: Linear -> ReLU -> Linear (linear activation).
        f = jnp.dot(h1, wf1, preferred_element_type=jnp.float32) + bf1
        f = jnp.maximum(f, 0.0)
        f = jnp.dot(f, wf2, preferred_element_type=jnp.float32) + bf2

        return _layer_norm(f + h1, g2, be2)

    out_ref[...] = lax.fori_loop(0, MAX_LAYERS, layer, x_ref[...], unroll=True)


def position_timestep_signal(timestep):
    # TODO(synk): exact `add_position_and_timestep_sinusoid` helper source not
    # provided; this follows the tensor2tensor / Universal-Transformer
    # coordinate embedding: concat([sin, cos]) position signal plus the same
    # form timestep signal (timestep treated as a constant position).
    num_timescales = D // 2
    pos = jnp.arange(T, dtype=jnp.float32)[:, None]                 # (T, 1)
    idx = jnp.arange(num_timescales, dtype=jnp.float32)[None, :]    # (1, D/2)
    log_inc = jnp.log(jnp.float32(1e4)) / max(num_timescales - 1, 1)
    inv_ts = jnp.exp(-log_inc * idx)                                # (1, D/2)
    pos_scaled = pos * inv_ts                                       # (T, D/2)
    ts_scaled = jnp.float32(timestep) * inv_ts                      # (1, D/2)
    pos_sig = jnp.concatenate([jnp.sin(pos_scaled), jnp.cos(pos_scaled)], axis=-1)
    ts_sig = jnp.concatenate([jnp.sin(ts_scaled), jnp.cos(ts_scaled)], axis=-1)
    return pos_sig + ts_sig                                         # (T, D)


def ut_encoder(x, mask, params):
    # use_act=False path: same UT block applied MAX_LAYERS times (shared
    # weights) with a per-timestep sinusoid, fused into one pallas_call.
    # Grid = batch only ("parallel": uses both TCs on v7x).
    mask_f = mask.astype(jnp.float32).reshape(B, 1, T)               # (B,1,T)
    x_f = x.astype(jnp.float32)
    sin_all = jnp.stack([position_timestep_signal(t) for t in range(MAX_LAYERS)],
                        axis=0)                                      # (L, T, D)

    def fixed(shape):
        n = len(shape)
        return pl.BlockSpec(tuple(shape), lambda b: (0,) * n)

    in_specs = ([fixed((MAX_LAYERS, T, D)),                          # sinusoids
                 pl.BlockSpec((None, T, D), lambda b: (b, 0, 0)),    # inputs
                 pl.BlockSpec((None, 1, T), lambda b: (b, 0, 0))]    # key mask
                + [fixed(p.shape) for p in params])                  # weights

    out = pl.pallas_call(
        ut_encoder_kernel,
        out_shape=jax.ShapeDtypeStruct((B, T, D), jnp.float32),
        grid=(B,),
        in_specs=in_specs,
        out_specs=pl.BlockSpec((None, T, D), lambda b: (b, 0, 0)),
        compiler_params=pltpu.CompilerParams(dimension_semantics=("parallel",)),
    )(sin_all, x_f, mask_f, *params)
    return out


def init_params(key):
    ks = jax.random.split(key, 4)

    def lin(k, fan_in, fan_out):
        bound = 1.0 / (fan_in ** 0.5)
        kw, kb = jax.random.split(k)
        w = jax.random.uniform(kw, (fan_in, fan_out), jnp.float32, -bound, bound)
        b = jax.random.uniform(kb, (fan_out,), jnp.float32, -bound, bound)
        return w, b

    wqkv, bqkv = lin(ks[0], D, 2 * A + V)   # combined Q/K/V projection
    wo, bo = lin(ks[1], V, D)               # attention output projection
    wf1, bf1 = lin(ks[2], D, F)             # feedforward layer 1
    wf2, bf2 = lin(ks[3], F, D)             # feedforward layer 2
    g1, be1 = jnp.ones((1, D), jnp.float32), jnp.zeros((1, D), jnp.float32)
    g2, be2 = jnp.ones((1, D), jnp.float32), jnp.zeros((1, D), jnp.float32)

    return (wqkv, bqkv.reshape(1, -1), wo, bo.reshape(1, -1),
            g1, be1,
            wf1, bf1.reshape(1, -1), wf2, bf2.reshape(1, -1),
            g2, be2)


if __name__ == "__main__":
    key = jax.random.PRNGKey(0)
    kx, kp = jax.random.split(key)
    x = jax.random.normal(kx, (B, T, D), dtype=jnp.float32)
    lengths = jnp.array([T, 5], dtype=jnp.int32)
    mask = (jnp.arange(T)[None, :] < lengths[:, None]).astype(jnp.int32)  # (B, T)
    params = init_params(kp)

    out = jax.jit(ut_encoder)(x, mask, params)
    out = jax.block_until_ready(out)
    assert out.shape == (B, T, D) and out.dtype == jnp.float32
    assert bool(jnp.all(jnp.isfinite(out)))
    print("KERNEL_OK")
</pallas_src>

<mosaic_0001>
module attributes {stable_mosaic.version = 11 : i64} {
  func.func @ut_encoder_kernel(%arg0: i32, %arg1: memref<3x8x32xf32, #tpu.memory_space<vmem>>, %arg2: memref<1x8x32xf32, #tpu.memory_space<vmem>>, %arg3: memref<1x1x8xf32, #tpu.memory_space<vmem>>, %arg4: memref<32x96xf32, #tpu.memory_space<vmem>>, %arg5: memref<1x96xf32, #tpu.memory_space<vmem>>, %arg6: memref<32x32xf32, #tpu.memory_space<vmem>>, %arg7: memref<1x32xf32, #tpu.memory_space<vmem>>, %arg8: memref<1x32xf32, #tpu.memory_space<vmem>>, %arg9: memref<1x32xf32, #tpu.memory_space<vmem>>, %arg10: memref<32x32xf32, #tpu.memory_space<vmem>>, %arg11: memref<1x32xf32, #tpu.memory_space<vmem>>, %arg12: memref<32x32xf32, #tpu.memory_space<vmem>>, %arg13: memref<1x32xf32, #tpu.memory_space<vmem>>, %arg14: memref<1x32xf32, #tpu.memory_space<vmem>>, %arg15: memref<1x32xf32, #tpu.memory_space<vmem>>, %arg16: memref<1x8x32xf32, #tpu.memory_space<vmem>>) attributes {dimension_semantics = [#tpu.dimension_semantics<parallel>], iteration_bounds = array<i64: 2>, scalar_prefetch = 0 : i64, scratch_operands = 0 : i64, tpu.core_type = #tpu.core_type<tc>, window_params = [{pipeline_mode = #tpu.pipeline_mode<synchronous>, transform_indices = @transform_0, window_bounds = array<i64: 3, 8, 32>}, {transform_indices = @transform_1, window_bounds = array<i64: 1, 8, 32>}, {transform_indices = @transform_2, window_bounds = array<i64: 1, 1, 8>}, {pipeline_mode = #tpu.pipeline_mode<synchronous>, transform_indices = @transform_3, window_bounds = array<i64: 32, 96>}, {pipeline_mode = #tpu.pipeline_mode<synchronous>, transform_indices = @transform_4, window_bounds = array<i64: 1, 96>}, {pipeline_mode = #tpu.pipeline_mode<synchronous>, transform_indices = @transform_5, window_bounds = array<i64: 32, 32>}, {pipeline_mode = #tpu.pipeline_mode<synchronous>, transform_indices = @transform_6, window_bounds = array<i64: 1, 32>}, {pipeline_mode = #tpu.pipeline_mode<synchronous>, transform_indices = @transform_7, window_bounds = array<i64: 1, 32>}, {pipeline_mode = #tpu.pipeline_mode<synchronous>, transform_indices = @transform_8, window_bounds = array<i64: 1, 32>}, {pipeline_mode = #tpu.pipeline_mode<synchronous>, transform_indices = @transform_9, window_bounds = array<i64: 32, 32>}, {pipeline_mode = #tpu.pipeline_mode<synchronous>, transform_indices = @transform_10, window_bounds = array<i64: 1, 32>}, {pipeline_mode = #tpu.pipeline_mode<synchronous>, transform_indices = @transform_11, window_bounds = array<i64: 32, 32>}, {pipeline_mode = #tpu.pipeline_mode<synchronous>, transform_indices = @transform_12, window_bounds = array<i64: 1, 32>}, {pipeline_mode = #tpu.pipeline_mode<synchronous>, transform_indices = @transform_13, window_bounds = array<i64: 1, 32>}, {pipeline_mode = #tpu.pipeline_mode<synchronous>, transform_indices = @transform_14, window_bounds = array<i64: 1, 32>}, {transform_indices = @transform_15, window_bounds = array<i64: 1, 8, 32>}]} {
    %c0 = arith.constant 0 : index
    %c0_0 = arith.constant 0 : index
    %c0_1 = arith.constant 0 : index
    %0 = vector.load %arg3[%c0, %c0_0, %c0_1] : memref<1x1x8xf32, #tpu.memory_space<vmem>>, vector<1x1x8xf32>
    %1 = vector.shape_cast %0 : vector<1x1x8xf32> to vector<1x8xf32>
    %c0_2 = arith.constant 0 : index
    %c0_3 = arith.constant 0 : index
    %2 = vector.load %arg4[%c0_2, %c0_3] : memref<32x96xf32, #tpu.memory_space<vmem>>, vector<32x96xf32>
    %c0_4 = arith.constant 0 : index
    %c0_5 = arith.constant 0 : index
    %3 = vector.load %arg5[%c0_4, %c0_5] : memref<1x96xf32, #tpu.memory_space<vmem>>, vector<1x96xf32>
    %c0_6 = arith.constant 0 : index
    %c0_7 = arith.constant 0 : index
    %4 = vector.load %arg6[%c0_6, %c0_7] : memref<32x32xf32, #tpu.memory_space<vmem>>, vector<32x32xf32>
    %c0_8 = arith.constant 0 : index
    %c0_9 = arith.constant 0 : index
    %5 = vector.load %arg7[%c0_8, %c0_9] : memref<1x32xf32, #tpu.memory_space<vmem>>, vector<1x32xf32>
    %c0_10 = arith.constant 0 : index
    %c0_11 = arith.constant 0 : index
    %6 = vector.load %arg8[%c0_10, %c0_11] : memref<1x32xf32, #tpu.memory_space<vmem>>, vector<1x32xf32>
    %c0_12 = arith.constant 0 : index
    %c0_13 = arith.constant 0 : index
    %7 = vector.load %arg9[%c0_12, %c0_13] : memref<1x32xf32, #tpu.memory_space<vmem>>, vector<1x32xf32>
    %c0_14 = arith.constant 0 : index
    %c0_15 = arith.constant 0 : index
    %8 = vector.load %arg10[%c0_14, %c0_15] : memref<32x32xf32, #tpu.memory_space<vmem>>, vector<32x32xf32>
    %c0_16 = arith.constant 0 : index
    %c0_17 = arith.constant 0 : index
    %9 = vector.load %arg11[%c0_16, %c0_17] : memref<1x32xf32, #tpu.memory_space<vmem>>, vector<1x32xf32>
    %c0_18 = arith.constant 0 : index
    %c0_19 = arith.constant 0 : index
    %10 = vector.load %arg12[%c0_18, %c0_19] : memref<32x32xf32, #tpu.memory_space<vmem>>, vector<32x32xf32>
    %c0_20 = arith.constant 0 : index
    %c0_21 = arith.constant 0 : index
    %11 = vector.load %arg13[%c0_20, %c0_21] : memref<1x32xf32, #tpu.memory_space<vmem>>, vector<1x32xf32>
    %c0_22 = arith.constant 0 : index
    %c0_23 = arith.constant 0 : index
    %12 = vector.load %arg14[%c0_22, %c0_23] : memref<1x32xf32, #tpu.memory_space<vmem>>, vector<1x32xf32>
    %c0_24 = arith.constant 0 : index
    %c0_25 = arith.constant 0 : index
    %13 = vector.load %arg15[%c0_24, %c0_25] : memref<1x32xf32, #tpu.memory_space<vmem>>, vector<1x32xf32>
    %c0_26 = arith.constant 0 : index
    %c0_27 = arith.constant 0 : index
    %c0_28 = arith.constant 0 : index
    %14 = vector.load %arg2[%c0_26, %c0_27, %c0_28] : memref<1x8x32xf32, #tpu.memory_space<vmem>>, vector<1x8x32xf32>
    %15 = vector.shape_cast %14 : vector<1x8x32xf32> to vector<8x32xf32>
    %c0_i32 = arith.constant 0 : i32
    %16 = arith.index_cast %c0_i32 : i32 to index
    %c0_29 = arith.constant 0 : index
    %c0_30 = arith.constant 0 : index
    %17 = vector.load %arg1[%16, %c0_29, %c0_30] : memref<3x8x32xf32, #tpu.memory_space<vmem>>, vector<1x8x32xf32>
    %18 = vector.shape_cast %17 : vector<1x8x32xf32> to vector<8x32xf32>
    %19 = arith.addf %15, %18 : vector<8x32xf32>
    %cst = arith.constant dense<0.000000e+00> : vector<8x96xf32>
    %20 = tpu.matmul %19, %2, %cst {dimension_numbers = #tpu.dot_dimension_numbers<[1], [0], [0], [1], [0, 0, 1, 1], [], []>} : vector<8x32xf32>, vector<32x96xf32>, vector<8x96xf32> -> vector<8x96xf32>
    %21 = vector.broadcast %3 : vector<1x96xf32> to vector<8x96xf32>
    %22 = arith.addf %20, %21 : vector<8x96xf32>
    %23 = vector.extract_strided_slice %22 {offsets = [0, 0], sizes = [8, 32], strides = [1, 1]} : vector<8x96xf32> to vector<8x32xf32>
    %cst_31 = arith.constant 5.000000e-01 : f32
    %24 = vector.broadcast %cst_31 : f32 to vector<8x32xf32>
    %25 = arith.mulf %23, %24 : vector<8x32xf32>
    %26 = vector.extract_strided_slice %22 {offsets = [0, 32], sizes = [8, 32], strides = [1, 1]} : vector<8x96xf32> to vector<8x32xf32>
    %27 = vector.extract_strided_slice %22 {offsets = [0, 64], sizes = [8, 32], strides = [1, 1]} : vector<8x96xf32> to vector<8x32xf32>
    %28 = vector.extract_strided_slice %25 {offsets = [0, 0], sizes = [8, 4], strides = [1, 1]} : vector<8x32xf32> to vector<8x4xf32>
    %29 = vector.extract_strided_slice %25 {offsets = [0, 4], sizes = [8, 4], strides = [1, 1]} : vector<8x32xf32> to vector<8x4xf32>
    %30 = vector.extract_strided_slice %25 {offsets = [0, 8], sizes = [8, 4], strides = [1, 1]} : vector<8x32xf32> to vector<8x4xf32>
    %31 = vector.extract_strided_slice %25 {offsets = [0, 12], sizes = [8, 4], strides = [1, 1]} : vector<8x32xf32> to vector<8x4xf32>
    %32 = vector.extract_strided_slice %25 {offsets = [0, 16], sizes = [8, 4], strides = [1, 1]} : vector<8x32xf32> to vector<8x4xf32>
    %33 = vector.extract_strided_slice %25 {offsets = [0, 20], sizes = [8, 4], strides = [1, 1]} : vector<8x32xf32> to vector<8x4xf32>
    %34 = vector.extract_strided_slice %25 {offsets = [0, 24], sizes = [8, 4], strides = [1, 1]} : vector<8x32xf32> to vector<8x4xf32>
    %35 = vector.extract_strided_slice %25 {offsets = [0, 28], sizes = [8, 4], strides = [1, 1]} : vector<8x32xf32> to vector<8x4xf32>
    %36 = vector.shape_cast %28 : vector<8x4xf32> to vector<1x8x4xf32>
    %37 = vector.shape_cast %29 : vector<8x4xf32> to vector<1x8x4xf32>
    %38 = vector.shape_cast %30 : vector<8x4xf32> to vector<1x8x4xf32>
    %39 = vector.shape_cast %31 : vector<8x4xf32> to vector<1x8x4xf32>
    %40 = vector.shape_cast %32 : vector<8x4xf32> to vector<1x8x4xf32>
    %41 = vector.shape_cast %33 : vector<8x4xf32> to vector<1x8x4xf32>
    %42 = vector.shape_cast %34 : vector<8x4xf32> to vector<1x8x4xf32>
    %43 = vector.shape_cast %35 : vector<8x4xf32> to vector<1x8x4xf32>
    %44 = tpu.concatenate %36, %37, %38, %39, %40, %41, %42, %43 in 0 : vector<1x8x4xf32>, vector<1x8x4xf32>, vector<1x8x4xf32>, vector<1x8x4xf32>, vector<1x8x4xf32>, vector<1x8x4xf32>, vector<1x8x4xf32>, vector<1x8x4xf32> -> vector<8x8x4xf32>
    %45 = vector.extract_strided_slice %26 {offsets = [0, 0], sizes = [8, 4], strides = [1, 1]} : vector<8x32xf32> to vector<8x4xf32>
    %46 = vector.extract_strided_slice %26 {offsets = [0, 4], sizes = [8, 4], strides = [1, 1]} : vector<8x32xf32> to vector<8x4xf32>
    %47 = vector.extract_strided_slice %26 {offsets = [0, 8], sizes = [8, 4], strides = [1, 1]} : vector<8x32xf32> to vector<8x4xf32>
    %48 = vector.extract_strided_slice %26 {offsets = [0, 12], sizes = [8, 4], strides = [1, 1]} : vector<8x32xf32> to vector<8x4xf32>
    %49 = vector.extract_strided_slice %26 {offsets = [0, 16], sizes = [8, 4], strides = [1, 1]} : vector<8x32xf32> to vector<8x4xf32>
    %50 = vector.extract_strided_slice %26 {offsets = [0, 20], sizes = [8, 4], strides = [1, 1]} : vector<8x32xf32> to vector<8x4xf32>
    %51 = vector.extract_strided_slice %26 {offsets = [0, 24], sizes = [8, 4], strides = [1, 1]} : vector<8x32xf32> to vector<8x4xf32>
    %52 = vector.extract_strided_slice %26 {offsets = [0, 28], sizes = [8, 4], strides = [1, 1]} : vector<8x32xf32> to vector<8x4xf32>
    %53 = vector.shape_cast %45 : vector<8x4xf32> to vector<1x8x4xf32>
    %54 = vector.shape_cast %46 : vector<8x4xf32> to vector<1x8x4xf32>
    %55 = vector.shape_cast %47 : vector<8x4xf32> to vector<1x8x4xf32>
    %56 = vector.shape_cast %48 : vector<8x4xf32> to vector<1x8x4xf32>
    %57 = vector.shape_cast %49 : vector<8x4xf32> to vector<1x8x4xf32>
    %58 = vector.shape_cast %50 : vector<8x4xf32> to vector<1x8x4xf32>
    %59 = vector.shape_cast %51 : vector<8x4xf32> to vector<1x8x4xf32>
    %60 = vector.shape_cast %52 : vector<8x4xf32> to vector<1x8x4xf32>
    %61 = tpu.concatenate %53, %54, %55, %56, %57, %58, %59, %60 in 0 : vector<1x8x4xf32>, vector<1x8x4xf32>, vector<1x8x4xf32>, vector<1x8x4xf32>, vector<1x8x4xf32>, vector<1x8x4xf32>, vector<1x8x4xf32>, vector<1x8x4xf32> -> vector<8x8x4xf32>
    %62 = vector.extract_strided_slice %27 {offsets = [0, 0], sizes = [8, 4], strides = [1, 1]} : vector<8x32xf32> to vector<8x4xf32>
    %63 = vector.extract_strided_slice %27 {offsets = [0, 4], sizes = [8, 4], strides = [1, 1]} : vector<8x32xf32> to vector<8x4xf32>
    %64 = vector.extract_strided_slice %27 {offsets = [0, 8], sizes = [8, 4], strides = [1, 1]} : vector<8x32xf32> to vector<8x4xf32>
    %65 = vector.extract_strided_slice %27 {offsets = [0, 12], sizes = [8, 4], strides = [1, 1]} : vector<8x32xf32> to vector<8x4xf32>
    %66 = vector.extract_strided_slice %27 {offsets = [0, 16], sizes = [8, 4], strides = [1, 1]} : vector<8x32xf32> to vector<8x4xf32>
    %67 = vector.extract_strided_slice %27 {offsets = [0, 20], sizes = [8, 4], strides = [1, 1]} : vector<8x32xf32> to vector<8x4xf32>
    %68 = vector.extract_strided_slice %27 {offsets = [0, 24], sizes = [8, 4], strides = [1, 1]} : vector<8x32xf32> to vector<8x4xf32>
    %69 = vector.extract_strided_slice %27 {offsets = [0, 28], sizes = [8, 4], strides = [1, 1]} : vector<8x32xf32> to vector<8x4xf32>
    %70 = vector.shape_cast %62 : vector<8x4xf32> to vector<1x8x4xf32>
    %71 = vector.shape_cast %63 : vector<8x4xf32> to vector<1x8x4xf32>
    %72 = vector.shape_cast %64 : vector<8x4xf32> to vector<1x8x4xf32>
    %73 = vector.shape_cast %65 : vector<8x4xf32> to vector<1x8x4xf32>
    %74 = vector.shape_cast %66 : vector<8x4xf32> to vector<1x8x4xf32>
    %75 = vector.shape_cast %67 : vector<8x4xf32> to vector<1x8x4xf32>
    %76 = vector.shape_cast %68 : vector<8x4xf32> to vector<1x8x4xf32>
    %77 = vector.shape_cast %69 : vector<8x4xf32> to vector<1x8x4xf32>
    %78 = tpu.concatenate %70, %71, %72, %73, %74, %75, %76, %77 in 0 : vector<1x8x4xf32>, vector<1x8x4xf32>, vector<1x8x4xf32>, vector<1x8x4xf32>, vector<1x8x4xf32>, vector<1x8x4xf32>, vector<1x8x4xf32>, vector<1x8x4xf32> -> vector<8x8x4xf32>
    "tpu.trace_start"() <{level = 10 : i32, message = "hqd,hkd->hqk"}> : () -> ()
    %cst_32 = arith.constant dense<0.000000e+00> : vector<8x8x8xf32>
    %79 = tpu.matmul %44, %61, %cst_32 {dimension_numbers = #tpu.dot_dimension_numbers<[2], [2], [1], [1], [0, 0, 0, 1, 1, 1], [0], [0]>} : vector<8x8x4xf32>, vector<8x8x4xf32>, vector<8x8x8xf32> -> vector<8x8x8xf32>
    "tpu.trace_stop"() : () -> ()
    %80 = vector.shape_cast %1 : vector<1x8xf32> to vector<1x1x8xf32>
    %81 = vector.broadcast %80 : vector<1x1x8xf32> to vector<8x8x8xf32>
    %82 = arith.mulf %79, %81 : vector<8x8x8xf32>
    %cst_33 = arith.constant dense<0xFF800000> : vector<8x8xf32>
    %83 = vector.multi_reduction <maximumf>, %82, %cst_33 [2] : vector<8x8x8xf32> to vector<8x8xf32>
    %84 = vector.shape_cast %83 : vector<8x8xf32> to vector<8x8x1xf32>
    %85 = vector.broadcast %84 : vector<8x8x1xf32> to vector<8x8x8xf32>
    %86 = arith.subf %82, %85 : vector<8x8x8xf32>
    %87 = math.exp %86 : vector<8x8x8xf32>
    %cst_34 = arith.constant dense<0.000000e+00> : vector<8x8xf32>
    %88 = vector.multi_reduction <add>, %87, %cst_34 [2] : vector<8x8x8xf32> to vector<8x8xf32>
    %89 = vector.shape_cast %88 : vector<8x8xf32> to vector<8x8x1xf32>
    %90 = tpu.reciprocal %89 {approx = true} : vector<8x8x1xf32> -> vector<8x8x1xf32>
    %91 = vector.broadcast %90 : vector<8x8x1xf32> to vector<8x8x8xf32>
    %92 = arith.mulf %87, %91 : vector<8x8x8xf32>
    %93 = vector.shape_cast %1 : vector<1x8xf32> to vector<1x1x8xf32>
    %94 = vector.broadcast %93 : vector<1x1x8xf32> to vector<8x8x8xf32>
    %95 = arith.mulf %92, %94 : vector<8x8x8xf32>
    %cst_35 = arith.constant dense<0.000000e+00> : vector<8x8xf32>
    %96 = vector.multi_reduction <add>, %95, %cst_35 [2] : vector<8x8x8xf32> to vector<8x8xf32>
    %97 = vector.shape_cast %96 : vector<8x8xf32> to vector<8x8x1xf32>
    %cst_36 = arith.constant 9.99999982E-14 : f32
    %98 = vector.broadcast %cst_36 : f32 to vector<8x8x1xf32>
    %99 = arith.addf %97, %98 : vector<8x8x1xf32>
    %100 = vector.broadcast %99 : vector<8x8x1xf32> to vector<8x8x8xf32>
    %101 = arith.divf %95, %100 : vector<8x8x8xf32>
    "tpu.trace_start"() <{level = 10 : i32, message = "hqk,hkd->hqd"}> : () -> ()
    %cst_37 = arith.constant dense<0.000000e+00> : vector<8x8x4xf32>
    %102 = tpu.matmul %101, %78, %cst_37 {dimension_numbers = #tpu.dot_dimension_numbers<[2], [1], [1], [2], [0, 0, 0, 1, 1, 2], [0], [0]>} : vector<8x8x8xf32>, vector<8x8x4xf32>, vector<8x8x4xf32> -> vector<8x8x4xf32>
    "tpu.trace_stop"() : () -> ()
    %103 = vector.extract_strided_slice %102 {offsets = [0, 0, 0], sizes = [1, 8, 4], strides = [1, 1, 1]} : vector<8x8x4xf32> to vector<1x8x4xf32>
    %104 = vector.shape_cast %103 : vector<1x8x4xf32> to vector<8x4xf32>
    %105 = vector.extract_strided_slice %102 {offsets = [1, 0, 0], sizes = [1, 8, 4], strides = [1, 1, 1]} : vector<8x8x4xf32> to vector<1x8x4xf32>
    %106 = vector.shape_cast %105 : vector<1x8x4xf32> to vector<8x4xf32>
    %107 = vector.extract_strided_slice %102 {offsets = [2, 0, 0], sizes = [1, 8, 4], strides = [1, 1, 1]} : vector<8x8x4xf32> to vector<1x8x4xf32>
    %108 = vector.shape_cast %107 : vector<1x8x4xf32> to vector<8x4xf32>
    %109 = vector.extract_strided_slice %102 {offsets = [3, 0, 0], sizes = [1, 8, 4], strides = [1, 1, 1]} : vector<8x8x4xf32> to vector<1x8x4xf32>
    %110 = vector.shape_cast %109 : vector<1x8x4xf32> to vector<8x4xf32>
    %111 = vector.extract_strided_slice %102 {offsets = [4, 0, 0], sizes = [1, 8, 4], strides = [1, 1, 1]} : vector<8x8x4xf32> to vector<1x8x4xf32>
    %112 = vector.shape_cast %111 : vector<1x8x4xf32> to vector<8x4xf32>
    %113 = vector.extract_strided_slice %102 {offsets = [5, 0, 0], sizes = [1, 8, 4], strides = [1, 1, 1]} : vector<8x8x4xf32> to vector<1x8x4xf32>
    %114 = vector.shape_cast %113 : vector<1x8x4xf32> to vector<8x4xf32>
    %115 = vector.extract_strided_slice %102 {offsets = [6, 0, 0], sizes = [1, 8, 4], strides = [1, 1, 1]} : vector<8x8x4xf32> to vector<1x8x4xf32>
    %116 = vector.shape_cast %115 : vector<1x8x4xf32> to vector<8x4xf32>
    %117 = vector.extract_strided_slice %102 {offsets = [7, 0, 0], sizes = [1, 8, 4], strides = [1, 1, 1]} : vector<8x8x4xf32> to vector<1x8x4xf32>
    %118 = vector.shape_cast %117 : vector<1x8x4xf32> to vector<8x4xf32>
    %119 = tpu.concatenate %104, %106, %108, %110, %112, %114, %116, %118 in 1 : vector<8x4xf32>, vector<8x4xf32>, vector<8x4xf32>, vector<8x4xf32>, vector<8x4xf32>, vector<8x4xf32>, vector<8x4xf32>, vector<8x4xf32> -> vector<8x32xf32>
    %cst_38 = arith.constant dense<0.000000e+00> : vector<8x32xf32>
    %120 = tpu.matmul %119, %4, %cst_38 {dimension_numbers = #tpu.dot_dimension_numbers<[1], [0], [0], [1], [0, 0, 1, 1], [], []>} : vector<8x32xf32>, vector<32x32xf32>, vector<8x32xf32> -> vector<8x32xf32>
    %121 = vector.broadcast %5 : vector<1x32xf32> to vector<8x32xf32>
    %122 = arith.addf %120, %121 : vector<8x32xf32>
    %123 = arith.addf %122, %19 : vector<8x32xf32>
    %cst_39 = arith.constant dense<0.000000e+00> : vector<8xf32>
    %124 = vector.multi_reduction <add>, %123, %cst_39 [1] : vector<8x32xf32> to vector<8xf32>
    %125 = vector.shape_cast %124 : vector<8xf32> to vector<8x1xf32>
    %cst_40 = arith.constant 3.200000e+01 : f32
    %126 = vector.broadcast %cst_40 : f32 to vector<8x1xf32>
    %127 = arith.divf %125, %126 : vector<8x1xf32>
    %128 = vector.broadcast %127 : vector<8x1xf32> to vector<8x32xf32>
    %129 = arith.subf %123, %128 : vector<8x32xf32>
    %130 = arith.mulf %129, %129 : vector<8x32xf32>
    %cst_41 = arith.constant dense<0.000000e+00> : vector<8xf32>
    %131 = vector.multi_reduction <add>, %130, %cst_41 [1] : vector<8x32xf32> to vector<8xf32>
    %132 = vector.shape_cast %131 : vector<8xf32> to vector<8x1xf32>
    %cst_42 = arith.constant 3.100000e+01 : f32
    %133 = vector.broadcast %cst_42 : f32 to vector<8x1xf32>
    %134 = arith.divf %132, %133 : vector<8x1xf32>
    %135 = math.sqrt %134 : vector<8x1xf32>
    %136 = vector.broadcast %127 : vector<8x1xf32> to vector<8x32xf32>
    %137 = arith.subf %123, %136 : vector<8x32xf32>
    %138 = vector.broadcast %6 : vector<1x32xf32> to vector<8x32xf32>
    %139 = arith.mulf %138, %137 : vector<8x32xf32>
    %cst_43 = arith.constant 9.99999997E-7 : f32
    %140 = vector.broadcast %cst_43 : f32 to vector<8x1xf32>
    %141 = arith.addf %135, %140 : vector<8x1xf32>
    %142 = vector.broadcast %141 : vector<8x1xf32> to vector<8x32xf32>
    %143 = arith.divf %139, %142 : vector<8x32xf32>
    %144 = vector.broadcast %7 : vector<1x32xf32> to vector<8x32xf32>
    %145 = arith.addf %143, %144 : vector<8x32xf32>
    %cst_44 = arith.constant dense<0.000000e+00> : vector<8x32xf32>
    %146 = tpu.matmul %145, %8, %cst_44 {dimension_numbers = #tpu.dot_dimension_numbers<[1], [0], [0], [1], [0, 0, 1, 1], [], []>} : vector<8x32xf32>, vector<32x32xf32>, vector<8x32xf32> -> vector<8x32xf32>
    %147 = vector.broadcast %9 : vector<1x32xf32> to vector<8x32xf32>
    %148 = arith.addf %146, %147 : vector<8x32xf32>
    %cst_45 = arith.constant 0.000000e+00 : f32
    %149 = vector.broadcast %cst_45 : f32 to vector<8x32xf32>
    %150 = arith.maximumf %148, %149 : vector<8x32xf32>
    %cst_46 = arith.constant dense<0.000000e+00> : vector<8x32xf32>
    %151 = tpu.matmul %150, %10, %cst_46 {dimension_numbers = #tpu.dot_dimension_numbers<[1], [0], [0], [1], [0, 0, 1, 1], [], []>} : vector<8x32xf32>, vector<32x32xf32>, vector<8x32xf32> -> vector<8x32xf32>
    %152 = vector.broadcast %11 : vector<1x32xf32> to vector<8x32xf32>
    %153 = arith.addf %151, %152 : vector<8x32xf32>
    %154 = arith.addf %153, %145 : vector<8x32xf32>
    %cst_47 = arith.constant dense<0.000000e+00> : vector<8xf32>
    %155 = vector.multi_reduction <add>, %154, %cst_47 [1] : vector<8x32xf32> to vector<8xf32>
    %156 = vector.shape_cast %155 : vector<8xf32> to vector<8x1xf32>
    %cst_48 = arith.constant 3.200000e+01 : f32
    %157 = vector.broadcast %cst_48 : f32 to vector<8x1xf32>
    %158 = arith.divf %156, %157 : vector<8x1xf32>
    %159 = vector.broadcast %158 : vector<8x1xf32> to vector<8x32xf32>
    %160 = arith.subf %154, %159 : vector<8x32xf32>
    %161 = arith.mulf %160, %160 : vector<8x32xf32>
    %cst_49 = arith.constant dense<0.000000e+00> : vector<8xf32>
    %162 = vector.multi_reduction <add>, %161, %cst_49 [1] : vector<8x32xf32> to vector<8xf32>
    %163 = vector.shape_cast %162 : vector<8xf32> to vector<8x1xf32>
    %cst_50 = arith.constant 3.100000e+01 : f32
    %164 = vector.broadcast %cst_50 : f32 to vector<8x1xf32>
    %165 = arith.divf %163, %164 : vector<8x1xf32>
    %166 = math.sqrt %165 : vector<8x1xf32>
    %167 = vector.broadcast %158 : vector<8x1xf32> to vector<8x32xf32>
    %168 = arith.subf %154, %167 : vector<8x32xf32>
    %169 = vector.broadcast %12 : vector<1x32xf32> to vector<8x32xf32>
    %170 = arith.mulf %169, %168 : vector<8x32xf32>
    %cst_51 = arith.constant 9.99999997E-7 : f32
    %171 = vector.broadcast %cst_51 : f32 to vector<8x1xf32>
    %172 = arith.addf %166, %171 : vector<8x1xf32>
    %173 = vector.broadcast %172 : vector<8x1xf32> to vector<8x32xf32>
    %174 = arith.divf %170, %173 : vector<8x32xf32>
    %175 = vector.broadcast %13 : vector<1x32xf32> to vector<8x32xf32>
    %176 = arith.addf %174, %175 : vector<8x32xf32>
    %c1_i32 = arith.constant 1 : i32
    %177 = arith.index_cast %c1_i32 : i32 to index
    %c0_52 = arith.constant 0 : index
    %c0_53 = arith.constant 0 : index
    %178 = vector.load %arg1[%177, %c0_52, %c0_53] : memref<3x8x32xf32, #tpu.memory_space<vmem>>, vector<1x8x32xf32>
    %179 = vector.shape_cast %178 : vector<1x8x32xf32> to vector<8x32xf32>
    %180 = arith.addf %176, %179 : vector<8x32xf32>
    %cst_54 = arith.constant dense<0.000000e+00> : vector<8x96xf32>
    %181 = tpu.matmul %180, %2, %cst_54 {dimension_numbers = #tpu.dot_dimension_numbers<[1], [0], [0], [1], [0, 0, 1, 1], [], []>} : vector<8x32xf32>, vector<32x96xf32>, vector<8x96xf32> -> vector<8x96xf32>
    %182 = vector.broadcast %3 : vector<1x96xf32> to vector<8x96xf32>
    %183 = arith.addf %181, %182 : vector<8x96xf32>
    %184 = vector.extract_strided_slice %183 {offsets = [0, 0], sizes = [8, 32], strides = [1, 1]} : vector<8x96xf32> to vector<8x32xf32>
    %cst_55 = arith.constant 5.000000e-01 : f32
    %185 = vector.broadcast %cst_55 : f32 to vector<8x32xf32>
    %186 = arith.mulf %184, %185 : vector<8x32xf32>
    %187 = vector.extract_strided_slice %183 {offsets = [0, 32], sizes = [8, 32], strides = [1, 1]} : vector<8x96xf32> to vector<8x32xf32>
    %188 = vector.extract_strided_slice %183 {offsets = [0, 64], sizes = [8, 32], strides = [1, 1]} : vector<8x96xf32> to vector<8x32xf32>
    %189 = vector.extract_strided_slice %186 {offsets = [0, 0], sizes = [8, 4], strides = [1, 1]} : vector<8x32xf32> to vector<8x4xf32>
    %190 = vector.extract_strided_slice %186 {offsets = [0, 4], sizes = [8, 4], strides = [1, 1]} : vector<8x32xf32> to vector<8x4xf32>
    %191 = vector.extract_strided_slice %186 {offsets = [0, 8], sizes = [8, 4], strides = [1, 1]} : vector<8x32xf32> to vector<8x4xf32>
    %192 = vector.extract_strided_slice %186 {offsets = [0, 12], sizes = [8, 4], strides = [1, 1]} : vector<8x32xf32> to vector<8x4xf32>
    %193 = vector.extract_strided_slice %186 {offsets = [0, 16], sizes = [8, 4], strides = [1, 1]} : vector<8x32xf32> to vector<8x4xf32>
    %194 = vector.extract_strided_slice %186 {offsets = [0, 20], sizes = [8, 4], strides = [1, 1]} : vector<8x32xf32> to vector<8x4xf32>
    %195 = vector.extract_strided_slice %186 {offsets = [0, 24], sizes = [8, 4], strides = [1, 1]} : vector<8x32xf32> to vector<8x4xf32>
    %196 = vector.extract_strided_slice %186 {offsets = [0, 28], sizes = [8, 4], strides = [1, 1]} : vector<8x32xf32> to vector<8x4xf32>
    %197 = vector.shape_cast %189 : vector<8x4xf32> to vector<1x8x4xf32>
    %198 = vector.shape_cast %190 : vector<8x4xf32> to vector<1x8x4xf32>
    %199 = vector.shape_cast %191 : vector<8x4xf32> to vector<1x8x4xf32>
    %200 = vector.shape_cast %192 : vector<8x4xf32> to vector<1x8x4xf32>
    %201 = vector.shape_cast %193 : vector<8x4xf32> to vector<1x8x4xf32>
    %202 = vector.shape_cast %194 : vector<8x4xf32> to vector<1x8x4xf32>
    %203 = vector.shape_cast %195 : vector<8x4xf32> to vector<1x8x4xf32>
    %204 = vector.shape_cast %196 : vector<8x4xf32> to vector<1x8x4xf32>
    %205 = tpu.concatenate %197, %198, %199, %200, %201, %202, %203, %204 in 0 : vector<1x8x4xf32>, vector<1x8x4xf32>, vector<1x8x4xf32>, vector<1x8x4xf32>, vector<1x8x4xf32>, vector<1x8x4xf32>, vector<1x8x4xf32>, vector<1x8x4xf32> -> vector<8x8x4xf32>
    %206 = vector.extract_strided_slice %187 {offsets = [0, 0], sizes = [8, 4], strides = [1, 1]} : vector<8x32xf32> to vector<8x4xf32>
    %207 = vector.extract_strided_slice %187 {offsets = [0, 4], sizes = [8, 4], strides = [1, 1]} : vector<8x32xf32> to vector<8x4xf32>
    %208 = vector.extract_strided_slice %187 {offsets = [0, 8], sizes = [8, 4], strides = [1, 1]} : vector<8x32xf32> to vector<8x4xf32>
    %209 = vector.extract_strided_slice %187 {offsets = [0, 12], sizes = [8, 4], strides = [1, 1]} : vector<8x32xf32> to vector<8x4xf32>
    %210 = vector.extract_strided_slice %187 {offsets = [0, 16], sizes = [8, 4], strides = [1, 1]} : vector<8x32xf32> to vector<8x4xf32>
    %211 = vector.extract_strided_slice %187 {offsets = [0, 20], sizes = [8, 4], strides = [1, 1]} : vector<8x32xf32> to vector<8x4xf32>
    %212 = vector.extract_strided_slice %187 {offsets = [0, 24], sizes = [8, 4], strides = [1, 1]} : vector<8x32xf32> to vector<8x4xf32>
    %213 = vector.extract_strided_slice %187 {offsets = [0, 28], sizes = [8, 4], strides = [1, 1]} : vector<8x32xf32> to vector<8x4xf32>
    %214 = vector.shape_cast %206 : vector<8x4xf32> to vector<1x8x4xf32>
    %215 = vector.shape_cast %207 : vector<8x4xf32> to vector<1x8x4xf32>
    %216 = vector.shape_cast %208 : vector<8x4xf32> to vector<1x8x4xf32>
    %217 = vector.shape_cast %209 : vector<8x4xf32> to vector<1x8x4xf32>
    %218 = vector.shape_cast %210 : vector<8x4xf32> to vector<1x8x4xf32>
    %219 = vector.shape_cast %211 : vector<8x4xf32> to vector<1x8x4xf32>
    %220 = vector.shape_cast %212 : vector<8x4xf32> to vector<1x8x4xf32>
    %221 = vector.shape_cast %213 : vector<8x4xf32> to vector<1x8x4xf32>
    %222 = tpu.concatenate %214, %215, %216, %217, %218, %219, %220, %221 in 0 : vector<1x8x4xf32>, vector<1x8x4xf32>, vector<1x8x4xf32>, vector<1x8x4xf32>, vector<1x8x4xf32>, vector<1x8x4xf32>, vector<1x8x4xf32>, vector<1x8x4xf32> -> vector<8x8x4xf32>
    %223 = vector.extract_strided_slice %188 {offsets = [0, 0], sizes = [8, 4], strides = [1, 1]} : vector<8x32xf32> to vector<8x4xf32>
    %224 = vector.extract_strided_slice %188 {offsets = [0, 4], sizes = [8, 4], strides = [1, 1]} : vector<8x32xf32> to vector<8x4xf32>
    %225 = vector.extract_strided_slice %188 {offsets = [0, 8], sizes = [8, 4], strides = [1, 1]} : vector<8x32xf32> to vector<8x4xf32>
    %226 = vector.extract_strided_slice %188 {offsets = [0, 12], sizes = [8, 4], strides = [1, 1]} : vector<8x32xf32> to vector<8x4xf32>
    %227 = vector.extract_strided_slice %188 {offsets = [0, 16], sizes = [8, 4], strides = [1, 1]} : vector<8x32xf32> to vector<8x4xf32>
    %228 = vector.extract_strided_slice %188 {offsets = [0, 20], sizes = [8, 4], strides = [1, 1]} : vector<8x32xf32> to vector<8x4xf32>
    %229 = vector.extract_strided_slice %188 {offsets = [0, 24], sizes = [8, 4], strides = [1, 1]} : vector<8x32xf32> to vector<8x4xf32>
    %230 = vector.extract_strided_slice %188 {offsets = [0, 28], sizes = [8, 4], strides = [1, 1]} : vector<8x32xf32> to vector<8x4xf32>
    %231 = vector.shape_cast %223 : vector<8x4xf32> to vector<1x8x4xf32>
    %232 = vector.shape_cast %224 : vector<8x4xf32> to vector<1x8x4xf32>
    %233 = vector.shape_cast %225 : vector<8x4xf32> to vector<1x8x4xf32>
    %234 = vector.shape_cast %226 : vector<8x4xf32> to vector<1x8x4xf32>
    %235 = vector.shape_cast %227 : vector<8x4xf32> to vector<1x8x4xf32>
    %236 = vector.shape_cast %228 : vector<8x4xf32> to vector<1x8x4xf32>
    %237 = vector.shape_cast %229 : vector<8x4xf32> to vector<1x8x4xf32>
    %238 = vector.shape_cast %230 : vector<8x4xf32> to vector<1x8x4xf32>
    %239 = tpu.concatenate %231, %232, %233, %234, %235, %236, %237, %238 in 0 : vector<1x8x4xf32>, vector<1x8x4xf32>, vector<1x8x4xf32>, vector<1x8x4xf32>, vector<1x8x4xf32>, vector<1x8x4xf32>, vector<1x8x4xf32>, vector<1x8x4xf32> -> vector<8x8x4xf32>
    "tpu.trace_start"() <{level = 10 : i32, message = "hqd,hkd->hqk"}> : () -> ()
    %cst_56 = arith.constant dense<0.000000e+00> : vector<8x8x8xf32>
    %240 = tpu.matmul %205, %222, %cst_56 {dimension_numbers = #tpu.dot_dimension_numbers<[2], [2], [1], [1], [0, 0, 0, 1, 1, 1], [0], [0]>} : vector<8x8x4xf32>, vector<8x8x4xf32>, vector<8x8x8xf32> -> vector<8x8x8xf32>
    "tpu.trace_stop"() : () -> ()
    %241 = vector.shape_cast %1 : vector<1x8xf32> to vector<1x1x8xf32>
    %242 = vector.broadcast %241 : vector<1x1x8xf32> to vector<8x8x8xf32>
    %243 = arith.mulf %240, %242 : vector<8x8x8xf32>
    %cst_57 = arith.constant dense<0xFF800000> : vector<8x8xf32>
    %244 = vector.multi_reduction <maximumf>, %243, %cst_57 [2] : vector<8x8x8xf32> to vector<8x8xf32>
    %245 = vector.shape_cast %244 : vector<8x8xf32> to vector<8x8x1xf32>
    %246 = vector.broadcast %245 : vector<8x8x1xf32> to vector<8x8x8xf32>
    %247 = arith.subf %243, %246 : vector<8x8x8xf32>
    %248 = math.exp %247 : vector<8x8x8xf32>
    %cst_58 = arith.constant dense<0.000000e+00> : vector<8x8xf32>
    %249 = vector.multi_reduction <add>, %248, %cst_58 [2] : vector<8x8x8xf32> to vector<8x8xf32>
    %250 = vector.shape_cast %249 : vector<8x8xf32> to vector<8x8x1xf32>
    %251 = tpu.reciprocal %250 {approx = true} : vector<8x8x1xf32> -> vector<8x8x1xf32>
    %252 = vector.broadcast %251 : vector<8x8x1xf32> to vector<8x8x8xf32>
    %253 = arith.mulf %248, %252 : vector<8x8x8xf32>
    %254 = vector.shape_cast %1 : vector<1x8xf32> to vector<1x1x8xf32>
    %255 = vector.broadcast %254 : vector<1x1x8xf32> to vector<8x8x8xf32>
    %256 = arith.mulf %253, %255 : vector<8x8x8xf32>
    %cst_59 = arith.constant dense<0.000000e+00> : vector<8x8xf32>
    %257 = vector.multi_reduction <add>, %256, %cst_59 [2] : vector<8x8x8xf32> to vector<8x8xf32>
    %258 = vector.shape_cast %257 : vector<8x8xf32> to vector<8x8x1xf32>
    %cst_60 = arith.constant 9.99999982E-14 : f32
    %259 = vector.broadcast %cst_60 : f32 to vector<8x8x1xf32>
    %260 = arith.addf %258, %259 : vector<8x8x1xf32>
    %261 = vector.broadcast %260 : vector<8x8x1xf32> to vector<8x8x8xf32>
    %262 = arith.divf %256, %261 : vector<8x8x8xf32>
    "tpu.trace_start"() <{level = 10 : i32, message = "hqk,hkd->hqd"}> : () -> ()
    %cst_61 = arith.constant dense<0.000000e+00> : vector<8x8x4xf32>
    %263 = tpu.matmul %262, %239, %cst_61 {dimension_numbers = #tpu.dot_dimension_numbers<[2], [1], [1], [2], [0, 0, 0, 1, 1, 2], [0], [0]>} : vector<8x8x8xf32>, vector<8x8x4xf32>, vector<8x8x4xf32> -> vector<8x8x4xf32>
    "tpu.trace_stop"() : () -> ()
    %264 = vector.extract_strided_slice %263 {offsets = [0, 0, 0], sizes = [1, 8, 4], strides = [1, 1, 1]} : vector<8x8x4xf32> to vector<1x8x4xf32>
    %265 = vector.shape_cast %264 : vector<1x8x4xf32> to vector<8x4xf32>
    %266 = vector.extract_strided_slice %263 {offsets = [1, 0, 0], sizes = [1, 8, 4], strides = [1, 1, 1]} : vector<8x8x4xf32> to vector<1x8x4xf32>
    %267 = vector.shape_cast %266 : vector<1x8x4xf32> to vector<8x4xf32>
    %268 = vector.extract_strided_slice %263 {offsets = [2, 0, 0], sizes = [1, 8, 4], strides = [1, 1, 1]} : vector<8x8x4xf32> to vector<1x8x4xf32>
    %269 = vector.shape_cast %268 : vector<1x8x4xf32> to vector<8x4xf32>
    %270 = vector.extract_strided_slice %263 {offsets = [3, 0, 0], sizes = [1, 8, 4], strides = [1, 1, 1]} : vector<8x8x4xf32> to vector<1x8x4xf32>
    %271 = vector.shape_cast %270 : vector<1x8x4xf32> to vector<8x4xf32>
    %272 = vector.extract_strided_slice %263 {offsets = [4, 0, 0], sizes = [1, 8, 4], strides = [1, 1, 1]} : vector<8x8x4xf32> to vector<1x8x4xf32>
    %273 = vector.shape_cast %272 : vector<1x8x4xf32> to vector<8x4xf32>
    %274 = vector.extract_strided_slice %263 {offsets = [5, 0, 0], sizes = [1, 8, 4], strides = [1, 1, 1]} : vector<8x8x4xf32> to vector<1x8x4xf32>
    %275 = vector.shape_cast %274 : vector<1x8x4xf32> to vector<8x4xf32>
    %276 = vector.extract_strided_slice %263 {offsets = [6, 0, 0], sizes = [1, 8, 4], strides = [1, 1, 1]} : vector<8x8x4xf32> to vector<1x8x4xf32>
    %277 = vector.shape_cast %276 : vector<1x8x4xf32> to vector<8x4xf32>
    %278 = vector.extract_strided_slice %263 {offsets = [7, 0, 0], sizes = [1, 8, 4], strides = [1, 1, 1]} : vector<8x8x4xf32> to vector<1x8x4xf32>
    %279 = vector.shape_cast %278 : vector<1x8x4xf32> to vector<8x4xf32>
    %280 = tpu.concatenate %265, %267, %269, %271, %273, %275, %277, %279 in 1 : vector<8x4xf32>, vector<8x4xf32>, vector<8x4xf32>, vector<8x4xf32>, vector<8x4xf32>, vector<8x4xf32>, vector<8x4xf32>, vector<8x4xf32> -> vector<8x32xf32>
    %cst_62 = arith.constant dense<0.000000e+00> : vector<8x32xf32>
    %281 = tpu.matmul %280, %4, %cst_62 {dimension_numbers = #tpu.dot_dimension_numbers<[1], [0], [0], [1], [0, 0, 1, 1], [], []>} : vector<8x32xf32>, vector<32x32xf32>, vector<8x32xf32> -> vector<8x32xf32>
    %282 = vector.broadcast %5 : vector<1x32xf32> to vector<8x32xf32>
    %283 = arith.addf %281, %282 : vector<8x32xf32>
    %284 = arith.addf %283, %180 : vector<8x32xf32>
    %cst_63 = arith.constant dense<0.000000e+00> : vector<8xf32>
    %285 = vector.multi_reduction <add>, %284, %cst_63 [1] : vector<8x32xf32> to vector<8xf32>
    %286 = vector.shape_cast %285 : vector<8xf32> to vector<8x1xf32>
    %cst_64 = arith.constant 3.200000e+01 : f32
    %287 = vector.broadcast %cst_64 : f32 to vector<8x1xf32>
    %288 = arith.divf %286, %287 : vector<8x1xf32>
    %289 = vector.broadcast %288 : vector<8x1xf32> to vector<8x32xf32>
    %290 = arith.subf %284, %289 : vector<8x32xf32>
    %291 = arith.mulf %290, %290 : vector<8x32xf32>
    %cst_65 = arith.constant dense<0.000000e+00> : vector<8xf32>
    %292 = vector.multi_reduction <add>, %291, %cst_65 [1] : vector<8x32xf32> to vector<8xf32>
    %293 = vector.shape_cast %292 : vector<8xf32> to vector<8x1xf32>
    %cst_66 = arith.constant 3.100000e+01 : f32
    %294 = vector.broadcast %cst_66 : f32 to vector<8x1xf32>
    %295 = arith.divf %293, %294 : vector<8x1xf32>
    %296 = math.sqrt %295 : vector<8x1xf32>
    %297 = vector.broadcast %288 : vector<8x1xf32> to vector<8x32xf32>
    %298 = arith.subf %284, %297 : vector<8x32xf32>
    %299 = vector.broadcast %6 : vector<1x32xf32> to vector<8x32xf32>
    %300 = arith.mulf %299, %298 : vector<8x32xf32>
    %cst_67 = arith.constant 9.99999997E-7 : f32
    %301 = vector.broadcast %cst_67 : f32 to vector<8x1xf32>
    %302 = arith.addf %296, %301 : vector<8x1xf32>
    %303 = vector.broadcast %302 : vector<8x1xf32> to vector<8x32xf32>
    %304 = arith.divf %300, %303 : vector<8x32xf32>
    %305 = vector.broadcast %7 : vector<1x32xf32> to vector<8x32xf32>
    %306 = arith.addf %304, %305 : vector<8x32xf32>
    %cst_68 = arith.constant dense<0.000000e+00> : vector<8x32xf32>
    %307 = tpu.matmul %306, %8, %cst_68 {dimension_numbers = #tpu.dot_dimension_numbers<[1], [0], [0], [1], [0, 0, 1, 1], [], []>} : vector<8x32xf32>, vector<32x32xf32>, vector<8x32xf32> -> vector<8x32xf32>
    %308 = vector.broadcast %9 : vector<1x32xf32> to vector<8x32xf32>
    %309 = arith.addf %307, %308 : vector<8x32xf32>
    %cst_69 = arith.constant 0.000000e+00 : f32
    %310 = vector.broadcast %cst_69 : f32 to vector<8x32xf32>
    %311 = arith.maximumf %309, %310 : vector<8x32xf32>
    %cst_70 = arith.constant dense<0.000000e+00> : vector<8x32xf32>
    %312 = tpu.matmul %311, %10, %cst_70 {dimension_numbers = #tpu.dot_dimension_numbers<[1], [0], [0], [1], [0, 0, 1, 1], [], []>} : vector<8x32xf32>, vector<32x32xf32>, vector<8x32xf32> -> vector<8x32xf32>
    %313 = vector.broadcast %11 : vector<1x32xf32> to vector<8x32xf32>
    %314 = arith.addf %312, %313 : vector<8x32xf32>
    %315 = arith.addf %314, %306 : vector<8x32xf32>
    %cst_71 = arith.constant dense<0.000000e+00> : vector<8xf32>
    %316 = vector.multi_reduction <add>, %315, %cst_71 [1] : vector<8x32xf32> to vector<8xf32>
    %317 = vector.shape_cast %316 : vector<8xf32> to vector<8x1xf32>
    %cst_72 = arith.constant 3.200000e+01 : f32
    %318 = vector.broadcast %cst_72 : f32 to vector<8x1xf32>
    %319 = arith.divf %317, %318 : vector<8x1xf32>
    %320 = vector.broadcast %319 : vector<8x1xf32> to vector<8x32xf32>
    %321 = arith.subf %315, %320 : vector<8x32xf32>
    %322 = arith.mulf %321, %321 : vector<8x32xf32>
    %cst_73 = arith.constant dense<0.000000e+00> : vector<8xf32>
    %323 = vector.multi_reduction <add>, %322, %cst_73 [1] : vector<8x32xf32> to vector<8xf32>
    %324 = vector.shape_cast %323 : vector<8xf32> to vector<8x1xf32>
    %cst_74 = arith.constant 3.100000e+01 : f32
    %325 = vector.broadcast %cst_74 : f32 to vector<8x1xf32>
    %326 = arith.divf %324, %325 : vector<8x1xf32>
    %327 = math.sqrt %326 : vector<8x1xf32>
    %328 = vector.broadcast %319 : vector<8x1xf32> to vector<8x32xf32>
    %329 = arith.subf %315, %328 : vector<8x32xf32>
    %330 = vector.broadcast %12 : vector<1x32xf32> to vector<8x32xf32>
    %331 = arith.mulf %330, %329 : vector<8x32xf32>
    %cst_75 = arith.constant 9.99999997E-7 : f32
    %332 = vector.broadcast %cst_75 : f32 to vector<8x1xf32>
    %333 = arith.addf %327, %332 : vector<8x1xf32>
    %334 = vector.broadcast %333 : vector<8x1xf32> to vector<8x32xf32>
    %335 = arith.divf %331, %334 : vector<8x32xf32>
    %336 = vector.broadcast %13 : vector<1x32xf32> to vector<8x32xf32>
    %337 = arith.addf %335, %336 : vector<8x32xf32>
    %c2_i32 = arith.constant 2 : i32
    %338 = arith.index_cast %c2_i32 : i32 to index
    %c0_76 = arith.constant 0 : index
    %c0_77 = arith.constant 0 : index
    %339 = vector.load %arg1[%338, %c0_76, %c0_77] : memref<3x8x32xf32, #tpu.memory_space<vmem>>, vector<1x8x32xf32>
    %340 = vector.shape_cast %339 : vector<1x8x32xf32> to vector<8x32xf32>
    %341 = arith.addf %337, %340 : vector<8x32xf32>
    %cst_78 = arith.constant dense<0.000000e+00> : vector<8x96xf32>
    %342 = tpu.matmul %341, %2, %cst_78 {dimension_numbers = #tpu.dot_dimension_numbers<[1], [0], [0], [1], [0, 0, 1, 1], [], []>} : vector<8x32xf32>, vector<32x96xf32>, vector<8x96xf32> -> vector<8x96xf32>
    %343 = vector.broadcast %3 : vector<1x96xf32> to vector<8x96xf32>
    %344 = arith.addf %342, %343 : vector<8x96xf32>
    %345 = vector.extract_strided_slice %344 {offsets = [0, 0], sizes = [8, 32], strides = [1, 1]} : vector<8x96xf32> to vector<8x32xf32>
    %cst_79 = arith.constant 5.000000e-01 : f32
    %346 = vector.broadcast %cst_79 : f32 to vector<8x32xf32>
    %347 = arith.mulf %345, %346 : vector<8x32xf32>
    %348 = vector.extract_strided_slice %344 {offsets = [0, 32], sizes = [8, 32], strides = [1, 1]} : vector<8x96xf32> to vector<8x32xf32>
    %349 = vector.extract_strided_slice %344 {offsets = [0, 64], sizes = [8, 32], strides = [1, 1]} : vector<8x96xf32> to vector<8x32xf32>
    %350 = vector.extract_strided_slice %347 {offsets = [0, 0], sizes = [8, 4], strides = [1, 1]} : vector<8x32xf32> to vector<8x4xf32>
    %351 = vector.extract_strided_slice %347 {offsets = [0, 4], sizes = [8, 4], strides = [1, 1]} : vector<8x32xf32> to vector<8x4xf32>
    %352 = vector.extract_strided_slice %347 {offsets = [0, 8], sizes = [8, 4], strides = [1, 1]} : vector<8x32xf32> to vector<8x4xf32>
    %353 = vector.extract_strided_slice %347 {offsets = [0, 12], sizes = [8, 4], strides = [1, 1]} : vector<8x32xf32> to vector<8x4xf32>
    %354 = vector.extract_strided_slice %347 {offsets = [0, 16], sizes = [8, 4], strides = [1, 1]} : vector<8x32xf32> to vector<8x4xf32>
    %355 = vector.extract_strided_slice %347 {offsets = [0, 20], sizes = [8, 4], strides = [1, 1]} : vector<8x32xf32> to vector<8x4xf32>
    %356 = vector.extract_strided_slice %347 {offsets = [0, 24], sizes = [8, 4], strides = [1, 1]} : vector<8x32xf32> to vector<8x4xf32>
    %357 = vector.extract_strided_slice %347 {offsets = [0, 28], sizes = [8, 4], strides = [1, 1]} : vector<8x32xf32> to vector<8x4xf32>
    %358 = vector.shape_cast %350 : vector<8x4xf32> to vector<1x8x4xf32>
    %359 = vector.shape_cast %351 : vector<8x4xf32> to vector<1x8x4xf32>
    %360 = vector.shape_cast %352 : vector<8x4xf32> to vector<1x8x4xf32>
    %361 = vector.shape_cast %353 : vector<8x4xf32> to vector<1x8x4xf32>
    %362 = vector.shape_cast %354 : vector<8x4xf32> to vector<1x8x4xf32>
    %363 = vector.shape_cast %355 : vector<8x4xf32> to vector<1x8x4xf32>
    %364 = vector.shape_cast %356 : vector<8x4xf32> to vector<1x8x4xf32>
    %365 = vector.shape_cast %357 : vector<8x4xf32> to vector<1x8x4xf32>
    %366 = tpu.concatenate %358, %359, %360, %361, %362, %363, %364, %365 in 0 : vector<1x8x4xf32>, vector<1x8x4xf32>, vector<1x8x4xf32>, vector<1x8x4xf32>, vector<1x8x4xf32>, vector<1x8x4xf32>, vector<1x8x4xf32>, vector<1x8x4xf32> -> vector<8x8x4xf32>
    %367 = vector.extract_strided_slice %348 {offsets = [0, 0], sizes = [8, 4], strides = [1, 1]} : vector<8x32xf32> to vector<8x4xf32>
    %368 = vector.extract_strided_slice %348 {offsets = [0, 4], sizes = [8, 4], strides = [1, 1]} : vector<8x32xf32> to vector<8x4xf32>
    %369 = vector.extract_strided_slice %348 {offsets = [0, 8], sizes = [8, 4], strides = [1, 1]} : vector<8x32xf32> to vector<8x4xf32>
    %370 = vector.extract_strided_slice %348 {offsets = [0, 12], sizes = [8, 4], strides = [1, 1]} : vector<8x32xf32> to vector<8x4xf32>
    %371 = vector.extract_strided_slice %348 {offsets = [0, 16], sizes = [8, 4], strides = [1, 1]} : vector<8x32xf32> to vector<8x4xf32>
    %372 = vector.extract_strided_slice %348 {offsets = [0, 20], sizes = [8, 4], strides = [1, 1]} : vector<8x32xf32> to vector<8x4xf32>
    %373 = vector.extract_strided_slice %348 {offsets = [0, 24], sizes = [8, 4], strides = [1, 1]} : vector<8x32xf32> to vector<8x4xf32>
    %374 = vector.extract_strided_slice %348 {offsets = [0, 28], sizes = [8, 4], strides = [1, 1]} : vector<8x32xf32> to vector<8x4xf32>
    %375 = vector.shape_cast %367 : vector<8x4xf32> to vector<1x8x4xf32>
    %376 = vector.shape_cast %368 : vector<8x4xf32> to vector<1x8x4xf32>
    %377 = vector.shape_cast %369 : vector<8x4xf32> to vector<1x8x4xf32>
    %378 = vector.shape_cast %370 : vector<8x4xf32> to vector<1x8x4xf32>
    %379 = vector.shape_cast %371 : vector<8x4xf32> to vector<1x8x4xf32>
    %380 = vector.shape_cast %372 : vector<8x4xf32> to vector<1x8x4xf32>
    %381 = vector.shape_cast %373 : vector<8x4xf32> to vector<1x8x4xf32>
    %382 = vector.shape_cast %374 : vector<8x4xf32> to vector<1x8x4xf32>
    %383 = tpu.concatenate %375, %376, %377, %378, %379, %380, %381, %382 in 0 : vector<1x8x4xf32>, vector<1x8x4xf32>, vector<1x8x4xf32>, vector<1x8x4xf32>, vector<1x8x4xf32>, vector<1x8x4xf32>, vector<1x8x4xf32>, vector<1x8x4xf32> -> vector<8x8x4xf32>
    %384 = vector.extract_strided_slice %349 {offsets = [0, 0], sizes = [8, 4], strides = [1, 1]} : vector<8x32xf32> to vector<8x4xf32>
    %385 = vector.extract_strided_slice %349 {offsets = [0, 4], sizes = [8, 4], strides = [1, 1]} : vector<8x32xf32> to vector<8x4xf32>
    %386 = vector.extract_strided_slice %349 {offsets = [0, 8], sizes = [8, 4], strides = [1, 1]} : vector<8x32xf32> to vector<8x4xf32>
    %387 = vector.extract_strided_slice %349 {offsets = [0, 12], sizes = [8, 4], strides = [1, 1]} : vector<8x32xf32> to vector<8x4xf32>
    %388 = vector.extract_strided_slice %349 {offsets = [0, 16], sizes = [8, 4], strides = [1, 1]} : vector<8x32xf32> to vector<8x4xf32>
    %389 = vector.extract_strided_slice %349 {offsets = [0, 20], sizes = [8, 4], strides = [1, 1]} : vector<8x32xf32> to vector<8x4xf32>
    %390 = vector.extract_strided_slice %349 {offsets = [0, 24], sizes = [8, 4], strides = [1, 1]} : vector<8x32xf32> to vector<8x4xf32>
    %391 = vector.extract_strided_slice %349 {offsets = [0, 28], sizes = [8, 4], strides = [1, 1]} : vector<8x32xf32> to vector<8x4xf32>
    %392 = vector.shape_cast %384 : vector<8x4xf32> to vector<1x8x4xf32>
    %393 = vector.shape_cast %385 : vector<8x4xf32> to vector<1x8x4xf32>
    %394 = vector.shape_cast %386 : vector<8x4xf32> to vector<1x8x4xf32>
    %395 = vector.shape_cast %387 : vector<8x4xf32> to vector<1x8x4xf32>
    %396 = vector.shape_cast %388 : vector<8x4xf32> to vector<1x8x4xf32>
    %397 = vector.shape_cast %389 : vector<8x4xf32> to vector<1x8x4xf32>
    %398 = vector.shape_cast %390 : vector<8x4xf32> to vector<1x8x4xf32>
    %399 = vector.shape_cast %391 : vector<8x4xf32> to vector<1x8x4xf32>
    %400 = tpu.concatenate %392, %393, %394, %395, %396, %397, %398, %399 in 0 : vector<1x8x4xf32>, vector<1x8x4xf32>, vector<1x8x4xf32>, vector<1x8x4xf32>, vector<1x8x4xf32>, vector<1x8x4xf32>, vector<1x8x4xf32>, vector<1x8x4xf32> -> vector<8x8x4xf32>
    "tpu.trace_start"() <{level = 10 : i32, message = "hqd,hkd->hqk"}> : () -> ()
    %cst_80 = arith.constant dense<0.000000e+00> : vector<8x8x8xf32>
    %401 = tpu.matmul %366, %383, %cst_80 {dimension_numbers = #tpu.dot_dimension_numbers<[2], [2], [1], [1], [0, 0, 0, 1, 1, 1], [0], [0]>} : vector<8x8x4xf32>, vector<8x8x4xf32>, vector<8x8x8xf32> -> vector<8x8x8xf32>
    "tpu.trace_stop"() : () -> ()
    %402 = vector.shape_cast %1 : vector<1x8xf32> to vector<1x1x8xf32>
    %403 = vector.broadcast %402 : vector<1x1x8xf32> to vector<8x8x8xf32>
    %404 = arith.mulf %401, %403 : vector<8x8x8xf32>
    %cst_81 = arith.constant dense<0xFF800000> : vector<8x8xf32>
    %405 = vector.multi_reduction <maximumf>, %404, %cst_81 [2] : vector<8x8x8xf32> to vector<8x8xf32>
    %406 = vector.shape_cast %405 : vector<8x8xf32> to vector<8x8x1xf32>
    %407 = vector.broadcast %406 : vector<8x8x1xf32> to vector<8x8x8xf32>
    %408 = arith.subf %404, %407 : vector<8x8x8xf32>
    %409 = math.exp %408 : vector<8x8x8xf32>
    %cst_82 = arith.constant dense<0.000000e+00> : vector<8x8xf32>
    %410 = vector.multi_reduction <add>, %409, %cst_82 [2] : vector<8x8x8xf32> to vector<8x8xf32>
    %411 = vector.shape_cast %410 : vector<8x8xf32> to vector<8x8x1xf32>
    %412 = tpu.reciprocal %411 {approx = true} : vector<8x8x1xf32> -> vector<8x8x1xf32>
    %413 = vector.broadcast %412 : vector<8x8x1xf32> to vector<8x8x8xf32>
    %414 = arith.mulf %409, %413 : vector<8x8x8xf32>
    %415 = vector.shape_cast %1 : vector<1x8xf32> to vector<1x1x8xf32>
    %416 = vector.broadcast %415 : vector<1x1x8xf32> to vector<8x8x8xf32>
    %417 = arith.mulf %414, %416 : vector<8x8x8xf32>
    %cst_83 = arith.constant dense<0.000000e+00> : vector<8x8xf32>
    %418 = vector.multi_reduction <add>, %417, %cst_83 [2] : vector<8x8x8xf32> to vector<8x8xf32>
    %419 = vector.shape_cast %418 : vector<8x8xf32> to vector<8x8x1xf32>
    %cst_84 = arith.constant 9.99999982E-14 : f32
    %420 = vector.broadcast %cst_84 : f32 to vector<8x8x1xf32>
    %421 = arith.addf %419, %420 : vector<8x8x1xf32>
    %422 = vector.broadcast %421 : vector<8x8x1xf32> to vector<8x8x8xf32>
    %423 = arith.divf %417, %422 : vector<8x8x8xf32>
    "tpu.trace_start"() <{level = 10 : i32, message = "hqk,hkd->hqd"}> : () -> ()
    %cst_85 = arith.constant dense<0.000000e+00> : vector<8x8x4xf32>
    %424 = tpu.matmul %423, %400, %cst_85 {dimension_numbers = #tpu.dot_dimension_numbers<[2], [1], [1], [2], [0, 0, 0, 1, 1, 2], [0], [0]>} : vector<8x8x8xf32>, vector<8x8x4xf32>, vector<8x8x4xf32> -> vector<8x8x4xf32>
    "tpu.trace_stop"() : () -> ()
    %425 = vector.extract_strided_slice %424 {offsets = [0, 0, 0], sizes = [1, 8, 4], strides = [1, 1, 1]} : vector<8x8x4xf32> to vector<1x8x4xf32>
    %426 = vector.shape_cast %425 : vector<1x8x4xf32> to vector<8x4xf32>
    %427 = vector.extract_strided_slice %424 {offsets = [1, 0, 0], sizes = [1, 8, 4], strides = [1, 1, 1]} : vector<8x8x4xf32> to vector<1x8x4xf32>
    %428 = vector.shape_cast %427 : vector<1x8x4xf32> to vector<8x4xf32>
    %429 = vector.extract_strided_slice %424 {offsets = [2, 0, 0], sizes = [1, 8, 4], strides = [1, 1, 1]} : vector<8x8x4xf32> to vector<1x8x4xf32>
    %430 = vector.shape_cast %429 : vector<1x8x4xf32> to vector<8x4xf32>
    %431 = vector.extract_strided_slice %424 {offsets = [3, 0, 0], sizes = [1, 8, 4], strides = [1, 1, 1]} : vector<8x8x4xf32> to vector<1x8x4xf32>
    %432 = vector.shape_cast %431 : vector<1x8x4xf32> to vector<8x4xf32>
    %433 = vector.extract_strided_slice %424 {offsets = [4, 0, 0], sizes = [1, 8, 4], strides = [1, 1, 1]} : vector<8x8x4xf32> to vector<1x8x4xf32>
    %434 = vector.shape_cast %433 : vector<1x8x4xf32> to vector<8x4xf32>
    %435 = vector.extract_strided_slice %424 {offsets = [5, 0, 0], sizes = [1, 8, 4], strides = [1, 1, 1]} : vector<8x8x4xf32> to vector<1x8x4xf32>
    %436 = vector.shape_cast %435 : vector<1x8x4xf32> to vector<8x4xf32>
    %437 = vector.extract_strided_slice %424 {offsets = [6, 0, 0], sizes = [1, 8, 4], strides = [1, 1, 1]} : vector<8x8x4xf32> to vector<1x8x4xf32>
    %438 = vector.shape_cast %437 : vector<1x8x4xf32> to vector<8x4xf32>
    %439 = vector.extract_strided_slice %424 {offsets = [7, 0, 0], sizes = [1, 8, 4], strides = [1, 1, 1]} : vector<8x8x4xf32> to vector<1x8x4xf32>
    %440 = vector.shape_cast %439 : vector<1x8x4xf32> to vector<8x4xf32>
    %441 = tpu.concatenate %426, %428, %430, %432, %434, %436, %438, %440 in 1 : vector<8x4xf32>, vector<8x4xf32>, vector<8x4xf32>, vector<8x4xf32>, vector<8x4xf32>, vector<8x4xf32>, vector<8x4xf32>, vector<8x4xf32> -> vector<8x32xf32>
    %cst_86 = arith.constant dense<0.000000e+00> : vector<8x32xf32>
    %442 = tpu.matmul %441, %4, %cst_86 {dimension_numbers = #tpu.dot_dimension_numbers<[1], [0], [0], [1], [0, 0, 1, 1], [], []>} : vector<8x32xf32>, vector<32x32xf32>, vector<8x32xf32> -> vector<8x32xf32>
    %443 = vector.broadcast %5 : vector<1x32xf32> to vector<8x32xf32>
    %444 = arith.addf %442, %443 : vector<8x32xf32>
    %445 = arith.addf %444, %341 : vector<8x32xf32>
    %cst_87 = arith.constant dense<0.000000e+00> : vector<8xf32>
    %446 = vector.multi_reduction <add>, %445, %cst_87 [1] : vector<8x32xf32> to vector<8xf32>
    %447 = vector.shape_cast %446 : vector<8xf32> to vector<8x1xf32>
    %cst_88 = arith.constant 3.200000e+01 : f32
    %448 = vector.broadcast %cst_88 : f32 to vector<8x1xf32>
    %449 = arith.divf %447, %448 : vector<8x1xf32>
    %450 = vector.broadcast %449 : vector<8x1xf32> to vector<8x32xf32>
    %451 = arith.subf %445, %450 : vector<8x32xf32>
    %452 = arith.mulf %451, %451 : vector<8x32xf32>
    %cst_89 = arith.constant dense<0.000000e+00> : vector<8xf32>
    %453 = vector.multi_reduction <add>, %452, %cst_89 [1] : vector<8x32xf32> to vector<8xf32>
    %454 = vector.shape_cast %453 : vector<8xf32> to vector<8x1xf32>
    %cst_90 = arith.constant 3.100000e+01 : f32
    %455 = vector.broadcast %cst_90 : f32 to vector<8x1xf32>
    %456 = arith.divf %454, %455 : vector<8x1xf32>
    %457 = math.sqrt %456 : vector<8x1xf32>
    %458 = vector.broadcast %449 : vector<8x1xf32> to vector<8x32xf32>
    %459 = arith.subf %445, %458 : vector<8x32xf32>
    %460 = vector.broadcast %6 : vector<1x32xf32> to vector<8x32xf32>
    %461 = arith.mulf %460, %459 : vector<8x32xf32>
    %cst_91 = arith.constant 9.99999997E-7 : f32
    %462 = vector.broadcast %cst_91 : f32 to vector<8x1xf32>
    %463 = arith.addf %457, %462 : vector<8x1xf32>
    %464 = vector.broadcast %463 : vector<8x1xf32> to vector<8x32xf32>
    %465 = arith.divf %461, %464 : vector<8x32xf32>
    %466 = vector.broadcast %7 : vector<1x32xf32> to vector<8x32xf32>
    %467 = arith.addf %465, %466 : vector<8x32xf32>
    %cst_92 = arith.constant dense<0.000000e+00> : vector<8x32xf32>
    %468 = tpu.matmul %467, %8, %cst_92 {dimension_numbers = #tpu.dot_dimension_numbers<[1], [0], [0], [1], [0, 0, 1, 1], [], []>} : vector<8x32xf32>, vector<32x32xf32>, vector<8x32xf32> -> vector<8x32xf32>
    %469 = vector.broadcast %9 : vector<1x32xf32> to vector<8x32xf32>
    %470 = arith.addf %468, %469 : vector<8x32xf32>
    %cst_93 = arith.constant 0.000000e+00 : f32
    %471 = vector.broadcast %cst_93 : f32 to vector<8x32xf32>
    %472 = arith.maximumf %470, %471 : vector<8x32xf32>
    %cst_94 = arith.constant dense<0.000000e+00> : vector<8x32xf32>
    %473 = tpu.matmul %472, %10, %cst_94 {dimension_numbers = #tpu.dot_dimension_numbers<[1], [0], [0], [1], [0, 0, 1, 1], [], []>} : vector<8x32xf32>, vector<32x32xf32>, vector<8x32xf32> -> vector<8x32xf32>
    %474 = vector.broadcast %11 : vector<1x32xf32> to vector<8x32xf32>
    %475 = arith.addf %473, %474 : vector<8x32xf32>
    %476 = arith.addf %475, %467 : vector<8x32xf32>
    %cst_95 = arith.constant dense<0.000000e+00> : vector<8xf32>
    %477 = vector.multi_reduction <add>, %476, %cst_95 [1] : vector<8x32xf32> to vector<8xf32>
    %478 = vector.shape_cast %477 : vector<8xf32> to vector<8x1xf32>
    %cst_96 = arith.constant 3.200000e+01 : f32
    %479 = vector.broadcast %cst_96 : f32 to vector<8x1xf32>
    %480 = arith.divf %478, %479 : vector<8x1xf32>
    %481 = vector.broadcast %480 : vector<8x1xf32> to vector<8x32xf32>
    %482 = arith.subf %476, %481 : vector<8x32xf32>
    %483 = arith.mulf %482, %482 : vector<8x32xf32>
    %cst_97 = arith.constant dense<0.000000e+00> : vector<8xf32>
    %484 = vector.multi_reduction <add>, %483, %cst_97 [1] : vector<8x32xf32> to vector<8xf32>
    %485 = vector.shape_cast %484 : vector<8xf32> to vector<8x1xf32>
    %cst_98 = arith.constant 3.100000e+01 : f32
    %486 = vector.broadcast %cst_98 : f32 to vector<8x1xf32>
    %487 = arith.divf %485, %486 : vector<8x1xf32>
    %488 = math.sqrt %487 : vector<8x1xf32>
    %489 = vector.broadcast %480 : vector<8x1xf32> to vector<8x32xf32>
    %490 = arith.subf %476, %489 : vector<8x32xf32>
    %491 = vector.broadcast %12 : vector<1x32xf32> to vector<8x32xf32>
    %492 = arith.mulf %491, %490 : vector<8x32xf32>
    %cst_99 = arith.constant 9.99999997E-7 : f32
    %493 = vector.broadcast %cst_99 : f32 to vector<8x1xf32>
    %494 = arith.addf %488, %493 : vector<8x1xf32>
    %495 = vector.broadcast %494 : vector<8x1xf32> to vector<8x32xf32>
    %496 = arith.divf %492, %495 : vector<8x32xf32>
    %497 = vector.broadcast %13 : vector<1x32xf32> to vector<8x32xf32>
    %498 = arith.addf %496, %497 : vector<8x32xf32>
    %c3_i32 = arith.constant 3 : i32
    %c0_100 = arith.constant 0 : index
    %c0_101 = arith.constant 0 : index
    %c0_102 = arith.constant 0 : index
    %499 = vector.load %arg16[%c0_100, %c0_101, %c0_102] : memref<1x8x32xf32, #tpu.memory_space<vmem>>, vector<1x8x32xf32>
    %500 = vector.shape_cast %499 : vector<1x8x32xf32> to vector<8x32xf32>
    %501 = vector.shape_cast %498 : vector<8x32xf32> to vector<1x8x32xf32>
    tpu.vector_store %arg16[%c0_100, %c0_101, %c0_102], %501 {strides = array<i32>} : memref<1x8x32xf32, #tpu.memory_space<vmem>>, vector<1x8x32xf32>,
    return
  }
  func.func @transform_0(%arg0: i32) -> (i32, i32, i32) {
    %c0_i32 = arith.constant 0 : i32
    %c0_i32_0 = arith.constant 0 : i32
    %c0_i32_1 = arith.constant 0 : i32
    %c0_i32_2 = arith.constant 0 : i32
    return %c0_i32, %c0_i32_0, %c0_i32_1 : i32, i32, i32
  }
  func.func @transform_1(%arg0: i32) -> (i32, i32, i32) {
    %c0_i32 = arith.constant 0 : i32
    %c0_i32_0 = arith.constant 0 : i32
    %c0_i32_1 = arith.constant 0 : i32
    return %arg0, %c0_i32, %c0_i32_0 : i32, i32, i32
  }
  func.func @transform_2(%arg0: i32) -> (i32, i32, i32) {
    %c0_i32 = arith.constant 0 : i32
    %c0_i32_0 = arith.constant 0 : i32
    %c0_i32_1 = arith.constant 0 : i32
    return %arg0, %c0_i32, %c0_i32_0 : i32, i32, i32
  }
  func.func @transform_3(%arg0: i32) -> (i32, i32) {
    %c0_i32 = arith.constant 0 : i32
    %c0_i32_0 = arith.constant 0 : i32
    %c0_i32_1 = arith.constant 0 : i32
    return %c0_i32, %c0_i32_0 : i32, i32
  }
  func.func @transform_4(%arg0: i32) -> (i32, i32) {
    %c0_i32 = arith.constant 0 : i32
    %c0_i32_0 = arith.constant 0 : i32
    %c0_i32_1 = arith.constant 0 : i32
    return %c0_i32, %c0_i32_0 : i32, i32
  }
  func.func @transform_5(%arg0: i32) -> (i32, i32) {
    %c0_i32 = arith.constant 0 : i32
    %c0_i32_0 = arith.constant 0 : i32
    %c0_i32_1 = arith.constant 0 : i32
    return %c0_i32, %c0_i32_0 : i32, i32
  }
  func.func @transform_6(%arg0: i32) -> (i32, i32) {
    %c0_i32 = arith.constant 0 : i32
    %c0_i32_0 = arith.constant 0 : i32
    %c0_i32_1 = arith.constant 0 : i32
    return %c0_i32, %c0_i32_0 : i32, i32
  }
  func.func @transform_7(%arg0: i32) -> (i32, i32) {
    %c0_i32 = arith.constant 0 : i32
    %c0_i32_0 = arith.constant 0 : i32
    %c0_i32_1 = arith.constant 0 : i32
    return %c0_i32, %c0_i32_0 : i32, i32
  }
  func.func @transform_8(%arg0: i32) -> (i32, i32) {
    %c0_i32 = arith.constant 0 : i32
    %c0_i32_0 = arith.constant 0 : i32
    %c0_i32_1 = arith.constant 0 : i32
    return %c0_i32, %c0_i32_0 : i32, i32
  }
  func.func @transform_9(%arg0: i32) -> (i32, i32) {
    %c0_i32 = arith.constant 0 : i32
    %c0_i32_0 = arith.constant 0 : i32
    %c0_i32_1 = arith.constant 0 : i32
    return %c0_i32, %c0_i32_0 : i32, i32
  }
  func.func @transform_10(%arg0: i32) -> (i32, i32) {
    %c0_i32 = arith.constant 0 : i32
    %c0_i32_0 = arith.constant 0 : i32
    %c0_i32_1 = arith.constant 0 : i32
    return %c0_i32, %c0_i32_0 : i32, i32
  }
  func.func @transform_11(%arg0: i32) -> (i32, i32) {
    %c0_i32 = arith.constant 0 : i32
    %c0_i32_0 = arith.constant 0 : i32
    %c0_i32_1 = arith.constant 0 : i32
    return %c0_i32, %c0_i32_0 : i32, i32
  }
  func.func @transform_12(%arg0: i32) -> (i32, i32) {
    %c0_i32 = arith.constant 0 : i32
    %c0_i32_0 = arith.constant 0 : i32
    %c0_i32_1 = arith.constant 0 : i32
    return %c0_i32, %c0_i32_0 : i32, i32
  }
  func.func @transform_13(%arg0: i32) -> (i32, i32) {
    %c0_i32 = arith.constant 0 : i32
    %c0_i32_0 = arith.constant 0 : i32
    %c0_i32_1 = arith.constant 0 : i32
    return %c0_i32, %c0_i32_0 : i32, i32
  }
  func.func @transform_14(%arg0: i32) -> (i32, i32) {
    %c0_i32 = arith.constant 0 : i32
    %c0_i32_0 = arith.constant 0 : i32
    %c0_i32_1 = arith.constant 0 : i32
    return %c0_i32, %c0_i32_0 : i32, i32
  }
  func.func @transform_15(%arg0: i32) -> (i32, i32, i32) {
    %c0_i32 = arith.constant 0 : i32
    %c0_i32_0 = arith.constant 0 : i32
    %c0_i32_1 = arith.constant 0 : i32
    return %arg0, %c0_i32, %c0_i32_0 : i32, i32, i32
  }
}

</mosaic_0001>

<bundles_post_ra>
// kernel: ut_encoder.1
= control target key start
LH: loop header
LB: loop body
LE: loop exit
PB: predicated region body
PF: predicated region fallthrough
CT: control target
= control target key end

     0   :  { %s8210_s0 = inlined_call_operand.vmem [shape: f32[3,8,32], index: 0, kind: input, shape index: {}]   ;;  %s8211_s1 = inlined_call_operand.vmem [shape: f32[2,8,32], index: 1, kind: input, shape index: {}]   ;;  %s8212_s2 = inlined_call_operand.vmem [shape: f32[2,1,8], index: 2, kind: input, shape index: {}]   ;;  %s8213_s3 = inlined_call_operand.vmem [shape: f32[32,96], index: 3, kind: input, shape index: {}]   ;;  %s8214_s4 = inlined_call_operand.vmem [shape: f32[1,96], index: 4, kind: input, shape index: {}]   ;;  %s8215_s5 = inlined_call_operand.vmem [shape: f32[32,32], index: 5, kind: input, shape index: {}]   ;;  %s8216_s6 = inlined_call_operand.vmem [shape: f32[1,32], index: 6, kind: input, shape index: {}]   ;;  %s8217_s7 = inlined_call_operand.vmem [shape: f32[1,32], index: 7, kind: input, shape index: {}]   ;;  %s8218_s8 = inlined_call_operand.vmem [shape: f32[1,32], index: 8, kind: input, shape index: {}]   ;;  %s8219_s9 = inlined_call_operand.vmem [shape: f32[32,32], index: 9, kind: input, shape index: {}]   ;;  %s8220_s10 = inlined_call_operand.vmem [shape: f32[1,32], index: 10, kind: input, shape index: {}]   ;;  %s8221_s11 = inlined_call_operand.vmem [shape: f32[32,32], index: 11, kind: input, shape index: {}]   ;;  %s8222_s12 = inlined_call_operand.vmem [shape: f32[1,32], index: 12, kind: input, shape index: {}]   ;;  %s8223_s13 = inlined_call_operand.vmem [shape: f32[1,32], index: 13, kind: input, shape index: {}]   ;;  %s8224_s14 = inlined_call_operand.vmem [shape: f32[1,32], index: 14, kind: input, shape index: {}]   ;;  %s8225_s15 = inlined_call_operand.hbm [shape: f32[2,8,32], index: 15, kind: output, shape index: {}]  }
   0x1   :  { %8269 = sst [smem:[#allocation14_spill]] %s8211_s1 }
   0x2   :  { %8270 = sst [smem:[#allocation15_spill]] %s8212_s2 }
   0x3   :  { %8271 = sst [smem:[#allocation16_spill]] %s8220_s10 }
   0x4   :  { %8272 = sst [smem:[#allocation17_spill]] %s8222_s12 }
   0x5   :  { %8273 = sst [smem:[#allocation18_spill]] %s8223_s13 }
   0x6   :  { %8274 = sst [smem:[#allocation19_spill]] %s8224_s14 }
   0x7   :  { %8275 = sst [smem:[#allocation20_spill]] %s8225_s15 }
   0x8   :  { %20 = vsyncpa [#allocation3], 0 }
   0x9   :  { %22 = vsyncpa [#allocation3 + $0x1], 0  ;;  %s7049_s18 = smov 0   ;;  %s7051_s19 = smov 0  }
   0xa   :  { %s7053_s20 = smov 0   ;;  %s7055_s21 = smov 0  }
   0xb LB: > { %8276 = sst [smem:[#allocation5_spill]] %s6936_s18  ;;  %s7070_s22 = sadd.s32 4294967295, %s6948_s21   ;;  %s6948_s21 = sphi %s7055_s21, %s8320_s21   ;;  %s6944_s20 = sphi %s7053_s20, %s8323_s20   ;;  %s6940_s19 = sphi %s7051_s19, %s8322_s19   ;;  %s6936_s18 = sphi %s7049_s18, %s8321_s18  }
   0xc   : > { %8277 = sst [smem:[#allocation6_spill]] %s6940_s19  ;;  %s6004_s23 = sadd.s32 4294967294, %s6948_s21  }
   0xd   : > { %8278 = sst [smem:[#allocation7_spill]] %s6944_s20  ;;  %s7074_s24 = sadd.s32 1, %s6948_s21  }
   0xe   : > { %8279 = sst [smem:[#allocation8_spill]] %s6948_s21  ;;  %s360_s25 = sadd.s32 1, %s6944_s20 }
   0xf   : > { %8280 = sst [smem:[#allocation9_spill]] %s7070_s22  ;;  %s357_s26 = ssub.s32 %s6948_s21, %s7074_s24 }
  0x10   : > { %8281 = sst [smem:[#allocation10_spill]] %s7074_s24  ;;  %p370_p0 = scmp.ne.s32.totalorder %s6944_s20, %s6940_s19 }
  0x11   : > { %p358_p1 = scmp.eq.s32.totalorder %s357_s26, 0  ;;  %p371_p2 = scmp.eq.s32.totalorder %s7070_s22, 1 }
  0x12   : > { %p376_p3 = scmp.ne.s32.totalorder %s6940_s19, %s6936_s18  ;;  %p377_p4 = scmp.eq.s32.totalorder %s6004_s23, 1 }
  0x13   : > { %s7085_s27 = scalar_select %p358_p1, %s6944_s20, %s360_s25  }
  0x14   : > { %p7087_p5 = por %p371_p2, %p370_p0  ;;  %p7091_p6 = por %p377_p4, %p376_p3 }
  0x15   : > { %8282 = sst [smem:[#allocation11_spill]] %s7085_s27  ;;  %p6007_p7 = scmp.ge.s32.totalorder %s6948_s21, 1 }
  0x16   : > { %s8283_s28 = scalar_select %p7087_p5, 1, 0 }
  0x17   : > { %s8285_s29 = scalar_select %p7091_p6, 1, 0 }
  0x18   : > { %8284 = sst [smem:[#allocation12_spill]] %s8283_s28  ;;  %p447_p8 = scmp.lt.s32.totalorder %s6948_s21, 3 }
  0x19   : > { %8286 = sst [smem:[#allocation13_spill]] %s8285_s29 }
  0x1a   : > { %p448_p9 = pnand %p6007_p7, %p447_p8 }
  0x1b   : > { %p497_p10 = scmp.lt.s32.totalorder (!%p448_p9), %s7070_s22, 1  ;;  %s8287_s1 = sld [smem:[#allocation14_spill]] (!%p448_p9) }
  0x1c   : > { %451 = sbr.rel (%p448_p9) target bundleno = 8041 (0x1f69), region = 80  ;;  %s8239_s17 = smov (!%p448_p9), 112  }
  0x1d   : > { %s8259_s23 = smov (!%p448_p9), 120   ;;  %s8233_s26 = smov (!%p448_p9), 104  }
  0x1e   : > { %s8237_s30 = smov (!%p448_p9), 108   ;;  %s8229_s20 = smov (!%p448_p9), 96  }
  0x1f   : > { %s8231_s27 = smov (!%p448_p9), 100   ;;  %s8288_s2 = sld [smem:[#allocation15_spill]] (!%p448_p9) }
  0x20   : > { %s8289_s10 = sld [smem:[#allocation16_spill]] (!%p448_p9)  ;;  %s8303_s29 = smov (!%p448_p9), 8  }
  0x21   : > { %v7100_v0 = vld [vmem:[%s8213_s3 + $0x18] sm:$0xff]  ;;  %v6950_v1 = vmov 0.0   ;;  %v7107_v2 = vld [vmem:[%s8213_s3 + $0x10] sm:$0xff]  ;;  %vm6951_vm0 = vmmov 0   ;;  %s7113_s25 = scalar_select %p497_p10, %s7070_s22, 1  ;;  %v7120_v3 = vld [vmem:[%s8213_s3 + $0x8] sm:$0xff] }
  0x22   : > { %6265 = vmatprep.subr.mxu0 %v6950_v1  ;;  %6273 = vmatprep.mubr.msk.f32.mxu0 %vm6951_vm0, %v6950_v1  ;;  %v530_v4 = vld [vmem:[%s8210_s0] sm:$0xff]  ;;  %vm538_vm1 = vcmask 261120   ;;  %vm645_vm2 = vcmask 31744   ;;  %vm1266_vm3 = vcmask 64512   ;;  %vm2049_vm4 = vcmask 97280   ;;  %s8290_s12 = sld [smem:[#allocation17_spill]] }
  0x23   : > { %6266 = vmatpush3.msra.mxu0 %v7100_v0  ;;  %6276 = vmatprep.subr.mxu1 %v6950_v1  ;;  %s6009_s16 = sshll.u32 %s7113_s25, 3  ;;  %v7133_v5 = vld [vmem:[%s8213_s3] sm:$0xff]  ;;  %vm2051_vm5 = vcmask 130048   ;;  %vm2053_vm6 = vcmask 162816   ;;  %vm2055_vm7 = vcmask 195584   ;;  %vm2057_vm8 = vcmask 228352  }
  0x24   : > { %6267 = vmatprep.subr.mxu0 %v6950_v1  ;;  %6278 = vmatprep.mubr.msk.f32.mxu1 %vm6951_vm0, %v6950_v1  ;;  %s500_s24 = scalar_lea.vmem %s8287_s1, %s6009_s16  ;;  %v7151_v8 = vld [vmem:[%s8214_s4] ss:$0 sm:$0xff]  ;;  %s8245_s16 = smov 124  }
  0x25   : > { %6268 = vmatpush3.msra.mxu0 %v7107_v2  ;;  %v529_v6 = vld [vmem:[%s500_s24] sm:$0xff]  ;;  %s8241_s24 = smov 116   ;;  %s8291_s13 = sld [smem:[#allocation18_spill]] }
  0x26   : > { %6269 = vmatprep.subr.mxu0 %v6950_v1  ;;  %v7140_v7 = vadd.f32 %v530_v4, %v529_v6  ;;  %s8292_s14 = sld [smem:[#allocation19_spill]]  ;;  %s8301_s1 = smov 4  }
  0x27   : > { %6270 = vmatpush3.msra.mxu0 %v7120_v3  ;;  %s8304_s18 = smov 20   ;;  %s8305_s21 = smov 16  }
  0x28   : > { %6271 = vmatprep.subr.mxu0 %v6950_v1  ;;  %s8306_s15 = smov 24   ;;  %s8310_s22 = sld [smem:[#allocation17_spill]] }
  0x29   : > { %6272 = vmatpush3.msra.mxu0 %v7133_v5  ;;  %s6968_s19 = smov [#allocation2]  }
  0x2a   : > { %6274 = vmatmul.mubr.msk.f32.vlgmr.msra.gmra.mxu0 %vm538_vm1, %v7140_v7  ;;  %6296 = vmatprep.subr.mxu0 %v6950_v1 }
  0x2b   : > { %6298 = vmatprep.mubr.msk.f32.mxu0 %vm6951_vm0, %v6950_v1 }
  0xea   : > { %v608_v9 = vpop.f32.mrf.mxu0 }
  0xeb   : > { %v7154_v10 = vadd.f32 %v7151_v8, %v608_v9 }
  0xec   : > { %v6275_v11 = vpop.f32.mrf.mxu0 }
  0xed   : > { %633 = vrot.lane.b32.xlu1 %v7154_v10, %s8241_s24  ;;  %629 = vrot.lane.b32.xlu0 %v7154_v10, %s8245_s16  ;;  %v612_v12 = vmul.f32 0.5, %v7154_v10 }
  0xf1   : > { %635 = vrot.lane.b32.xlu1 %v7154_v10, %s8239_s17  ;;  %631 = vrot.lane.b32.xlu0 %v7154_v10, %s8259_s23 }
  0xf5   : > { %639 = vrot.lane.b32.xlu1 %v7154_v10, %s8233_s26  ;;  %637 = vrot.lane.b32.xlu0 %v7154_v10, %s8237_s30 }
  0xf9   : > { %643 = vrot.lane.b32.xlu1 %v7154_v10, %s8229_s20  ;;  %641 = vrot.lane.b32.xlu0 %v7154_v10, %s8231_s27 }
  0xfd   : > { %620 = vrot.lane.b32.xlu0 %v612_v12, %s8239_s17  ;;  %614 = vrot.lane.b32.xlu1 %v612_v12, %s8245_s16  ;;  %s8247_s16 = smov 28   ;;  %s8298_s17 = smov 100  }
 0x101   : > { %616 = vrot.lane.b32.xlu1 %v612_v12, %s8259_s23 }
 0x105   : > { %618 = vrot.lane.b32.xlu1 %v612_v12, %s8241_s24  ;;  %s8249_s24 = smov 24  }
 0x109   : > { %622 = vrot.lane.b32.xlu1 %v612_v12, %s8237_s30  ;;  %s8257_s30 = smov 12  }
 0x15f   : > { %v7178_v13 = vpop.permute.xlu1 %633  ;;  %v7180_v14 = vpop.permute.xlu0 %629 }
 0x160   : > { %720 = vrot.lane.b32.xlu0 %v7180_v14, %s8229_s20 }
 0x163   : > { %v7184_v15 = vpop.permute.xlu1 %635  ;;  %v7186_v16 = vpop.permute.xlu0 %631 }
 0x164   : > { %796 = vrot.lane.b32.xlu0 %v7186_v16, %s8229_s20 }
 0x167   : > { %v7190_v17 = vpop.permute.xlu1 %639  ;;  %v7192_v18 = vpop.permute.xlu0 %637 }
 0x168   : > { %872 = vrot.lane.b32.xlu0 %v7178_v13, %s8229_s20  ;;  %1024 = vrot.lane.b32.xlu1 %v7192_v18, %s8229_s20 }
 0x16b   : > { %v644_v19 = vpop.permute.xlu1 %643  ;;  %v7198_v20 = vpop.permute.xlu0 %641 }
 0x16c   : > { %6277 = vmatpush3.xpose.msk.msra.mxu1 %vm645_vm2, %v644_v19  ;;  %948 = vrot.lane.b32.xlu0 %v7184_v15, %s8229_s20 }
 0x16d   : > { %1176 = vrot.lane.b32.xlu1 %v7198_v20, %s8229_s20  ;;  %6281 = vmatprep.subr.mxu1 %v6950_v1 }
 0x16f   : > { %6279 = vmatmul.mubr.msk.f32.vlgmr.msra.gmra.mxu1 %vm645_vm2, %v612_v12  ;;  %v615_v21 = vpop.permute.xlu1 %614  ;;  %v621_v23 = vpop.permute.xlu0 %620 }
 0x170   : > { %1100 = vrot.lane.b32.xlu0 %v7190_v17, %s8229_s20  ;;  %6283 = vmatprep.mubr.msk.f32.mxu1 %vm6951_vm0, %v6950_v1  ;;  %s8243_s20 = smov 4  }
 0x171   : > { %626 = vrot.lane.b32.xlu1 %v612_v12, %s8231_s27  ;;  %s8251_s27 = smov 16  }
 0x173   : > { %v617_v22 = vpop.permute.xlu1 %616 }
 0x174   : > { %624 = vrot.lane.b32.xlu0 %v612_v12, %s8233_s26  ;;  %s7252_s26 = scalar_lea.vmem %s8288_s2, %s7113_s25  ;;  %s8235_s25 = smov 64  }
 0x175   : > { %v7255_v35 = vld [vmem:[%s7252_s26] ss:$0 sm:$0xff]  ;;  %s8302_s2 = smov 12  }
 0x177   : > { %v619_v24 = vpop.permute.xlu1 %618 }
 0x17b   : > { %v623_v26 = vpop.permute.xlu1 %622 }
 0x1d2   : > { %v721_v25 = vpop.permute.xlu0 %720 }
 0x1d3   : > { %6282 = vmatpush3.xpose.msk.msra.mxu1 %vm645_vm2, %v721_v25 }
 0x1d4   : > { %6286 = vmatprep.subr.mxu1 %v6950_v1 }
 0x1d6   : > { %v797_v27 = vpop.permute.xlu0 %796  ;;  %6284 = vmatmul.mubr.msk.f32.vlgmr.msra.gmra.mxu1 %vm645_vm2, %v615_v21 }
 0x1d7   : > { %6287 = vmatpush3.xpose.msk.msra.mxu1 %vm645_vm2, %v797_v27  ;;  %6288 = vmatprep.mubr.msk.f32.mxu1 %vm6951_vm0, %v6950_v1 }
 0x1d8   : > { %6291 = vmatprep.subr.mxu1 %v6950_v1 }
 0x1da   : > { %v873_v28 = vpop.permute.xlu0 %872  ;;  %v1025_v29 = vpop.permute.xlu1 %1024  ;;  %6289 = vmatmul.mubr.msk.f32.vlgmr.msra.gmra.mxu1 %vm645_vm2, %v617_v22 }
 0x1db   : > { %6292 = vmatpush3.xpose.msk.msra.mxu1 %vm645_vm2, %v873_v28  ;;  %6293 = vmatprep.mubr.msk.f32.mxu1 %vm6951_vm0, %v6950_v1 }
 0x1dc   : > { %6301 = vmatprep.subr.mxu1 %v6950_v1 }
 0x1de   : > { %v949_v30 = vpop.permute.xlu0 %948  ;;  %6294 = vmatmul.mubr.msk.f32.vlgmr.msra.gmra.mxu1 %vm645_vm2, %v619_v24 }
 0x1df   : > { %v1177_v31 = vpop.permute.xlu1 %1176  ;;  %6297 = vmatpush3.xpose.msk.msra.mxu0 %vm645_vm2, %v949_v30  ;;  %6302 = vmatpush3.xpose.msk.msra.mxu1 %vm645_vm2, %v1025_v29 }
 0x1e0   : > { %6303 = vmatprep.mubr.msk.f32.mxu1 %vm6951_vm0, %v6950_v1  ;;  %6306 = vmatprep.subr.mxu0 %v6950_v1 }
 0x1e1   : > { %6311 = vmatprep.subr.mxu1 %v6950_v1 }
 0x1e2   : > { %6299 = vmatmul.mubr.msk.f32.vlgmr.msra.gmra.mxu0 %vm645_vm2, %v621_v23  ;;  %v1101_v32 = vpop.permute.xlu0 %1100  ;;  %6304 = vmatmul.mubr.msk.f32.vlgmr.msra.gmra.mxu1 %vm645_vm2, %v623_v26 }
 0x1e3   : > { %6307 = vmatpush3.xpose.msk.msra.mxu0 %vm645_vm2, %v1101_v32  ;;  %6312 = vmatpush3.xpose.msk.msra.mxu1 %vm645_vm2, %v1177_v31  ;;  %v627_v33 = vpop.permute.xlu1 %626 }
 0x1e4   : > { %6313 = vmatprep.mubr.msk.f32.mxu1 %vm6951_vm0, %v6950_v1  ;;  %6308 = vmatprep.mubr.msk.f32.mxu0 %vm6951_vm0, %v6950_v1 }
 0x1e5   : > { %6321 = vmatprep.subr.mxu1 %v6950_v1  ;;  %6316 = vmatprep.subr.mxu0 %v6950_v1 }
 0x1e6   : > { %v625_v34 = vpop.permute.xlu0 %624  ;;  %6314 = vmatmul.mubr.msk.f32.vlgmr.msra.gmra.mxu1 %vm645_vm2, %v627_v33 }
 0x1e7   : > { %6309 = vmatmul.mubr.msk.f32.vlgmr.msra.gmra.mxu0 %vm645_vm2, %v625_v34  ;;  %6323 = vmatprep.mubr.msk.f32.mxu1 %vm6951_vm0, %v6950_v1 }
 0x1e8   : > { %6318 = vmatprep.mubr.msk.f32.mxu0 %vm6951_vm0, %v6950_v1 }
 0x22f   : > { %v716_v36 = vpop.f32.mrf.mxu1 }
 0x230   : > { %v1258_v37 = vmul.f32 %v7255_v35, %v716_v36 }
 0x231   : > { %v6280_v38 = vpop.f32.mrf.mxu1 }
 0x232   : > { %v1267_v39 = vsel %vm1266_vm3, %v1258_v37, -inf }
 0x233   : > { %1268 = vmax.xlane.f32.xlu0 %v1267_v39 }
 0x296   : > { %v792_v40 = vpop.f32.mrf.mxu1 }
 0x297   : > { %v1259_v41 = vmul.f32 %v7255_v35, %v792_v40 }
 0x298   : > { %v6285_v42 = vpop.f32.mrf.mxu1 }
 0x299   : > { %v1270_v43 = vsel %vm1266_vm3, %v1259_v41, -inf }
 0x29a   : > { %1271 = vmax.xlane.f32.xlu1 %v1270_v43  ;;  %v868_v44 = vpop.f32.mrf.mxu1 }
 0x29b   : > { %v1260_v45 = vmul.f32 %v7255_v35, %v868_v44 }
 0x29c   : > { %v6290_v46 = vpop.f32.mrf.mxu1 }
 0x29d   : > { %v1273_v47 = vsel %vm1266_vm3, %v1260_v45, -inf }
 0x29e   : > { %1274 = vmax.xlane.f32.xlu0 %v1273_v47  ;;  %v944_v48 = vpop.f32.mrf.mxu1 }
 0x29f   : > { %v1261_v49 = vmul.f32 %v7255_v35, %v944_v48 }
 0x2a0   : > { %v6295_v50 = vpop.f32.mrf.mxu1 }
 0x2a1   : > { %v1276_v51 = vsel %vm1266_vm3, %v1261_v49, -inf }
 0x2a2   : > { %1277 = vmax.xlane.f32.xlu0 %v1276_v51  ;;  %v1020_v52 = vpop.f32.mrf.mxu0  ;;  %v1096_v53 = vpop.f32.mrf.mxu1 }
 0x2a3   : > { %v1262_v54 = vmul.f32 %v7255_v35, %v1020_v52  ;;  %v1263_v55 = vmul.f32 %v7255_v35, %v1096_v53 }
 0x2a4   : > { %v6300_v56 = vpop.f32.mrf.mxu0  ;;  %v6305_v57 = vpop.f32.mrf.mxu1 }
 0x2a5   : > { %v1282_v58 = vsel %vm1266_vm3, %v1263_v55, -inf  ;;  %v1279_v59 = vsel %vm1266_vm3, %v1262_v54, -inf }
 0x2a6   : > { %1283 = vmax.xlane.f32.xlu0 %v1282_v58  ;;  %v1248_v60 = vpop.f32.mrf.mxu1  ;;  %1280 = vmax.xlane.f32.xlu1 %v1279_v59 }
 0x2a7   : > { %v1265_v61 = vmul.f32 %v7255_v35, %v1248_v60  ;;  %v1172_v62 = vpop.f32.mrf.mxu0 }
 0x2a8   : > { %v1264_v63 = vmul.f32 %v7255_v35, %v1172_v62  ;;  %v6315_v4 = vpop.f32.mrf.mxu1 }
 0x2a9   : > { %v6310_v6 = vpop.f32.mrf.mxu0  ;;  %v1288_v9 = vsel %vm1266_vm3, %v1265_v61, -inf }
 0x2aa   : > { %1289 = vmax.xlane.f32.xlu0 %v1288_v9  ;;  %v1285_v11 = vsel %vm1266_vm3, %v1264_v63, -inf }
 0x2ab   : > { %1286 = vmax.xlane.f32.xlu1 %v1285_v11 }
 0x2bc   : > { %v1269_v12 = vpop.xlane.xlu0 %1268 }
 0x2bd   : > { %v1291_v19 = vsub.f32 %v1258_v37, %v1269_v12 }
 0x2bf   : > { %v1299_v21 = vmul.f32 1.442695, %v1291_v19 }
 0x2c1   : > { %6694 = vpow2.f32 %v1299_v21 }
 0x2ce   : > { %v6695_v22 = vpop.eup %6694 }
 0x2cf   : > { %v1315_v23 = vsel %vm1266_vm3, %v6695_v22, 0.0 }
 0x2d0   : > { %1316 = vadd.xlane.f32.xlu1 %v1315_v23 }
 0x323   : > { %v1272_v24 = vpop.xlane.xlu1 %1271 }
 0x324   : > { %v1292_v25 = vsub.f32 %v1259_v41, %v1272_v24 }
 0x326   : > { %v1301_v26 = vmul.f32 1.442695, %v1292_v25 }
 0x327   : > { %v1275_v27 = vpop.xlane.xlu0 %1274 }
 0x328   : > { %6696 = vpow2.f32 %v1301_v26  ;;  %v1293_v28 = vsub.f32 %v1260_v45, %v1275_v27 }
 0x32a   : > { %v1303_v29 = vmul.f32 1.442695, %v1293_v28 }
 0x32b   : > { %v1278_v30 = vpop.xlane.xlu0 %1277 }
 0x32c   : > { %6698 = vpow2.f32 %v1303_v29  ;;  %v1294_v31 = vsub.f32 %v1261_v49, %v1278_v30 }
 0x32e   : > { %v1305_v32 = vmul.f32 1.442695, %v1294_v31 }
 0x32f   : > { %v1284_v33 = vpop.xlane.xlu0 %1283  ;;  %v1281_v34 = vpop.xlane.xlu1 %1280 }
 0x330   : > { %6700 = vpow2.f32 %v1305_v32  ;;  %v1296_v36 = vsub.f32 %v1263_v55, %v1284_v33  ;;  %v1295_v37 = vsub.f32 %v1262_v54, %v1281_v34 }
 0x332   : > { %v1309_v38 = vmul.f32 1.442695, %v1296_v36  ;;  %v1307_v39 = vmul.f32 1.442695, %v1295_v37 }
 0x333   : > { %v1290_v40 = vpop.xlane.xlu0 %1289 }
 0x334   : > { %6702 = vpow2.f32 %v1309_v38  ;;  %v1298_v42 = vsub.f32 %v1265_v61, %v1290_v40  ;;  %v1287_v41 = vpop.xlane.xlu1 %1286 }
 0x335   : > { %v6697_v43 = vpop.eup %6696  ;;  %6704 = vpow2.f32 %v1307_v39  ;;  %v1297_v44 = vsub.f32 %v1264_v63, %v1287_v41 }
 0x336   : > { %v1313_v45 = vmul.f32 1.442695, %v1298_v42  ;;  %v1318_v46 = vsel %vm1266_vm3, %v6697_v43, 0.0 }
 0x337   : > { %v1311_v47 = vmul.f32 1.442695, %v1297_v44  ;;  %1319 = vadd.xlane.f32.xlu0 %v1318_v46 }
 0x338   : > { %6706 = vpow2.f32 %v1313_v45 }
 0x339   : > { %v7275_v48 = vpop.eup %6698  ;;  %6708 = vpow2.f32 %v1311_v47 }
 0x33a   : > { %v1321_v49 = vsel %vm1266_vm3, %v7275_v48, 0.0 }
 0x33b   : > { %1322 = vadd.xlane.f32.xlu1 %v1321_v49 }
 0x33d   : > { %v6701_v50 = vpop.eup %6700 }
 0x33e   : > { %v1324_v51 = vsel %vm1266_vm3, %v6701_v50, 0.0 }
 0x33f   : > { %1325 = vadd.xlane.f32.xlu0 %v1324_v51 }
 0x341   : > { %v6703_v52 = vpop.eup %6702 }
 0x342   : > { %v6705_v53 = vpop.eup %6704  ;;  %v1330_v54 = vsel %vm1266_vm3, %v6703_v52, 0.0 }
 0x343   : > { %1331 = vadd.xlane.f32.xlu0 %v1330_v54  ;;  %v1327_v55 = vsel %vm1266_vm3, %v6705_v53, 0.0 }
 0x344   : > { %1328 = vadd.xlane.f32.xlu1 %v1327_v55 }
 0x345   : > { %v6707_v56 = vpop.eup %6706 }
 0x346   : > { %v7282_v57 = vpop.eup %6708  ;;  %v1336_v58 = vsel %vm1266_vm3, %v6707_v56, 0.0 }
 0x347   : > { %1337 = vadd.xlane.f32.xlu0 %v1336_v58  ;;  %v1333_v59 = vsel %vm1266_vm3, %v7282_v57, 0.0 }
 0x348   : > { %1334 = vadd.xlane.f32.xlu1 %v1333_v59 }
 0x359   : > { %1411 = vrot.lane.b32.xlu1 %v7154_v10, %s8235_s25  ;;  %v1317_v60 = vpop.xlane.xlu1 %1316 }
 0x35a   : > { %6710 = vrcp.f32 %v1317_v60 }
 0x35d   : > { %1487 = vrot.lane.b32.xlu0 %v7180_v14, %s8235_s25  ;;  %1563 = vrot.lane.b32.xlu1 %v7186_v16, %s8235_s25 }
 0x361   : > { %1715 = vrot.lane.b32.xlu0 %v7184_v15, %s8235_s25  ;;  %1639 = vrot.lane.b32.xlu1 %v7178_v13, %s8235_s25 }
 0x365   : > { %1791 = vrot.lane.b32.xlu1 %v7192_v18, %s8235_s25 }
 0x367   : > { %v6711_v61 = vpop.eup %6710 }
 0x368   : > { %v1347_v62 = vmul.f32 %v6711_v61, %v6695_v22 }
 0x36a   : > { %v7300_v10 = vmul.f32 %v7255_v35, %v1347_v62 }
 0x36c   : > { %v1363_v14 = vsel %vm1266_vm3, %v7300_v10, 0.0 }
 0x389   : > { %1364 = vadd.xlane.f32.xlu1 %v1363_v14 }
 0x3c0   : > { %v1320_v16 = vpop.xlane.xlu0 %1319 }
 0x3c1   : > { %6712 = vrcp.f32 %v1320_v16 }
 0x3c4   : > { %v1323_v63 = vpop.xlane.xlu1 %1322 }
 0x3c8   : > { %v1326_v15 = vpop.xlane.xlu0 %1325 }
 0x3c9   : > { %6714 = vrcp.f32 %v1326_v15 }
 0x3ca   : > { %6716 = vrcp.f32 %v1323_v63 }
 0x3cc   : > { %v1332_v13 = vpop.xlane.xlu0 %1331 }
 0x3cd   : > { %6718 = vrcp.f32 %v1332_v13  ;;  %v1329_v18 = vpop.xlane.xlu1 %1328 }
 0x3ce   : > { %v6713_v4 = vpop.eup %6712  ;;  %6720 = vrcp.f32 %v1329_v18 }
 0x3cf   : > { %v1348_v6 = vmul.f32 %v6713_v4, %v6697_v43 }
 0x3d0   : > { %v1338_v9 = vpop.xlane.xlu0 %1337 }
 0x3d1   : > { %6722 = vrcp.f32 %v1338_v9  ;;  %v1335_v11 = vpop.xlane.xlu1 %1334  ;;  %v7305_v12 = vmul.f32 %v7255_v35, %v1348_v6 }
 0x3d2   : > { %6724 = vrcp.f32 %v1335_v11 }
 0x3d3   : > { %v1366_v19 = vsel %vm1266_vm3, %v7305_v12, 0.0 }
 0x3d4   : > { %1367 = vadd.xlane.f32.xlu0 %v1366_v19  ;;  %v1488_v21 = vpop.permute.xlu0 %1487 }
 0x3d5   : > { %6322 = vmatpush3.msra.mxu1 %v1488_v21  ;;  %v1412_v22 = vpop.permute.xlu1 %1411 }
 0x3d6   : > { %v6715_v23 = vpop.eup %6714  ;;  %6317 = vmatpush3.msra.mxu0 %v1412_v22  ;;  %6331 = vmatprep.subr.mxu1 %v6950_v1 }
 0x3d7   : > { %v1350_v24 = vmul.f32 %v6715_v23, %v6701_v50  ;;  %6326 = vmatprep.subr.mxu0 %v6950_v1  ;;  %v6717_v25 = vpop.eup %6716 }
 0x3d8   : > { %v1349_v32 = vmul.f32 %v6717_v25, %v7275_v48 }
 0x3d9   : > { %v7312_v26 = vmul.f32 %v7255_v35, %v1350_v24  ;;  %v1564_v48 = vpop.permute.xlu1 %1563 }
 0x3da   : > { %v6719_v27 = vpop.eup %6718  ;;  %v7328_v42 = vmul.f32 %v7255_v35, %v1349_v32 }
 0x3db   : > { %v6721_v28 = vpop.eup %6720  ;;  %v1372_v29 = vsel %vm1266_vm3, %v7312_v26, 0.0  ;;  %v1352_v30 = vmul.f32 %v6719_v27, %v6703_v52 }
 0x3dc   : > { %1373 = vadd.xlane.f32.xlu0 %v1372_v29  ;;  %v1351_v31 = vmul.f32 %v6721_v28, %v6705_v53  ;;  %v1369_v45 = vsel %vm1266_vm3, %v7328_v42, 0.0 }
 0x3dd   : > { %v7318_v33 = vmul.f32 %v7255_v35, %v1352_v30  ;;  %v1640_v49 = vpop.permute.xlu1 %1639 }
 0x3de   : > { %v6723_v34 = vpop.eup %6722  ;;  %v7321_v36 = vmul.f32 %v7255_v35, %v1351_v31 }
 0x3df   : > { %v6725_v37 = vpop.eup %6724  ;;  %v1378_v38 = vsel %vm1266_vm3, %v7318_v33, 0.0  ;;  %v1354_v39 = vmul.f32 %v6723_v34, %v6707_v56 }
 0x3e0   : > { %1379 = vadd.xlane.f32.xlu0 %v1378_v38  ;;  %v1375_v40 = vsel %vm1266_vm3, %v7321_v36, 0.0  ;;  %v1353_v41 = vmul.f32 %v6725_v37, %v7282_v57  ;;  %v7402_v37 = vld [vmem:[%s8215_s5 + $0x8] sm:$0xff] }
 0x3e1   : > { %1376 = vadd.xlane.f32.xlu1 %v1375_v40  ;;  %v7332_v43 = vmul.f32 %v7255_v35, %v1354_v39  ;;  %v1792_v50 = vpop.permute.xlu1 %1791 }
 0x3e2   : > { %v7339_v46 = vmul.f32 %v7255_v35, %v1353_v41 }
 0x3e3   : > { %v1384_v44 = vsel %vm1266_vm3, %v7332_v43, 0.0 }
 0x3e4   : > { %1385 = vadd.xlane.f32.xlu0 %v1384_v44  ;;  %v1381_v47 = vsel %vm1266_vm3, %v7339_v46, 0.0 }
 0x3e5   : > { %1370 = vadd.xlane.f32.xlu1 %v1369_v45 }
 0x3e9   : > { %1382 = vadd.xlane.f32.xlu1 %v1381_v47 }
 0x3fa   : > { %1943 = vrot.lane.b32.xlu1 %v7198_v20, %s8235_s25  ;;  %1867 = vrot.lane.b32.xlu0 %v7190_v17, %s8235_s25  ;;  %v1716_v20 = vpop.permute.xlu0 %1715  ;;  %s8253_s25 = smov 20  }
 0x412   : > { %v1365_v51 = vpop.xlane.xlu1 %1364 }
 0x413   : > { %v1387_v52 = vadd.f32 1e-13, %v1365_v51 }
 0x415   : > { %6726 = vrcp.f32 %v1387_v52 }
 0x422   : > { %v6727_v53 = vpop.eup %6726 }
 0x423   : > { %v1396_v54 = vmul.f32 %v6727_v53, %v7300_v10 }
 0x425   : > { %6319 = vmatmul.mubr.msk.f32.vlgmr.msra.gmra.mxu0 %vm1266_vm3, %v1396_v54 }
 0x426   : > { %6327 = vmatpush3.msra.mxu0 %v1564_v48  ;;  %6328 = vmatprep.mubr.msk.f32.mxu0 %vm6951_vm0, %v6950_v1 }
 0x427   : > { %6336 = vmatprep.subr.mxu0 %v6950_v1 }
 0x45d   : > { %v1368_v55 = vpop.xlane.xlu0 %1367 }
 0x45e   : > { %v1388_v17 = vadd.f32 1e-13, %v1368_v55 }
 0x460   : > { %6728 = vrcp.f32 %v1388_v17 }
 0x465   : > { %v1374_v56 = vpop.xlane.xlu0 %1373 }
 0x466   : > { %v1390_v57 = vadd.f32 1e-13, %v1374_v56 }
 0x468   : > { %6730 = vrcp.f32 %v1390_v57 }
 0x469   : > { %v1380_v58 = vpop.xlane.xlu0 %1379 }
 0x46a   : > { %v1392_v59 = vadd.f32 1e-13, %v1380_v58  ;;  %v1377_v60 = vpop.xlane.xlu1 %1376 }
 0x46b   : > { %v1391_v15 = vadd.f32 1e-13, %v1377_v60 }
 0x46c   : > { %6732 = vrcp.f32 %v1392_v59 }
 0x46d   : > { %v6729_v61 = vpop.eup %6728  ;;  %v1386_v62 = vpop.xlane.xlu0 %1385 }
 0x46e   : > { %v1394_v10 = vadd.f32 1e-13, %v1386_v62  ;;  %v1371_v14 = vpop.xlane.xlu1 %1370  ;;  %v1398_v16 = vmul.f32 %v6729_v61, %v7305_v12  ;;  %v7433_v62 = vld [vmem:[%s8216_s6] ss:$0 sm:$0xff] }
 0x46f   : > { %v1389_v63 = vadd.f32 1e-13, %v1371_v14 }
 0x470   : > { %6734 = vrcp.f32 %v1394_v10  ;;  %6324 = vmatmul.mubr.msk.f32.vlgmr.msra.gmra.mxu1 %vm1266_vm3, %v1398_v16 }
 0x471   : > { %6736 = vrcp.f32 %v1389_v63  ;;  %6332 = vmatpush3.msra.mxu1 %v1640_v49  ;;  %6333 = vmatprep.mubr.msk.f32.mxu1 %vm6951_vm0, %v6950_v1  ;;  %v1868_v27 = vpop.permute.xlu0 %1867 }
 0x472   : > { %v1383_v13 = vpop.xlane.xlu1 %1382  ;;  %6341 = vmatprep.subr.mxu1 %v6950_v1  ;;  %6738 = vrcp.f32 %v1391_v15 }
 0x473   : > { %v1393_v18 = vadd.f32 1e-13, %v1383_v13 }
 0x475   : > { %v6731_v4 = vpop.eup %6730  ;;  %6740 = vrcp.f32 %v1393_v18 }
 0x476   : > { %v1402_v6 = vmul.f32 %v6731_v4, %v7312_v26  ;;  %v1944_v12 = vpop.permute.xlu1 %1943 }
 0x478   : > { %6334 = vmatmul.mubr.msk.f32.vlgmr.msra.gmra.mxu1 %vm1266_vm3, %v1402_v6 }
 0x479   : > { %v6733_v9 = vpop.eup %6732  ;;  %6342 = vmatpush3.msra.mxu1 %v1792_v50  ;;  %6343 = vmatprep.mubr.msk.f32.mxu1 %vm6951_vm0, %v6950_v1 }
 0x47a   : > { %6351 = vmatprep.subr.mxu1 %v6950_v1  ;;  %v1406_v11 = vmul.f32 %v6733_v9, %v7318_v33  ;;  %v7389_v33 = vld [vmem:[%s8215_s5 + $0x18] sm:$0xff] }
 0x47c   : > { %6344 = vmatmul.mubr.msk.f32.vlgmr.msra.gmra.mxu1 %vm1266_vm3, %v1406_v11  ;;  %v7442_v11 = vld [vmem:[%s8219_s9 + $0x18] sm:$0xff] }
 0x47d   : > { %v6735_v19 = vpop.eup %6734  ;;  %6352 = vmatpush3.msra.mxu1 %v1944_v12  ;;  %6353 = vmatprep.mubr.msk.f32.mxu1 %vm6951_vm0, %v6950_v1  ;;  %v7447_v12 = vld [vmem:[%s8219_s9 + $0x10] sm:$0xff] }
 0x47e   : > { %v6737_v21 = vpop.eup %6736  ;;  %v1410_v22 = vmul.f32 %v6735_v19, %v7332_v43  ;;  %6367 = vmatprep.subr.mxu1 %v6950_v1  ;;  %v7461_v19 = vld [vmem:[%s8219_s9] sm:$0xff] }
 0x47f   : > { %v1400_v23 = vmul.f32 %v6737_v21, %v7328_v42  ;;  %v6739_v24 = vpop.eup %6738  ;;  %v7412_v42 = vld [vmem:[%s8215_s5] sm:$0xff]  ;;  %v7470_v21 = vld [vmem:[%s8221_s11 + $0x18] sm:$0xff] }
 0x480   : > { %6354 = vmatmul.mubr.msk.f32.vlgmr.msra.gmra.mxu1 %vm1266_vm3, %v1410_v22  ;;  %v1404_v25 = vmul.f32 %v6739_v24, %v7321_v36  ;;  %v7397_v36 = vld [vmem:[%s8215_s5 + $0x10] sm:$0xff] }
 0x481   : > { %6329 = vmatmul.mubr.msk.f32.vlgmr.msra.gmra.mxu0 %vm1266_vm3, %v1400_v23  ;;  %6375 = vmatprep.mubr.msk.f32.mxu1 %vm6951_vm0, %v6950_v1 }
 0x482   : > { %6337 = vmatpush3.msra.mxu0 %v1716_v20  ;;  %6338 = vmatprep.mubr.msk.f32.mxu0 %vm6951_vm0, %v6950_v1  ;;  %v6741_v26 = vpop.eup %6740 }
 0x483   : > { %6346 = vmatprep.subr.mxu0 %v6950_v1  ;;  %v1408_v28 = vmul.f32 %v6741_v26, %v7339_v46  ;;  %6368 = vmatpush3.msra.mxu1 %v7442_v11 }
 0x484   : > { %6369 = vmatprep.subr.mxu1 %v6950_v1 }
 0x485   : > { %6339 = vmatmul.mubr.msk.f32.vlgmr.msra.gmra.mxu0 %vm1266_vm3, %v1404_v25  ;;  %6370 = vmatpush3.msra.mxu1 %v7447_v12 }
 0x486   : > { %6347 = vmatpush3.msra.mxu0 %v1868_v27  ;;  %6348 = vmatprep.mubr.msk.f32.mxu0 %vm6951_vm0, %v6950_v1 }
 0x487   : > { %6356 = vmatprep.subr.mxu0 %v6950_v1  ;;  %6371 = vmatprep.subr.mxu1 %v6950_v1 }
 0x489   : > { %6349 = vmatmul.mubr.msk.f32.vlgmr.msra.gmra.mxu0 %vm1266_vm3, %v1408_v28 }
 0x48a   : > { %6364 = vmatprep.mubr.msk.f32.mxu0 %vm6951_vm0, %v6950_v1  ;;  %6357 = vmatpush3.msra.mxu0 %v7389_v33 }
 0x48b   : > { %6358 = vmatprep.subr.mxu0 %v6950_v1 }
 0x48c   : > { %6359 = vmatpush3.msra.mxu0 %v7397_v36 }
 0x48d   : > { %6360 = vmatprep.subr.mxu0 %v6950_v1 }
 0x48e   : > { %6361 = vmatpush3.msra.mxu0 %v7402_v37 }
 0x48f   : > { %6362 = vmatprep.subr.mxu0 %v6950_v1 }
 0x490   : > { %6363 = vmatpush3.msra.mxu0 %v7412_v42 }
 0x491   : > { %6378 = vmatprep.subr.mxu0 %v6950_v1 }
 0x4e5   : > { %v1483_v29 = vpop.f32.mrf.mxu0 }
 0x4e7   : > { %v6320_v30 = vpop.f32.mrf.mxu0 }
 0x4e8   : > { %v7477_v30 = vld [vmem:[%s8217_s7] ss:$0 sm:$0xff] }
 0x530   : > { %v1559_v31 = vpop.f32.mrf.mxu1 }
 0x531   : > { %2020 = vrot.lane.b32.xlu0 %v1559_v31, %s8243_s20  ;;  %s8255_s20 = smov 8  }
 0x532   : > { %v6325_v32 = vpop.f32.mrf.mxu1 }
 0x538   : > { %v1711_v34 = vpop.f32.mrf.mxu1 }
 0x539   : > { %2028 = vrot.lane.b32.xlu0 %v1711_v34, %s8257_s30  ;;  %v7483_v34 = vld [vmem:[%s8218_s8] ss:$0 sm:$0xff]  ;;  %s8299_s30 = smov 96  }
 0x53a   : > { %v6335_v38 = vpop.f32.mrf.mxu1 }
 0x53c   : > { %v1863_v39 = vpop.f32.mrf.mxu1 }
 0x53d   : > { %2036 = vrot.lane.b32.xlu0 %v1863_v39, %s8253_s25  ;;  %s8295_s25 = smov 112  }
 0x53e   : > { %v6345_v40 = vpop.f32.mrf.mxu1 }
 0x540   : > { %v2015_v41 = vpop.f32.mrf.mxu1 }
 0x541   : > { %v1635_v43 = vpop.f32.mrf.mxu0  ;;  %2044 = vrot.lane.b32.xlu0 %v2015_v41, %s8247_s16  ;;  %s8294_s16 = smov 116  }
 0x542   : > { %2024 = vrot.lane.b32.xlu1 %v1635_v43, %s8255_s20  ;;  %v6355_v44 = vpop.f32.mrf.mxu1  ;;  %s8296_s20 = smov 108  }
 0x543   : > { %v6330_v45 = vpop.f32.mrf.mxu0 }
 0x544   : > { %v7530_v45 = vld [vmem:[%s8290_s12] ss:$0 sm:$0xff] }
 0x545   : > { %v1787_v46 = vpop.f32.mrf.mxu0 }
 0x546   : > { %2032 = vrot.lane.b32.xlu1 %v1787_v46, %s8251_s27  ;;  %s8297_s27 = smov 104  }
 0x547   : > { %v6340_v47 = vpop.f32.mrf.mxu0 }
 0x549   : > { %v1939_v48 = vpop.f32.mrf.mxu0 }
 0x54a   : > { %2040 = vrot.lane.b32.xlu1 %v1939_v48, %s8249_s24  ;;  %s8293_s24 = smov 124  }
 0x54b   : > { %v6350_v49 = vpop.f32.mrf.mxu0 }
 0x5a3   : > { %v2021_v50 = vpop.permute.xlu0 %2020 }
 0x5a4   : > { %v2047_v52 = vsel %vm645_vm2, %v1483_v29, %v2021_v50 }
 0x5ab   : > { %v2029_v51 = vpop.permute.xlu0 %2028 }
 0x5af   : > { %v2037_v20 = vpop.permute.xlu0 %2036 }
 0x5b3   : > { %v2045_v59 = vpop.permute.xlu0 %2044 }
 0x5b4   : > { %v2025_v53 = vpop.permute.xlu1 %2024 }
 0x5b5   : > { %v2048_v54 = vsel %vm1266_vm3, %v2047_v52, %v2025_v53 }
 0x5b6   : > { %v2050_v55 = vsel %vm2049_vm4, %v2048_v54, %v2029_v51 }
 0x5b8   : > { %v2033_v17 = vpop.permute.xlu1 %2032 }
 0x5b9   : > { %v2052_v56 = vsel %vm2051_vm5, %v2050_v55, %v2033_v17 }
 0x5ba   : > { %v2054_v57 = vsel %vm2053_vm6, %v2052_v56, %v2037_v20 }
 0x5bc   : > { %v2041_v58 = vpop.permute.xlu1 %2040 }
 0x5bd   : > { %v2056_v60 = vsel %vm2055_vm7, %v2054_v57, %v2041_v58 }
 0x5be   : > { %v2058_v61 = vsel %vm2057_vm8, %v2056_v60, %v2045_v59 }
 0x5bf   : > { %6365 = vmatmul.mubr.msk.f32.vlgmr.msra.gmra.mxu0 %vm538_vm1, %v2058_v61 }
 0x5c0   : > { %6386 = vmatprep.mubr.msk.f32.mxu0 %vm6951_vm0, %v6950_v1  ;;  %6379 = vmatpush3.msra.mxu0 %v7470_v21 }
 0x5c1   : > { %6380 = vmatprep.subr.mxu0 %v6950_v1 }
 0x67f   : > { %v2134_v10 = vpop.f32.mrf.mxu0 }
 0x680   : > { %v2135_v14 = vadd.f32 %v7433_v62, %v2134_v10  ;;  %v7538_v10 = vld [vmem:[%s8291_s13] ss:$0 sm:$0xff]  ;;  %s8308_s13 = smov 120  }
 0x681   : > { %v6366_v16 = vpop.f32.mrf.mxu0 }
 0x682   : > { %v2138_v15 = vadd.f32 %v2135_v14, %v7140_v7  ;;  %v7454_v7 = vld [vmem:[%s8219_s9 + $0x8] sm:$0xff] }
 0x683   : > { %6372 = vmatpush3.msra.mxu1 %v7454_v7 }
 0x684   : > { %v2139_v63 = vsel %vm538_vm1, %v2138_v15, 0.0  ;;  %6373 = vmatprep.subr.mxu1 %v6950_v1 }
 0x685   : > { %2140 = vadd.xlane.f32.xlu1 %v2139_v63  ;;  %6374 = vmatpush3.msra.mxu1 %v7461_v19 }
 0x686   : > { %6389 = vmatprep.subr.mxu1 %v6950_v1 }
 0x70e   : > { %v2141_v13 = vpop.xlane.xlu1 %2140 }
 0x70f   : > { %v2143_v18 = vmul.f32 0.03125, %v2141_v13  ;;  %v6047_v13 = vld [vmem:[%s8210_s0 + $0x8] sm:$0xff] }
 0x711   : > { %v2144_v4 = vsub.f32 %v2138_v15, %v2143_v18  ;;  %v7544_v15 = vld [vmem:[%s8292_s14] ss:$0 sm:$0xff]  ;;  %s8307_s14 = smov 28  }
 0x713   : > { %v2145_v6 = vmul.f32 %v2144_v4, %v2144_v4  ;;  %v2164_v31 = vmul.f32 %v7477_v30, %v2144_v4 }
 0x715   : > { %v2146_v9 = vsel %vm538_vm1, %v2145_v6, 0.0 }
 0x716   : > { %2147 = vadd.xlane.f32.xlu0 %v2146_v9 }
 0x79f   : > { %v2148_v22 = vpop.xlane.xlu0 %2147 }
 0x7a0   : > { %v2150_v23 = vmul.f32 0.032258064, %v2148_v22 }
 0x7a2   : > { %6742 = vrsqrt.f32 %v2150_v23  ;;  %vm2153_vm9 = vcmp.eq.f32.partialorder %v2150_v23, inf  ;;  %v2156_v26 = vand.u32 2147483648, %v2150_v23  ;;  %vm2155_vm10 = vcmp.eq.f32.partialorder %v2150_v23, 0.0 }
 0x7af   : > { %v6743_v24 = vpop.eup %6742 }
 0x7b0   : > { %v2152_v25 = vmul.f32 %v6743_v24, %v2150_v23 }
 0x7b2   : > { %v2154_v27 = vsel %vm2153_vm9, %v2150_v23, %v2152_v25 }
 0x7b3   : > { %v2157_v28 = vsel %vm2155_vm10, %v2156_v26, %v2154_v27 }
 0x7b4   : > { %v2165_v29 = vadd.f32 1e-06, %v2157_v28 }
 0x7b6   : > { %6744 = vrcp.f32 %v2165_v29 }
 0x7c3   : > { %v6745_v32 = vpop.eup %6744 }
 0x7c4   : > { %v2167_v38 = vmul.f32 %v6745_v32, %v2164_v31 }
 0x7c6   : > { %v2174_v39 = vadd.f32 %v7483_v34, %v2167_v38 }
 0x7c8   : > { %6376 = vmatmul.mubr.msk.f32.vlgmr.msra.gmra.mxu1 %vm538_vm1, %v2174_v39 }
 0x7c9   : > { %6390 = vmatpush3.msra.mxu1 %v7100_v0  ;;  %6397 = vmatprep.mubr.msk.f32.mxu1 %vm6951_vm0, %v6950_v1  ;;  %v7500_v0 = vld [vmem:[%s8221_s11 + $0x10] sm:$0xff] }
 0x7ca   : > { %6391 = vmatprep.subr.mxu1 %v6950_v1  ;;  %6381 = vmatpush3.msra.mxu0 %v7500_v0 }
 0x7cb   : > { %6392 = vmatpush3.msra.mxu1 %v7107_v2  ;;  %6382 = vmatprep.subr.mxu0 %v6950_v1  ;;  %v7507_v2 = vld [vmem:[%s8221_s11 + $0x8] sm:$0xff] }
 0x7cc   : > { %6393 = vmatprep.subr.mxu1 %v6950_v1  ;;  %6383 = vmatpush3.msra.mxu0 %v7507_v2 }
 0x7cd   : > { %6394 = vmatpush3.msra.mxu1 %v7120_v3  ;;  %v7513_v3 = vld [vmem:[%s8221_s11] sm:$0xff]  ;;  %6384 = vmatprep.subr.mxu0 %v6950_v1 }
 0x7ce   : > { %6395 = vmatprep.subr.mxu1 %v6950_v1  ;;  %6385 = vmatpush3.msra.mxu0 %v7513_v3 }
 0x7cf   : > { %6396 = vmatpush3.msra.mxu1 %v7133_v5  ;;  %6400 = vmatprep.subr.mxu0 %v6950_v1  ;;  %v7521_v5 = vld [vmem:[%s8289_s10] ss:$0 sm:$0xff]  ;;  %s8309_s10 = sld [smem:[#allocation16_spill]] }
 0x7d0   : > { %6405 = vmatprep.subr.mxu1 %v6950_v1 }
 0x888   : > { %v2250_v40 = vpop.f32.mrf.mxu1 }
 0x889   : > { %v2251_v41 = vadd.f32 %v7521_v5, %v2250_v40 }
 0x88a   : > { %v6377_v43 = vpop.f32.mrf.mxu1 }
 0x88b   : > { %v2254_v44 = vmax.f32 %v2251_v41, 0.0 }
 0x88d   : > { %6387 = vmatmul.mubr.msk.f32.vlgmr.msra.gmra.mxu0 %vm538_vm1, %v2254_v44 }
 0x88e   : > { %6402 = vmatprep.mubr.msk.f32.mxu0 %vm6951_vm0, %v6950_v1 }
 0x94d   : > { %v2330_v46 = vpop.f32.mrf.mxu0 }
 0x94e   : > { %v2331_v47 = vadd.f32 %v7530_v45, %v2330_v46 }
 0x94f   : > { %v6388_v48 = vpop.f32.mrf.mxu0 }
 0x950   : > { %v2334_v49 = vadd.f32 %v2331_v47, %v2174_v39 }
 0x952   : > { %v2335_v50 = vsel %vm538_vm1, %v2334_v49, 0.0 }
 0x953   : > { %2336 = vadd.xlane.f32.xlu0 %v2335_v50 }
 0x9dc   : > { %v2337_v51 = vpop.xlane.xlu0 %2336 }
 0x9dd   : > { %v2338_v52 = vmul.f32 0.03125, %v2337_v51 }
 0x9df   : > { %v2339_v53 = vsub.f32 %v2334_v49, %v2338_v52 }
 0x9e1   : > { %v2340_v54 = vmul.f32 %v2339_v53, %v2339_v53  ;;  %v2358_v14 = vmul.f32 %v7538_v10, %v2339_v53 }
 0x9e3   : > { %v2341_v20 = vsel %vm538_vm1, %v2340_v54, 0.0 }
 0x9e4   : > { %2342 = vadd.xlane.f32.xlu1 %v2341_v20 }
 0xa6d   : > { %v2343_v55 = vpop.xlane.xlu1 %2342 }
 0xa6e   : > { %v2344_v17 = vmul.f32 0.032258064, %v2343_v55 }
 0xa70   : > { %6746 = vrsqrt.f32 %v2344_v17  ;;  %vm2347_vm11 = vcmp.eq.f32.partialorder %v2344_v17, inf  ;;  %v2350_v58 = vand.u32 2147483648, %v2344_v17  ;;  %vm2349_vm12 = vcmp.eq.f32.partialorder %v2344_v17, 0.0 }
 0xa7d   : > { %v6747_v56 = vpop.eup %6746 }
 0xa7e   : > { %v2346_v57 = vmul.f32 %v6747_v56, %v2344_v17 }
 0xa80   : > { %v2348_v59 = vsel %vm2347_vm11, %v2344_v17, %v2346_v57 }
 0xa81   : > { %v2351_v60 = vsel %vm2349_vm12, %v2350_v58, %v2348_v59 }
 0xa82   : > { %v2359_v61 = vadd.f32 1e-06, %v2351_v60 }
 0xa84   : > { %6748 = vrcp.f32 %v2359_v61 }
 0xa91   : > { %v6749_v16 = vpop.eup %6748 }
 0xa92   : > { %v2361_v63 = vmul.f32 %v6749_v16, %v2358_v14 }
 0xa94   : > { %v2368_v18 = vadd.f32 %v7544_v15, %v2361_v63 }
 0xa96   : > { %v7550_v4 = vadd.f32 %v6047_v13, %v2368_v18 }
 0xa98   : > { %6398 = vmatmul.mubr.msk.f32.vlgmr.msra.gmra.mxu1 %vm538_vm1, %v7550_v4 }
 0xa99   : > { %6407 = vmatprep.mubr.msk.f32.mxu1 %vm6951_vm0, %v6950_v1 }
 0xb58   : > { %v2441_v6 = vpop.f32.mrf.mxu1 }
 0xb59   : > { %v7557_v9 = vadd.f32 %v7151_v8, %v2441_v6 }
 0xb5a   : > { %v6399_v22 = vpop.f32.mrf.mxu1 }
 0xb5b   : > { %2464 = vrot.lane.b32.xlu1 %v7557_v9, %s8259_s23  ;;  %2462 = vrot.lane.b32.xlu0 %v7557_v9, %s8293_s24  ;;  %v2445_v8 = vmul.f32 0.5, %v7557_v9 }
 0xb5f   : > { %2466 = vrot.lane.b32.xlu1 %v7557_v9, %s8294_s16  ;;  %2468 = vrot.lane.b32.xlu0 %v7557_v9, %s8295_s25 }
 0xb63   : > { %2470 = vrot.lane.b32.xlu1 %v7557_v9, %s8296_s20  ;;  %2472 = vrot.lane.b32.xlu0 %v7557_v9, %s8297_s27 }
 0xb67   : > { %2474 = vrot.lane.b32.xlu1 %v7557_v9, %s8298_s17  ;;  %2476 = vrot.lane.b32.xlu0 %v7557_v9, %s8299_s30 }
 0xb6b   : > { %2449 = vrot.lane.b32.xlu1 %v2445_v8, %s8259_s23  ;;  %2447 = vrot.lane.b32.xlu0 %v2445_v8, %s8293_s24  ;;  %s8300_s23 = smov 64  }
 0xb6f   : > { %2453 = vrot.lane.b32.xlu1 %v2445_v8, %s8295_s25  ;;  %2451 = vrot.lane.b32.xlu0 %v2445_v8, %s8294_s16 }
 0xb73   : > { %2455 = vrot.lane.b32.xlu0 %v2445_v8, %s8296_s20 }
 0xbcd   : > { %v7581_v23 = vpop.permute.xlu1 %2464  ;;  %v7583_v24 = vpop.permute.xlu0 %2462 }
 0xbce   : > { %2552 = vrot.lane.b32.xlu1 %v7583_v24, %s8299_s30 }
 0xbd1   : > { %v7587_v25 = vpop.permute.xlu1 %2466  ;;  %v7589_v26 = vpop.permute.xlu0 %2468 }
 0xbd2   : > { %2628 = vrot.lane.b32.xlu1 %v7581_v23, %s8299_s30  ;;  %2704 = vrot.lane.b32.xlu0 %v7587_v25, %s8299_s30 }
 0xbd5   : > { %v7595_v27 = vpop.permute.xlu1 %2470  ;;  %v7597_v28 = vpop.permute.xlu0 %2472 }
 0xbd6   : > { %2780 = vrot.lane.b32.xlu1 %v7589_v26, %s8299_s30  ;;  %2856 = vrot.lane.b32.xlu0 %v7595_v27, %s8299_s30 }
 0xbd9   : > { %v7603_v29 = vpop.permute.xlu1 %2474  ;;  %v2477_v31 = vpop.permute.xlu0 %2476 }
 0xbda   : > { %6401 = vmatpush3.xpose.msk.msra.mxu0 %vm645_vm2, %v2477_v31  ;;  %2932 = vrot.lane.b32.xlu1 %v7597_v28, %s8299_s30 }
 0xbdb   : > { %3008 = vrot.lane.b32.xlu0 %v7603_v29, %s8299_s30  ;;  %6410 = vmatprep.subr.mxu0 %v6950_v1 }
 0xbdd   : > { %6403 = vmatmul.mubr.msk.f32.vlgmr.msra.gmra.mxu0 %vm645_vm2, %v2445_v8  ;;  %v2448_v32 = vpop.permute.xlu0 %2447  ;;  %v2450_v38 = vpop.permute.xlu1 %2449 }
 0xbde   : > { %2457 = vrot.lane.b32.xlu1 %v2445_v8, %s8297_s27  ;;  %6412 = vmatprep.mubr.msk.f32.mxu0 %vm6951_vm0, %v6950_v1 }
 0xbdf   : > { %2459 = vrot.lane.b32.xlu0 %v2445_v8, %s8298_s17  ;;  %v7660_v8 = vld [vmem:[%s7252_s26] ss:$0 sm:$0xff] }
 0xbe1   : > { %v2452_v39 = vpop.permute.xlu0 %2451  ;;  %v2454_v40 = vpop.permute.xlu1 %2453 }
 0xbe5   : > { %v2456_v41 = vpop.permute.xlu0 %2455 }
 0xc40   : > { %v2553_v43 = vpop.permute.xlu1 %2552 }
 0xc41   : > { %6406 = vmatpush3.xpose.msk.msra.mxu1 %vm645_vm2, %v2553_v43 }
 0xc42   : > { %6415 = vmatprep.subr.mxu1 %v6950_v1 }
 0xc44   : > { %v2629_v44 = vpop.permute.xlu1 %2628  ;;  %6408 = vmatmul.mubr.msk.f32.vlgmr.msra.gmra.mxu1 %vm645_vm2, %v2448_v32  ;;  %v2705_v46 = vpop.permute.xlu0 %2704 }
 0xc45   : > { %6411 = vmatpush3.xpose.msk.msra.mxu0 %vm645_vm2, %v2629_v44  ;;  %6416 = vmatpush3.xpose.msk.msra.mxu1 %vm645_vm2, %v2705_v46 }
 0xc46   : > { %6417 = vmatprep.mubr.msk.f32.mxu1 %vm6951_vm0, %v6950_v1  ;;  %6425 = vmatprep.subr.mxu1 %v6950_v1 }
 0xc47   : > { %6420 = vmatprep.subr.mxu0 %v6950_v1 }
 0xc48   : > { %v2781_v47 = vpop.permute.xlu1 %2780  ;;  %6418 = vmatmul.mubr.msk.f32.vlgmr.msra.gmra.mxu1 %vm645_vm2, %v2452_v39  ;;  %v2857_v48 = vpop.permute.xlu0 %2856  ;;  %6413 = vmatmul.mubr.msk.f32.vlgmr.msra.gmra.mxu0 %vm645_vm2, %v2450_v38 }
 0xc49   : > { %6421 = vmatpush3.xpose.msk.msra.mxu0 %vm645_vm2, %v2781_v47  ;;  %6426 = vmatpush3.xpose.msk.msra.mxu1 %vm645_vm2, %v2857_v48 }
 0xc4a   : > { %6422 = vmatprep.mubr.msk.f32.mxu0 %vm6951_vm0, %v6950_v1  ;;  %6427 = vmatprep.mubr.msk.f32.mxu1 %vm6951_vm0, %v6950_v1 }
 0xc4b   : > { %6435 = vmatprep.subr.mxu1 %v6950_v1  ;;  %6430 = vmatprep.subr.mxu0 %v6950_v1 }
 0xc4c   : > { %v2933_v49 = vpop.permute.xlu1 %2932  ;;  %6428 = vmatmul.mubr.msk.f32.vlgmr.msra.gmra.mxu1 %vm645_vm2, %v2456_v41  ;;  %6423 = vmatmul.mubr.msk.f32.vlgmr.msra.gmra.mxu0 %vm645_vm2, %v2454_v40 }
 0xc4d   : > { %v3009_v50 = vpop.permute.xlu0 %3008  ;;  %6431 = vmatpush3.xpose.msk.msra.mxu0 %vm645_vm2, %v2933_v49  ;;  %6437 = vmatprep.mubr.msk.f32.mxu1 %vm6951_vm0, %v6950_v1 }
 0xc4e   : > { %6436 = vmatpush3.xpose.msk.msra.mxu1 %vm645_vm2, %v3009_v50  ;;  %6432 = vmatprep.mubr.msk.f32.mxu0 %vm6951_vm0, %v6950_v1 }
 0xc4f   : > { %6440 = vmatprep.subr.mxu0 %v6950_v1  ;;  %6445 = vmatprep.subr.mxu1 %v6950_v1 }
 0xc50   : > { %v2458_v51 = vpop.permute.xlu1 %2457 }
 0xc51   : > { %v2460_v52 = vpop.permute.xlu0 %2459  ;;  %6433 = vmatmul.mubr.msk.f32.vlgmr.msra.gmra.mxu0 %vm645_vm2, %v2458_v51 }
 0xc52   : > { %6438 = vmatmul.mubr.msk.f32.vlgmr.msra.gmra.mxu1 %vm645_vm2, %v2460_v52  ;;  %6442 = vmatprep.mubr.msk.f32.mxu0 %vm6951_vm0, %v6950_v1 }
 0xc53   : > { %6447 = vmatprep.mubr.msk.f32.mxu1 %vm6951_vm0, %v6950_v1 }
 0xc9d   : > { %v2548_v53 = vpop.f32.mrf.mxu0 }
 0xc9e   : > { %v3084_v54 = vmul.f32 %v7255_v35, %v2548_v53 }
 0xc9f   : > { %v6404_v20 = vpop.f32.mrf.mxu0 }
 0xca0   : > { %v3092_v55 = vsel %vm1266_vm3, %v3084_v54, -inf }
 0xca1   : > { %3093 = vmax.xlane.f32.xlu1 %v3092_v55 }
 0xd04   : > { %v2624_v17 = vpop.f32.mrf.mxu1 }
 0xd05   : > { %v3085_v56 = vmul.f32 %v7255_v35, %v2624_v17 }
 0xd06   : > { %v6409_v57 = vpop.f32.mrf.mxu1 }
 0xd07   : > { %v3095_v58 = vsel %vm1266_vm3, %v3085_v56, -inf }
 0xd08   : > { %3096 = vmax.xlane.f32.xlu0 %v3095_v58  ;;  %v2700_v59 = vpop.f32.mrf.mxu0  ;;  %v2776_v60 = vpop.f32.mrf.mxu1 }
 0xd09   : > { %v3086_v61 = vmul.f32 %v7255_v35, %v2700_v59  ;;  %v3087_v14 = vmul.f32 %v7255_v35, %v2776_v60 }
 0xd0a   : > { %v6414_v16 = vpop.f32.mrf.mxu0  ;;  %v6419_v63 = vpop.f32.mrf.mxu1 }
 0xd0b   : > { %v3101_v13 = vsel %vm1266_vm3, %v3087_v14, -inf  ;;  %v3098_v18 = vsel %vm1266_vm3, %v3086_v61, -inf }
 0xd0c   : > { %v2928_v6 = vpop.f32.mrf.mxu1  ;;  %3102 = vmax.xlane.f32.xlu1 %v3101_v13  ;;  %3099 = vmax.xlane.f32.xlu0 %v3098_v18  ;;  %v2852_v22 = vpop.f32.mrf.mxu0 }
 0xd0d   : > { %v3089_v31 = vmul.f32 %v7660_v8, %v2928_v6  ;;  %v3088_v32 = vmul.f32 %v7660_v8, %v2852_v22 }
 0xd0e   : > { %v6424_v38 = vpop.f32.mrf.mxu0  ;;  %v6429_v39 = vpop.f32.mrf.mxu1 }
 0xd0f   : > { %v3107_v35 = vsel %vm1266_vm3, %v3089_v31, -inf  ;;  %v3104_v40 = vsel %vm1266_vm3, %v3088_v32, -inf }
 0xd10   : > { %3108 = vmax.xlane.f32.xlu1 %v3107_v35  ;;  %3105 = vmax.xlane.f32.xlu0 %v3104_v40 }
 0xd11   : > { %v3004_v41 = vpop.f32.mrf.mxu0 }
 0xd12   : > { %v3090_v43 = vmul.f32 %v7660_v8, %v3004_v41  ;;  %v3080_v44 = vpop.f32.mrf.mxu1 }
 0xd13   : > { %v3091_v46 = vmul.f32 %v7660_v8, %v3080_v44  ;;  %v6434_v47 = vpop.f32.mrf.mxu0 }
 0xd14   : > { %v6439_v48 = vpop.f32.mrf.mxu1  ;;  %v3110_v49 = vsel %vm1266_vm3, %v3090_v43, -inf }
 0xd15   : > { %v3113_v50 = vsel %vm1266_vm3, %v3091_v46, -inf  ;;  %3111 = vmax.xlane.f32.xlu0 %v3110_v49 }
 0xd16   : > { %3114 = vmax.xlane.f32.xlu1 %v3113_v50 }
 0xd2a   : > { %v3094_v51 = vpop.xlane.xlu1 %3093 }
 0xd2b   : > { %v3116_v52 = vsub.f32 %v3084_v54, %v3094_v51 }
 0xd2d   : > { %v3124_v53 = vmul.f32 1.442695, %v3116_v52 }
 0xd2f   : > { %6750 = vpow2.f32 %v3124_v53 }
 0xd3c   : > { %v6751_v20 = vpop.eup %6750 }
 0xd3d   : > { %v3140_v55 = vsel %vm1266_vm3, %v6751_v20, 0.0 }
 0xd3e   : > { %3141 = vadd.xlane.f32.xlu0 %v3140_v55 }
 0xd91   : > { %v3097_v17 = vpop.xlane.xlu0 %3096 }
 0xd92   : > { %v3117_v57 = vsub.f32 %v3085_v56, %v3097_v17 }
 0xd94   : > { %v3126_v58 = vmul.f32 1.442695, %v3117_v57 }
 0xd95   : > { %v3103_v59 = vpop.xlane.xlu1 %3102  ;;  %v3100_v60 = vpop.xlane.xlu0 %3099 }
 0xd96   : > { %6752 = vpow2.f32 %v3126_v58  ;;  %v3119_v16 = vsub.f32 %v3087_v14, %v3103_v59  ;;  %v3118_v63 = vsub.f32 %v3086_v61, %v3100_v60 }
 0xd98   : > { %v3130_v13 = vmul.f32 1.442695, %v3119_v16  ;;  %v3128_v18 = vmul.f32 1.442695, %v3118_v63 }
 0xd99   : > { %v3109_v6 = vpop.xlane.xlu1 %3108  ;;  %v3106_v22 = vpop.xlane.xlu0 %3105 }
 0xd9a   : > { %6754 = vpow2.f32 %v3130_v13  ;;  %v3121_v54 = vsub.f32 %v3089_v31, %v3109_v6  ;;  %v3120_v38 = vsub.f32 %v3088_v32, %v3106_v22 }
 0xd9b   : > { %6756 = vpow2.f32 %v3128_v18 }
 0xd9c   : > { %v3134_v39 = vmul.f32 1.442695, %v3121_v54  ;;  %v3132_v35 = vmul.f32 1.442695, %v3120_v38 }
 0xd9e   : > { %6758 = vpow2.f32 %v3134_v39  ;;  %v3112_v40 = vpop.xlane.xlu0 %3111 }
 0xd9f   : > { %6760 = vpow2.f32 %v3132_v35  ;;  %v3115_v56 = vpop.xlane.xlu1 %3114  ;;  %v3122_v41 = vsub.f32 %v3090_v43, %v3112_v40 }
 0xda0   : > { %v3123_v44 = vsub.f32 %v3091_v46, %v3115_v56 }
 0xda1   : > { %v3136_v47 = vmul.f32 1.442695, %v3122_v41 }
 0xda2   : > { %v3138_v48 = vmul.f32 1.442695, %v3123_v44 }
 0xda3   : > { %v6753_v14 = vpop.eup %6752  ;;  %6762 = vpow2.f32 %v3136_v47 }
 0xda4   : > { %6764 = vpow2.f32 %v3138_v48  ;;  %v3143_v61 = vsel %vm1266_vm3, %v6753_v14, 0.0 }
 0xda5   : > { %3144 = vadd.xlane.f32.xlu1 %v3143_v61 }
 0xda7   : > { %v6755_v49 = vpop.eup %6754 }
 0xda8   : > { %v6757_v31 = vpop.eup %6756  ;;  %v3149_v32 = vsel %vm1266_vm3, %v6755_v49, 0.0 }
 0xda9   : > { %3150 = vadd.xlane.f32.xlu1 %v3149_v32  ;;  %v3146_v50 = vsel %vm1266_vm3, %v6757_v31, 0.0 }
 0xdaa   : > { %3147 = vadd.xlane.f32.xlu0 %v3146_v50 }
 0xdab   : > { %v6759_v51 = vpop.eup %6758 }
 0xdac   : > { %v6761_v52 = vpop.eup %6760  ;;  %v3155_v43 = vsel %vm1266_vm3, %v6759_v51, 0.0 }
 0xdad   : > { %3156 = vadd.xlane.f32.xlu1 %v3155_v43  ;;  %v3152_v46 = vsel %vm1266_vm3, %v6761_v52, 0.0 }
 0xdae   : > { %3153 = vadd.xlane.f32.xlu0 %v3152_v46 }
 0xdb0   : > { %v7676_v53 = vpop.eup %6762 }
 0xdb1   : > { %v7678_v55 = vpop.eup %6764  ;;  %v3158_v17 = vsel %vm1266_vm3, %v7676_v53, 0.0 }
 0xdb2   : > { %v3161_v57 = vsel %vm1266_vm3, %v7678_v55, 0.0  ;;  %3159 = vadd.xlane.f32.xlu0 %v3158_v17 }
 0xdb3   : > { %3162 = vadd.xlane.f32.xlu1 %v3161_v57 }
 0xdc4   : > { %3312 = vrot.lane.b32.xlu1 %v7583_v24, %s8300_s23 }
 0xdc7   : > { %v3142_v58 = vpop.xlane.xlu0 %3141 }
 0xdc8   : > { %3388 = vrot.lane.b32.xlu1 %v7581_v23, %s8300_s23  ;;  %3236 = vrot.lane.b32.xlu0 %v7557_v9, %s8300_s23  ;;  %6766 = vrcp.f32 %v3142_v58 }
 0xdcc   : > { %3540 = vrot.lane.b32.xlu1 %v7589_v26, %s8300_s23  ;;  %3464 = vrot.lane.b32.xlu0 %v7587_v25, %s8300_s23 }
 0xdd0   : > { %3616 = vrot.lane.b32.xlu0 %v7595_v27, %s8300_s23 }
 0xdd5   : > { %v6767_v59 = vpop.eup %6766 }
 0xdd6   : > { %v3172_v60 = vmul.f32 %v6767_v59, %v6751_v20 }
 0xdd8   : > { %v7697_v24 = vmul.f32 %v7660_v8, %v3172_v60 }
 0xdda   : > { %v3188_v23 = vsel %vm1266_vm3, %v7697_v24, 0.0 }
 0xdef   : > { %3189 = vadd.xlane.f32.xlu0 %v3188_v23 }
 0xe2e   : > { %v3145_v9 = vpop.xlane.xlu1 %3144 }
 0xe2f   : > { %6768 = vrcp.f32 %v3145_v9 }
 0xe32   : > { %v3151_v26 = vpop.xlane.xlu1 %3150 }
 0xe33   : > { %6770 = vrcp.f32 %v3151_v26  ;;  %v3148_v16 = vpop.xlane.xlu0 %3147 }
 0xe34   : > { %6772 = vrcp.f32 %v3148_v16 }
 0xe36   : > { %v3157_v25 = vpop.xlane.xlu1 %3156 }
 0xe37   : > { %6774 = vrcp.f32 %v3157_v25  ;;  %v3154_v27 = vpop.xlane.xlu0 %3153 }
 0xe38   : > { %6776 = vrcp.f32 %v3154_v27 }
 0xe3b   : > { %v3160_v63 = vpop.xlane.xlu0 %3159 }
 0xe3c   : > { %v6769_v13 = vpop.eup %6768  ;;  %v3163_v20 = vpop.xlane.xlu1 %3162  ;;  %6778 = vrcp.f32 %v3160_v63 }
 0xe3d   : > { %6780 = vrcp.f32 %v3163_v20  ;;  %v3173_v18 = vmul.f32 %v6769_v13, %v6753_v14 }
 0xe3f   : > { %v3237_v6 = vpop.permute.xlu0 %3236  ;;  %v7702_v22 = vmul.f32 %v7660_v8, %v3173_v18 }
 0xe40   : > { %v6771_v54 = vpop.eup %6770  ;;  %v3313_v38 = vpop.permute.xlu1 %3312  ;;  %6441 = vmatpush3.msra.mxu0 %v3237_v6 }
 0xe41   : > { %v6773_v39 = vpop.eup %6772  ;;  %6446 = vmatpush3.msra.mxu1 %v3313_v38  ;;  %v3191_v35 = vsel %vm1266_vm3, %v7702_v22, 0.0  ;;  %v3175_v40 = vmul.f32 %v6771_v54, %v6755_v49  ;;  %6450 = vmatprep.subr.mxu0 %v6950_v1 }
 0xe42   : > { %3192 = vadd.xlane.f32.xlu1 %v3191_v35  ;;  %v3174_v56 = vmul.f32 %v6773_v39, %v6757_v31  ;;  %6455 = vmatprep.subr.mxu1 %v6950_v1 }
 0xe43   : > { %v7709_v41 = vmul.f32 %v7660_v8, %v3175_v40 }
 0xe44   : > { %v6775_v44 = vpop.eup %6774  ;;  %v7712_v47 = vmul.f32 %v7660_v8, %v3174_v56  ;;  %v3389_v27 = vpop.permute.xlu1 %3388 }
 0xe45   : > { %v6777_v48 = vpop.eup %6776  ;;  %v3197_v14 = vsel %vm1266_vm3, %v7709_v41, 0.0  ;;  %v3177_v61 = vmul.f32 %v6775_v44, %v6759_v51 }
 0xe46   : > { %3198 = vadd.xlane.f32.xlu1 %v3197_v14  ;;  %v3194_v49 = vsel %vm1266_vm3, %v7712_v47, 0.0  ;;  %v3176_v32 = vmul.f32 %v6777_v48, %v6761_v52 }
 0xe47   : > { %3195 = vadd.xlane.f32.xlu0 %v3194_v49  ;;  %v7719_v31 = vmul.f32 %v7660_v8, %v3177_v61 }
 0xe48   : > { %v7722_v50 = vmul.f32 %v7660_v8, %v3176_v32 }
 0xe49   : > { %v6779_v43 = vpop.eup %6778  ;;  %v3203_v46 = vsel %vm1266_vm3, %v7719_v31, 0.0 }
 0xe4a   : > { %v6781_v17 = vpop.eup %6780  ;;  %3204 = vadd.xlane.f32.xlu1 %v3203_v46  ;;  %v3200_v51 = vsel %vm1266_vm3, %v7722_v50, 0.0  ;;  %v3178_v57 = vmul.f32 %v6779_v43, %v7676_v53  ;;  %v3465_v53 = vpop.permute.xlu0 %3464 }
 0xe4b   : > { %3201 = vadd.xlane.f32.xlu0 %v3200_v51  ;;  %v3179_v52 = vmul.f32 %v6781_v17, %v7678_v55 }
 0xe4c   : > { %v7731_v58 = vmul.f32 %v7660_v8, %v3178_v57 }
 0xe4d   : > { %v7734_v59 = vmul.f32 %v7660_v8, %v3179_v52 }
 0xe4e   : > { %v3206_v60 = vsel %vm1266_vm3, %v7731_v58, 0.0  ;;  %v3617_v55 = vpop.permute.xlu0 %3616 }
 0xe4f   : > { %v3209_v23 = vsel %vm1266_vm3, %v7734_v59, 0.0  ;;  %3207 = vadd.xlane.f32.xlu0 %v3206_v60 }
 0xe50   : > { %3210 = vadd.xlane.f32.xlu1 %v3209_v23 }
 0xe61   : > { %3692 = vrot.lane.b32.xlu1 %v7597_v28, %s8300_s23  ;;  %v3541_v28 = vpop.permute.xlu1 %3540 }
 0xe65   : > { %3768 = vrot.lane.b32.xlu0 %v7603_v29, %s8300_s23 }
 0xe78   : > { %v3190_v9 = vpop.xlane.xlu0 %3189 }
 0xe79   : > { %v3212_v26 = vadd.f32 1e-13, %v3190_v9 }
 0xe7b   : > { %6782 = vrcp.f32 %v3212_v26 }
 0xe88   : > { %v6783_v16 = vpop.eup %6782 }
 0xe89   : > { %v3221_v25 = vmul.f32 %v6783_v16, %v7697_v24 }
 0xe8b   : > { %6443 = vmatmul.mubr.msk.f32.vlgmr.msra.gmra.mxu0 %vm1266_vm3, %v3221_v25 }
 0xe8c   : > { %6451 = vmatpush3.msra.mxu0 %v3389_v27  ;;  %6452 = vmatprep.mubr.msk.f32.mxu0 %vm6951_vm0, %v6950_v1 }
 0xe8d   : > { %6460 = vmatprep.subr.mxu0 %v6950_v1 }
 0xecb   : > { %v3193_v63 = vpop.xlane.xlu1 %3192 }
 0xecc   : > { %v3213_v29 = vadd.f32 1e-13, %v3193_v63 }
 0xece   : > { %6784 = vrcp.f32 %v3213_v29 }
 0xecf   : > { %v3199_v13 = vpop.xlane.xlu1 %3198 }
 0xed0   : > { %v3215_v20 = vadd.f32 1e-13, %v3199_v13  ;;  %v3196_v18 = vpop.xlane.xlu0 %3195 }
 0xed1   : > { %v3214_v6 = vadd.f32 1e-13, %v3196_v18 }
 0xed2   : > { %6786 = vrcp.f32 %v3215_v20 }
 0xed3   : > { %6788 = vrcp.f32 %v3214_v6  ;;  %v3205_v24 = vpop.xlane.xlu1 %3204 }
 0xed4   : > { %v3217_v54 = vadd.f32 1e-13, %v3205_v24  ;;  %v3202_v38 = vpop.xlane.xlu0 %3201 }
 0xed5   : > { %v3216_v39 = vadd.f32 1e-13, %v3202_v38 }
 0xed6   : > { %6790 = vrcp.f32 %v3217_v54 }
 0xed7   : > { %6792 = vrcp.f32 %v3216_v39 }
 0xed8   : > { %v3208_v35 = vpop.xlane.xlu0 %3207 }
 0xed9   : > { %v3211_v40 = vpop.xlane.xlu1 %3210  ;;  %v3218_v56 = vadd.f32 1e-13, %v3208_v35 }
 0xeda   : > { %v3219_v44 = vadd.f32 1e-13, %v3211_v40 }
 0xedb   : > { %v6785_v48 = vpop.eup %6784  ;;  %6794 = vrcp.f32 %v3218_v56 }
 0xedc   : > { %6796 = vrcp.f32 %v3219_v44  ;;  %v3223_v14 = vmul.f32 %v6785_v48, %v7702_v22 }
 0xedd   : > { %v3693_v51 = vpop.permute.xlu1 %3692 }
 0xede   : > { %6448 = vmatmul.mubr.msk.f32.vlgmr.msra.gmra.mxu1 %vm1266_vm3, %v3223_v14 }
 0xedf   : > { %v6787_v61 = vpop.eup %6786  ;;  %6456 = vmatpush3.msra.mxu1 %v3465_v53  ;;  %6457 = vmatprep.mubr.msk.f32.mxu1 %vm6951_vm0, %v6950_v1 }
 0xee0   : > { %v6789_v49 = vpop.eup %6788  ;;  %6465 = vmatprep.subr.mxu1 %v6950_v1  ;;  %v3227_v32 = vmul.f32 %v6787_v61, %v7709_v41 }
 0xee1   : > { %v3225_v43 = vmul.f32 %v6789_v49, %v7712_v47  ;;  %v3769_v47 = vpop.permute.xlu0 %3768 }
 0xee2   : > { %6458 = vmatmul.mubr.msk.f32.vlgmr.msra.gmra.mxu1 %vm1266_vm3, %v3227_v32 }
 0xee3   : > { %v6791_v46 = vpop.eup %6790  ;;  %6453 = vmatmul.mubr.msk.f32.vlgmr.msra.gmra.mxu0 %vm1266_vm3, %v3225_v43  ;;  %6466 = vmatpush3.msra.mxu1 %v3617_v55 }
 0xee4   : > { %v6793_v22 = vpop.eup %6792  ;;  %6461 = vmatpush3.msra.mxu0 %v3541_v28  ;;  %6462 = vmatprep.mubr.msk.f32.mxu0 %vm6951_vm0, %v6950_v1  ;;  %v3231_v17 = vmul.f32 %v6791_v46, %v7719_v31 }
 0xee5   : > { %6467 = vmatprep.mubr.msk.f32.mxu1 %vm6951_vm0, %v6950_v1  ;;  %6470 = vmatprep.subr.mxu0 %v6950_v1  ;;  %v3229_v41 = vmul.f32 %v6793_v22, %v7722_v50 }
 0xee6   : > { %6475 = vmatprep.subr.mxu1 %v6950_v1  ;;  %6468 = vmatmul.mubr.msk.f32.vlgmr.msra.gmra.mxu1 %vm1266_vm3, %v3231_v17 }
 0xee7   : > { %6463 = vmatmul.mubr.msk.f32.vlgmr.msra.gmra.mxu0 %vm1266_vm3, %v3229_v41  ;;  %6476 = vmatpush3.msra.mxu1 %v3769_v47 }
 0xee8   : > { %v6795_v57 = vpop.eup %6794  ;;  %6471 = vmatpush3.msra.mxu0 %v3693_v51  ;;  %6472 = vmatprep.mubr.msk.f32.mxu0 %vm6951_vm0, %v6950_v1 }
 0xee9   : > { %v6797_v31 = vpop.eup %6796  ;;  %6477 = vmatprep.mubr.msk.f32.mxu1 %vm6951_vm0, %v6950_v1  ;;  %v3233_v50 = vmul.f32 %v6795_v57, %v7731_v58  ;;  %6480 = vmatprep.subr.mxu0 %v6950_v1  ;;  %v6863_v57 = vld [vmem:[%s8213_s3 + $0x18] sm:$0xff] }
 0xeea   : > { %v3235_v52 = vmul.f32 %v6797_v31, %v7734_v59  ;;  %6491 = vmatprep.subr.mxu1 %v6950_v1  ;;  %v6866_v31 = vld [vmem:[%s8213_s3] sm:$0xff] }
 0xeeb   : > { %6473 = vmatmul.mubr.msk.f32.vlgmr.msra.gmra.mxu0 %vm1266_vm3, %v3233_v50 }
 0xeec   : > { %6478 = vmatmul.mubr.msk.f32.vlgmr.msra.gmra.mxu1 %vm1266_vm3, %v3235_v52  ;;  %6481 = vmatpush3.msra.mxu0 %v7389_v33 }
 0xeed   : > { %6482 = vmatprep.subr.mxu0 %v6950_v1  ;;  %6488 = vmatprep.mubr.msk.f32.mxu0 %vm6951_vm0, %v6950_v1 }
 0xeee   : > { %6483 = vmatpush3.msra.mxu0 %v7397_v36  ;;  %6492 = vmatpush3.msra.mxu1 %v7442_v11 }
 0xeef   : > { %6484 = vmatprep.subr.mxu0 %v6950_v1  ;;  %6493 = vmatprep.subr.mxu1 %v6950_v1 }
 0xef0   : > { %6485 = vmatpush3.msra.mxu0 %v7402_v37  ;;  %6494 = vmatpush3.msra.mxu1 %v7447_v12 }
 0xef1   : > { %6486 = vmatprep.subr.mxu0 %v6950_v1  ;;  %6495 = vmatprep.subr.mxu1 %v6950_v1 }
 0xef2   : > { %6487 = vmatpush3.msra.mxu0 %v7412_v42  ;;  %6496 = vmatpush3.msra.mxu1 %v7454_v7 }
 0xef3   : > { %6497 = vmatprep.subr.mxu1 %v6950_v1  ;;  %6499 = vmatprep.mubr.msk.f32.mxu1 %vm6951_vm0, %v6950_v1 }
 0xef4   : > { %6498 = vmatpush3.msra.mxu1 %v7461_v19  ;;  %6502 = vmatprep.subr.mxu0 %v6950_v1 }
 0xef5   : > { %6513 = vmatprep.subr.mxu1 %v6950_v1 }
 0xf4b   : > { %v3308_v33 = vpop.f32.mrf.mxu0 }
 0xf4d   : > { %v6444_v36 = vpop.f32.mrf.mxu0 }
 0xf9e   : > { %v3384_v37 = vpop.f32.mrf.mxu1 }
 0xf9f   : > { %3845 = vrot.lane.b32.xlu1 %v3384_v37, %s8301_s1 }
 0xfa0   : > { %v6449_v11 = vpop.f32.mrf.mxu1 }
 0xfa2   : > { %v3536_v42 = vpop.f32.mrf.mxu1 }
 0xfa3   : > { %v3460_v12 = vpop.f32.mrf.mxu0  ;;  %3853 = vrot.lane.b32.xlu1 %v3536_v42, %s8302_s2 }
 0xfa4   : > { %3849 = vrot.lane.b32.xlu0 %v3460_v12, %s8303_s29  ;;  %v6459_v7 = vpop.f32.mrf.mxu1 }
 0xfa5   : > { %v6454_v58 = vpop.f32.mrf.mxu0 }
 0xfa6   : > { %v3688_v59 = vpop.f32.mrf.mxu1 }
 0xfa7   : > { %v3612_v19 = vpop.f32.mrf.mxu0  ;;  %3861 = vrot.lane.b32.xlu1 %v3688_v59, %s8304_s18 }
 0xfa8   : > { %3857 = vrot.lane.b32.xlu0 %v3612_v19, %s8305_s21  ;;  %v6469_v60 = vpop.f32.mrf.mxu1 }
 0xfa9   : > { %v6464_v23 = vpop.f32.mrf.mxu0 }
 0xfab   : > { %v3764_v53 = vpop.f32.mrf.mxu0 }
 0xfac   : > { %v3840_v55 = vpop.f32.mrf.mxu1  ;;  %3865 = vrot.lane.b32.xlu0 %v3764_v53, %s8306_s15 }
 0xfad   : > { %3869 = vrot.lane.b32.xlu1 %v3840_v55, %s8307_s14  ;;  %v6474_v9 = vpop.f32.mrf.mxu0 }
 0xfae   : > { %v6479_v26 = vpop.f32.mrf.mxu1 }
0x1011   : > { %v3846_v16 = vpop.permute.xlu1 %3845 }
0x1012   : > { %v3872_v27 = vsel %vm645_vm2, %v3308_v33, %v3846_v16 }
0x1015   : > { %v3854_v25 = vpop.permute.xlu1 %3853 }
0x1016   : > { %v3850_v28 = vpop.permute.xlu0 %3849 }
0x1017   : > { %v3873_v63 = vsel %vm1266_vm3, %v3872_v27, %v3850_v28 }
0x1018   : > { %v3874_v13 = vsel %vm2049_vm4, %v3873_v63, %v3854_v25 }
0x1019   : > { %v3862_v29 = vpop.permute.xlu1 %3861 }
0x101a   : > { %v3858_v20 = vpop.permute.xlu0 %3857 }
0x101b   : > { %v3875_v18 = vsel %vm2051_vm5, %v3874_v13, %v3858_v20 }
0x101c   : > { %v3876_v6 = vsel %vm2053_vm6, %v3875_v18, %v3862_v29  ;;  %v6076_v29 = vld [vmem:[%s8210_s0 + $0x10] sm:$0xff] }
0x101e   : > { %v3866_v24 = vpop.permute.xlu0 %3865 }
0x101f   : > { %v3870_v54 = vpop.permute.xlu1 %3869  ;;  %v3877_v38 = vsel %vm2055_vm7, %v3876_v6, %v3866_v24 }
0x1020   : > { %v3878_v39 = vsel %vm2057_vm8, %v3877_v38, %v3870_v54 }
0x1021   : > { %6489 = vmatmul.mubr.msk.f32.vlgmr.msra.gmra.mxu0 %vm538_vm1, %v3878_v39 }
0x1022   : > { %6503 = vmatpush3.msra.mxu0 %v7470_v21  ;;  %6510 = vmatprep.mubr.msk.f32.mxu0 %vm6951_vm0, %v6950_v1 }
0x1023   : > { %6504 = vmatprep.subr.mxu0 %v6950_v1 }
0x1024   : > { %6505 = vmatpush3.msra.mxu0 %v7500_v0 }
0x1025   : > { %6506 = vmatprep.subr.mxu0 %v6950_v1 }
0x1026   : > { %6507 = vmatpush3.msra.mxu0 %v7507_v2 }
0x1027   : > { %6508 = vmatprep.subr.mxu0 %v6950_v1 }
0x1028   : > { %6509 = vmatpush3.msra.mxu0 %v7513_v3 }
0x1029   : > { %6524 = vmatprep.subr.mxu0 %v6950_v1 }
0x10e1   : > { %v3948_v35 = vpop.f32.mrf.mxu0 }
0x10e2   : > { %v3949_v21 = vadd.f32 %v7433_v62, %v3948_v35 }
0x10e3   : > { %v6490_v40 = vpop.f32.mrf.mxu0 }
0x10e4   : > { %v3952_v56 = vadd.f32 %v3949_v21, %v7550_v4 }
0x10e6   : > { %v3953_v44 = vsel %vm538_vm1, %v3952_v56, 0.0 }
0x10e7   : > { %3954 = vadd.xlane.f32.xlu0 %v3953_v44 }
0x1170   : > { %v3955_v0 = vpop.xlane.xlu0 %3954 }
0x1171   : > { %v3956_v48 = vmul.f32 0.03125, %v3955_v0 }
0x1173   : > { %v3957_v14 = vsub.f32 %v3952_v56, %v3956_v48 }
0x1175   : > { %v3958_v61 = vmul.f32 %v3957_v14, %v3957_v14  ;;  %v3970_v17 = vmul.f32 %v7477_v30, %v3957_v14  ;;  %v6864_v30 = vld [vmem:[%s8213_s3 + $0x10] sm:$0xff] }
0x1177   : > { %v3959_v2 = vsel %vm538_vm1, %v3958_v61, 0.0 }
0x1178   : > { %3960 = vadd.xlane.f32.xlu1 %v3959_v2 }
0x1201   : > { %v3961_v49 = vpop.xlane.xlu1 %3960 }
0x1202   : > { %v3962_v3 = vmul.f32 0.032258064, %v3961_v49 }
0x1204   : > { %6798 = vrsqrt.f32 %v3962_v3  ;;  %vm3965_vm13 = vcmp.eq.f32.partialorder %v3962_v3, inf  ;;  %v3968_v62 = vand.u32 2147483648, %v3962_v3  ;;  %vm3967_vm14 = vcmp.eq.f32.partialorder %v3962_v3, 0.0 }
0x1211   : > { %v6799_v32 = vpop.eup %6798 }
0x1212   : > { %v3964_v43 = vmul.f32 %v6799_v32, %v3962_v3 }
0x1214   : > { %v3966_v46 = vsel %vm3965_vm13, %v3962_v3, %v3964_v43 }
0x1215   : > { %v3969_v4 = vsel %vm3967_vm14, %v3968_v62, %v3966_v46 }
0x1216   : > { %v3971_v22 = vadd.f32 1e-06, %v3969_v4 }
0x1218   : > { %6800 = vrcp.f32 %v3971_v22 }
0x1225   : > { %v6801_v41 = vpop.eup %6800 }
0x1226   : > { %v3973_v47 = vmul.f32 %v6801_v41, %v3970_v17 }
0x1228   : > { %v3974_v51 = vadd.f32 %v7483_v34, %v3973_v47  ;;  %v6865_v34 = vld [vmem:[%s8213_s3 + $0x8] sm:$0xff] }
0x122a   : > { %6500 = vmatmul.mubr.msk.f32.vlgmr.msra.gmra.mxu1 %vm538_vm1, %v3974_v51 }
0x122b   : > { %6514 = vmatpush3.msra.mxu1 %v6863_v57  ;;  %6521 = vmatprep.mubr.msk.f32.mxu1 %vm6951_vm0, %v6950_v1 }
0x122c   : > { %6515 = vmatprep.subr.mxu1 %v6950_v1 }
0x122d   : > { %6516 = vmatpush3.msra.mxu1 %v6864_v30 }
0x122e   : > { %6517 = vmatprep.subr.mxu1 %v6950_v1 }
0x122f   : > { %6518 = vmatpush3.msra.mxu1 %v6865_v34 }
0x1230   : > { %6519 = vmatprep.subr.mxu1 %v6950_v1 }
0x1231   : > { %6520 = vmatpush3.msra.mxu1 %v6866_v31 }
0x1232   : > { %6529 = vmatprep.subr.mxu1 %v6950_v1 }
0x12ea   : > { %v4044_v50 = vpop.f32.mrf.mxu1 }
0x12eb   : > { %v4045_v52 = vadd.f32 %v7521_v5, %v4044_v50 }
0x12ec   : > { %v6501_v33 = vpop.f32.mrf.mxu1 }
0x12ed   : > { %v4048_v36 = vmax.f32 %v4045_v52, 0.0 }
0x12ef   : > { %6511 = vmatmul.mubr.msk.f32.vlgmr.msra.gmra.mxu0 %vm538_vm1, %v4048_v36 }
0x12f0   : > { %6526 = vmatprep.mubr.msk.f32.mxu0 %vm6951_vm0, %v6950_v1 }
0x13af   : > { %v4118_v37 = vpop.f32.mrf.mxu0 }
0x13b0   : > { %v4119_v11 = vadd.f32 %v7530_v45, %v4118_v37 }
0x13b1   : > { %v6512_v42 = vpop.f32.mrf.mxu0 }
0x13b2   : > { %v4122_v12 = vadd.f32 %v4119_v11, %v3974_v51 }
0x13b4   : > { %v4123_v7 = vsel %vm538_vm1, %v4122_v12, 0.0 }
0x13b5   : > { %4124 = vadd.xlane.f32.xlu0 %v4123_v7 }
0x143e   : > { %v4125_v58 = vpop.xlane.xlu0 %4124 }
0x143f   : > { %v4126_v59 = vmul.f32 0.03125, %v4125_v58 }
0x1441   : > { %v4127_v19 = vsub.f32 %v4122_v12, %v4126_v59 }
0x1443   : > { %v4128_v60 = vmul.f32 %v4127_v19, %v4127_v19  ;;  %v4140_v27 = vmul.f32 %v7538_v10, %v4127_v19  ;;  %v6867_v10 = vld [vmem:[%s8214_s4] ss:$0 sm:$0xff] }
0x1445   : > { %v4129_v5 = vsel %vm538_vm1, %v4128_v60, 0.0 }
0x1446   : > { %4130 = vadd.xlane.f32.xlu0 %v4129_v5 }
0x14cf   : > { %v4131_v23 = vpop.xlane.xlu0 %4130 }
0x14d0   : > { %v4132_v53 = vmul.f32 0.032258064, %v4131_v23 }
0x14d2   : > { %6802 = vrsqrt.f32 %v4132_v53  ;;  %vm4135_vm15 = vcmp.eq.f32.partialorder %v4132_v53, inf  ;;  %v4138_v26 = vand.u32 2147483648, %v4132_v53  ;;  %vm4137_vm9 = vcmp.eq.f32.partialorder %v4132_v53, 0.0 }
0x14df   : > { %v6803_v55 = vpop.eup %6802 }
0x14e0   : > { %v4134_v9 = vmul.f32 %v6803_v55, %v4132_v53 }
0x14e2   : > { %v4136_v45 = vsel %vm4135_vm15, %v4132_v53, %v4134_v9 }
0x14e3   : > { %v4139_v16 = vsel %vm4137_vm9, %v4138_v26, %v4136_v45 }
0x14e4   : > { %v4141_v25 = vadd.f32 1e-06, %v4139_v16 }
0x14e6   : > { %6804 = vrcp.f32 %v4141_v25 }
0x14f3   : > { %v6805_v28 = vpop.eup %6804 }
0x14f4   : > { %v4143_v63 = vmul.f32 %v6805_v28, %v4140_v27 }
0x14f6   : > { %v4144_v13 = vadd.f32 %v7544_v15, %v4143_v63 }
0x14f8   : > { %v7860_v20 = vadd.f32 %v6076_v29, %v4144_v13 }
0x14fa   : > { %6522 = vmatmul.mubr.msk.f32.vlgmr.msra.gmra.mxu1 %vm538_vm1, %v7860_v20 }
0x14fb   : > { %6531 = vmatprep.mubr.msk.f32.mxu1 %vm6951_vm0, %v6950_v1 }
0x15ba   : > { %v4217_v18 = vpop.f32.mrf.mxu1 }
0x15bb   : > { %v7869_v6 = vadd.f32 %v6867_v10, %v4217_v18 }
0x15bc   : > { %v6523_v24 = vpop.f32.mrf.mxu1 }
0x15bd   : > { %4240 = vrot.lane.b32.xlu0 %v7869_v6, %s8308_s13  ;;  %4238 = vrot.lane.b32.xlu1 %v7869_v6, %s8293_s24  ;;  %v4221_v15 = vmul.f32 0.5, %v7869_v6 }
0x15c1   : > { %4246 = vrot.lane.b32.xlu0 %v7869_v6, %s8296_s20  ;;  %4242 = vrot.lane.b32.xlu1 %v7869_v6, %s8294_s16 }
0x15c5   : > { %4250 = vrot.lane.b32.xlu0 %v7869_v6, %s8298_s17  ;;  %4244 = vrot.lane.b32.xlu1 %v7869_v6, %s8295_s25 }
0x15c9   : > { %4248 = vrot.lane.b32.xlu1 %v7869_v6, %s8297_s27  ;;  %4225 = vrot.lane.b32.xlu0 %v4221_v15, %s8308_s13  ;;  %s8311_s13 = sld [smem:[#allocation6_spill]] }
0x15cd   : > { %4252 = vrot.lane.b32.xlu1 %v7869_v6, %s8299_s30  ;;  %4229 = vrot.lane.b32.xlu0 %v4221_v15, %s8295_s25  ;;  %s8315_s25 = sld [smem:[#allocation19_spill]] }
0x15d1   : > { %4223 = vrot.lane.b32.xlu1 %v4221_v15, %s8293_s24 }
0x15d5   : > { %4227 = vrot.lane.b32.xlu1 %v4221_v15, %s8294_s16 }
0x15d9   : > { %4231 = vrot.lane.b32.xlu1 %v4221_v15, %s8296_s20 }
0x162f   : > { %v7893_v54 = vpop.permute.xlu0 %4240  ;;  %v7895_v38 = vpop.permute.xlu1 %4238 }
0x1630   : > { %4328 = vrot.lane.b32.xlu0 %v7895_v38, %s8299_s30 }
0x1633   : > { %v7899_v39 = vpop.permute.xlu1 %4242  ;;  %v7905_v35 = vpop.permute.xlu0 %4246 }
0x1634   : > { %4404 = vrot.lane.b32.xlu0 %v7893_v54, %s8299_s30  ;;  %4480 = vrot.lane.b32.xlu1 %v7899_v39, %s8299_s30 }
0x1637   : > { %v7907_v21 = vpop.permute.xlu1 %4244  ;;  %v7913_v40 = vpop.permute.xlu0 %4250 }
0x1638   : > { %4556 = vrot.lane.b32.xlu0 %v7907_v21, %s8299_s30  ;;  %4632 = vrot.lane.b32.xlu1 %v7905_v35, %s8299_s30 }
0x163b   : > { %v7915_v56 = vpop.permute.xlu1 %4248  ;;  %v4226_v48 = vpop.permute.xlu0 %4225 }
0x163c   : > { %4708 = vrot.lane.b32.xlu0 %v7915_v56, %s8299_s30  ;;  %4784 = vrot.lane.b32.xlu1 %v7913_v40, %s8299_s30 }
0x163f   : > { %v4253_v44 = vpop.permute.xlu1 %4252  ;;  %v4230_v61 = vpop.permute.xlu0 %4229 }
0x1640   : > { %6525 = vmatpush3.xpose.msk.msra.mxu0 %vm645_vm2, %v4253_v44  ;;  %4233 = vrot.lane.b32.xlu0 %v4221_v15, %s8297_s27 }
0x1641   : > { %4235 = vrot.lane.b32.xlu1 %v4221_v15, %s8298_s17  ;;  %6534 = vmatprep.subr.mxu0 %v6950_v1  ;;  %s8316_s17 = sld [smem:[#allocation20_spill]] }
0x1643   : > { %6527 = vmatmul.mubr.msk.f32.vlgmr.msra.gmra.mxu0 %vm645_vm2, %v4221_v15  ;;  %v4224_v0 = vpop.permute.xlu1 %4223 }
0x1644   : > { %6536 = vmatprep.mubr.msk.f32.mxu0 %vm6951_vm0, %v6950_v1 }
0x1647   : > { %v4228_v14 = vpop.permute.xlu1 %4227 }
0x164b   : > { %v4232_v2 = vpop.permute.xlu1 %4231 }
0x16a2   : > { %v4329_v49 = vpop.permute.xlu0 %4328 }
0x16a3   : > { %6530 = vmatpush3.xpose.msk.msra.mxu1 %vm645_vm2, %v4329_v49 }
0x16a4   : > { %6539 = vmatprep.subr.mxu1 %v6950_v1 }
0x16a6   : > { %v4405_v3 = vpop.permute.xlu0 %4404  ;;  %6532 = vmatmul.mubr.msk.f32.vlgmr.msra.gmra.mxu1 %vm645_vm2, %v4224_v0  ;;  %v4481_v32 = vpop.permute.xlu1 %4480 }
0x16a7   : > { %6535 = vmatpush3.xpose.msk.msra.mxu0 %vm645_vm2, %v4405_v3  ;;  %6540 = vmatpush3.xpose.msk.msra.mxu1 %vm645_vm2, %v4481_v32 }
0x16a8   : > { %6541 = vmatprep.mubr.msk.f32.mxu1 %vm6951_vm0, %v6950_v1  ;;  %6549 = vmatprep.subr.mxu1 %v6950_v1 }
0x16a9   : > { %6544 = vmatprep.subr.mxu0 %v6950_v1 }
0x16aa   : > { %v4557_v43 = vpop.permute.xlu0 %4556  ;;  %6542 = vmatmul.mubr.msk.f32.vlgmr.msra.gmra.mxu1 %vm645_vm2, %v4228_v14  ;;  %v4633_v62 = vpop.permute.xlu1 %4632  ;;  %6537 = vmatmul.mubr.msk.f32.vlgmr.msra.gmra.mxu0 %vm645_vm2, %v4226_v48 }
0x16ab   : > { %6545 = vmatpush3.xpose.msk.msra.mxu0 %vm645_vm2, %v4557_v43  ;;  %6550 = vmatpush3.xpose.msk.msra.mxu1 %vm645_vm2, %v4633_v62 }
0x16ac   : > { %6546 = vmatprep.mubr.msk.f32.mxu0 %vm6951_vm0, %v6950_v1  ;;  %6551 = vmatprep.mubr.msk.f32.mxu1 %vm6951_vm0, %v6950_v1 }
0x16ad   : > { %6559 = vmatprep.subr.mxu1 %v6950_v1  ;;  %6554 = vmatprep.subr.mxu0 %v6950_v1 }
0x16ae   : > { %v4709_v46 = vpop.permute.xlu0 %4708  ;;  %6552 = vmatmul.mubr.msk.f32.vlgmr.msra.gmra.mxu1 %vm645_vm2, %v4232_v2  ;;  %v4785_v4 = vpop.permute.xlu1 %4784  ;;  %6547 = vmatmul.mubr.msk.f32.vlgmr.msra.gmra.mxu0 %vm645_vm2, %v4230_v61 }
0x16af   : > { %6555 = vmatpush3.xpose.msk.msra.mxu0 %vm645_vm2, %v4709_v46  ;;  %6560 = vmatpush3.xpose.msk.msra.mxu1 %vm645_vm2, %v4785_v4 }
0x16b0   : > { %6561 = vmatprep.mubr.msk.f32.mxu1 %vm6951_vm0, %v6950_v1  ;;  %6556 = vmatprep.mubr.msk.f32.mxu0 %vm6951_vm0, %v6950_v1 }
0x16b1   : > { %6564 = vmatprep.subr.mxu0 %v6950_v1  ;;  %6569 = vmatprep.subr.mxu1 %v6950_v1 }
0x16b2   : > { %v4234_v22 = vpop.permute.xlu0 %4233 }
0x16b3   : > { %v4236_v17 = vpop.permute.xlu1 %4235  ;;  %6557 = vmatmul.mubr.msk.f32.vlgmr.msra.gmra.mxu0 %vm645_vm2, %v4234_v22 }
0x16b4   : > { %6562 = vmatmul.mubr.msk.f32.vlgmr.msra.gmra.mxu1 %vm645_vm2, %v4236_v17  ;;  %6566 = vmatprep.mubr.msk.f32.mxu0 %vm6951_vm0, %v6950_v1 }
0x16b5   : > { %6571 = vmatprep.mubr.msk.f32.mxu1 %vm6951_vm0, %v6950_v1 }
0x1703   : > { %v4324_v41 = vpop.f32.mrf.mxu0 }
0x1704   : > { %v4860_v47 = vmul.f32 %v7660_v8, %v4324_v41 }
0x1705   : > { %v6528_v51 = vpop.f32.mrf.mxu0 }
0x1706   : > { %v4868_v57 = vsel %vm1266_vm3, %v4860_v47, -inf }
0x1707   : > { %4869 = vmax.xlane.f32.xlu0 %v4868_v57 }
0x1766   : > { %v4400_v30 = vpop.f32.mrf.mxu1 }
0x1767   : > { %v4861_v34 = vmul.f32 %v7660_v8, %v4400_v30 }
0x1768   : > { %v6533_v31 = vpop.f32.mrf.mxu1 }
0x1769   : > { %v4871_v50 = vsel %vm1266_vm3, %v4861_v34, -inf }
0x176a   : > { %4872 = vmax.xlane.f32.xlu1 %v4871_v50  ;;  %v4476_v52 = vpop.f32.mrf.mxu0  ;;  %v4552_v33 = vpop.f32.mrf.mxu1 }
0x176b   : > { %v4862_v36 = vmul.f32 %v7660_v8, %v4476_v52  ;;  %v4863_v42 = vmul.f32 %v7660_v8, %v4552_v33 }
0x176c   : > { %v6538_v37 = vpop.f32.mrf.mxu0  ;;  %v6543_v11 = vpop.f32.mrf.mxu1 }
0x176d   : > { %v4874_v12 = vsel %vm1266_vm3, %v4862_v36, -inf  ;;  %v4877_v23 = vsel %vm1266_vm3, %v4863_v42, -inf }
0x176e   : > { %v4704_v7 = vpop.f32.mrf.mxu1  ;;  %4875 = vmax.xlane.f32.xlu0 %v4874_v12  ;;  %v4628_v58 = vpop.f32.mrf.mxu0 }
0x176f   : > { %v4864_v59 = vmul.f32 %v7660_v8, %v4628_v58  ;;  %v4865_v5 = vmul.f32 %v7660_v8, %v4704_v7 }
0x1770   : > { %v6548_v19 = vpop.f32.mrf.mxu0  ;;  %v6553_v60 = vpop.f32.mrf.mxu1 }
0x1771   : > { %v4880_v53 = vsel %vm1266_vm3, %v4864_v59, -inf  ;;  %v4883_v25 = vsel %vm1266_vm3, %v4865_v5, -inf }
0x1772   : > { %4878 = vmax.xlane.f32.xlu0 %v4877_v23  ;;  %4881 = vmax.xlane.f32.xlu1 %v4880_v53 }
0x1773   : > { %v4780_v55 = vpop.f32.mrf.mxu0 }
0x1774   : > { %v4866_v9 = vmul.f32 %v7660_v8, %v4780_v55  ;;  %v4856_v26 = vpop.f32.mrf.mxu1 }
0x1775   : > { %v4867_v45 = vmul.f32 %v7660_v8, %v4856_v26  ;;  %v6558_v16 = vpop.f32.mrf.mxu0 }
0x1776   : > { %v6563_v27 = vpop.f32.mrf.mxu1  ;;  %4884 = vmax.xlane.f32.xlu0 %v4883_v25  ;;  %v4886_v28 = vsel %vm1266_vm3, %v4866_v9, -inf }
0x1777   : > { %4887 = vmax.xlane.f32.xlu1 %v4886_v28  ;;  %v4889_v63 = vsel %vm1266_vm3, %v4867_v45, -inf }
0x177a   : > { %4890 = vmax.xlane.f32.xlu0 %v4889_v63 }
0x1790   : > { %v4870_v29 = vpop.xlane.xlu0 %4869 }
0x1791   : > { %v4892_v13 = vsub.f32 %v4860_v47, %v4870_v29 }
0x1793   : > { %v4900_v18 = vmul.f32 1.442695, %v4892_v13 }
0x1795   : > { %6806 = vpow2.f32 %v4900_v18 }
0x17a2   : > { %v6807_v10 = vpop.eup %6806 }
0x17a3   : > { %v4916_v24 = vsel %vm1266_vm3, %v6807_v10, 0.0 }
0x17a4   : > { %4917 = vadd.xlane.f32.xlu1 %v4916_v24 }
0x17f3   : > { %v4873_v8 = vpop.xlane.xlu1 %4872 }
0x17f4   : > { %v4893_v15 = vsub.f32 %v4861_v34, %v4873_v8 }
0x17f6   : > { %v4902_v44 = vmul.f32 1.442695, %v4893_v15 }
0x17f7   : > { %v4876_v0 = vpop.xlane.xlu0 %4875 }
0x17f8   : > { %6808 = vpow2.f32 %v4902_v44  ;;  %v4894_v48 = vsub.f32 %v4862_v36, %v4876_v0 }
0x17fa   : > { %v4904_v14 = vmul.f32 1.442695, %v4894_v48 }
0x17fb   : > { %v4879_v61 = vpop.xlane.xlu0 %4878  ;;  %v4882_v2 = vpop.xlane.xlu1 %4881 }
0x17fc   : > { %6810 = vpow2.f32 %v4904_v14  ;;  %v4895_v49 = vsub.f32 %v4863_v42, %v4879_v61  ;;  %v4896_v3 = vsub.f32 %v4864_v59, %v4882_v2 }
0x17fe   : > { %v4906_v32 = vmul.f32 1.442695, %v4895_v49  ;;  %v4908_v43 = vmul.f32 1.442695, %v4896_v3 }
0x17ff   : > { %v4885_v62 = vpop.xlane.xlu0 %4884 }
0x1800   : > { %6812 = vpow2.f32 %v4906_v32  ;;  %v4897_v46 = vsub.f32 %v4865_v5, %v4885_v62  ;;  %v4888_v4 = vpop.xlane.xlu1 %4887 }
0x1801   : > { %6814 = vpow2.f32 %v4908_v43  ;;  %v4898_v22 = vsub.f32 %v4866_v9, %v4888_v4 }
0x1802   : > { %v4910_v17 = vmul.f32 1.442695, %v4897_v46 }
0x1803   : > { %v4912_v41 = vmul.f32 1.442695, %v4898_v22  ;;  %v4891_v47 = vpop.xlane.xlu0 %4890 }
0x1804   : > { %6816 = vpow2.f32 %v4910_v17  ;;  %v4899_v51 = vsub.f32 %v4867_v45, %v4891_v47 }
0x1805   : > { %v6809_v57 = vpop.eup %6808  ;;  %6818 = vpow2.f32 %v4912_v41 }
0x1806   : > { %v4914_v30 = vmul.f32 1.442695, %v4899_v51  ;;  %v4919_v34 = vsel %vm1266_vm3, %v6809_v57, 0.0 }
0x1807   : > { %4920 = vadd.xlane.f32.xlu0 %v4919_v34 }
0x1808   : > { %6820 = vpow2.f32 %v4914_v30 }
0x1809   : > { %v6811_v31 = vpop.eup %6810 }
0x180a   : > { %v4922_v50 = vsel %vm1266_vm3, %v6811_v31, 0.0 }
0x180b   : > { %4923 = vadd.xlane.f32.xlu1 %v4922_v50 }
0x180d   : > { %v6813_v52 = vpop.eup %6812 }
0x180e   : > { %v6815_v33 = vpop.eup %6814  ;;  %v4925_v36 = vsel %vm1266_vm3, %v6813_v52, 0.0 }
0x180f   : > { %4926 = vadd.xlane.f32.xlu0 %v4925_v36  ;;  %v4928_v37 = vsel %vm1266_vm3, %v6815_v33, 0.0 }
0x1810   : > { %4929 = vadd.xlane.f32.xlu1 %v4928_v37 }
0x1811   : > { %v6817_v11 = vpop.eup %6816 }
0x1812   : > { %v7984_v42 = vpop.eup %6818  ;;  %v4931_v12 = vsel %vm1266_vm3, %v6817_v11, 0.0 }
0x1813   : > { %4932 = vadd.xlane.f32.xlu0 %v4931_v12  ;;  %v4934_v7 = vsel %vm1266_vm3, %v7984_v42, 0.0 }
0x1814   : > { %4935 = vadd.xlane.f32.xlu1 %v4934_v7 }
0x1815   : > { %v7989_v58 = vpop.eup %6820 }
0x1816   : > { %v4937_v59 = vsel %vm1266_vm3, %v7989_v58, 0.0 }
0x1817   : > { %4938 = vadd.xlane.f32.xlu0 %v4937_v59 }
0x1825   : > { %5012 = vrot.lane.b32.xlu1 %v7869_v6, %s8300_s23  ;;  %v6868_v6 = vld [vmem:[%s7252_s26] ss:$0 sm:$0xff] }
0x1829   : > { %5164 = vrot.lane.b32.xlu1 %v7893_v54, %s8300_s23 }
0x182d   : > { %5088 = vrot.lane.b32.xlu0 %v7895_v38, %s8300_s23  ;;  %5240 = vrot.lane.b32.xlu1 %v7899_v39, %s8300_s23  ;;  %v4918_v19 = vpop.xlane.xlu1 %4917 }
0x182e   : > { %6822 = vrcp.f32 %v4918_v19 }
0x1831   : > { %5316 = vrot.lane.b32.xlu0 %v7907_v21, %s8300_s23  ;;  %5392 = vrot.lane.b32.xlu1 %v7905_v35, %s8300_s23 }
0x183b   : > { %v6823_v60 = vpop.eup %6822 }
0x183c   : > { %v4948_v5 = vmul.f32 %v6823_v60, %v6807_v10 }
0x183e   : > { %v8006_v23 = vmul.f32 %v6868_v6, %v4948_v5 }
0x1840   : > { %v4964_v54 = vsel %vm1266_vm3, %v8006_v23, 0.0 }
0x1855   : > { %4965 = vadd.xlane.f32.xlu1 %v4964_v54 }
0x1890   : > { %v4921_v38 = vpop.xlane.xlu0 %4920 }
0x1891   : > { %6824 = vrcp.f32 %v4921_v38 }
0x1894   : > { %v4924_v39 = vpop.xlane.xlu1 %4923 }
0x1895   : > { %6826 = vrcp.f32 %v4924_v39 }
0x1898   : > { %v4927_v53 = vpop.xlane.xlu0 %4926 }
0x1899   : > { %6828 = vrcp.f32 %v4927_v53  ;;  %v4930_v21 = vpop.xlane.xlu1 %4929 }
0x189a   : > { %6830 = vrcp.f32 %v4930_v21 }
0x189c   : > { %v4933_v35 = vpop.xlane.xlu0 %4932 }
0x189d   : > { %6832 = vrcp.f32 %v4933_v35  ;;  %v4936_v55 = vpop.xlane.xlu1 %4935 }
0x189e   : > { %v6825_v9 = vpop.eup %6824  ;;  %6834 = vrcp.f32 %v4936_v55 }
0x189f   : > { %v4949_v26 = vmul.f32 %v6825_v9, %v6809_v57 }
0x18a0   : > { %v4939_v45 = vpop.xlane.xlu0 %4938 }
0x18a1   : > { %6836 = vrcp.f32 %v4939_v45  ;;  %v5013_v16 = vpop.permute.xlu1 %5012  ;;  %v8010_v25 = vmul.f32 %v6868_v6, %v4949_v26 }
0x18a2   : > { %v6827_v27 = vpop.eup %6826  ;;  %6565 = vmatpush3.msra.mxu0 %v5013_v16 }
0x18a3   : > { %v4967_v28 = vsel %vm1266_vm3, %v8010_v25, 0.0  ;;  %v4950_v63 = vmul.f32 %v6827_v27, %v6811_v31  ;;  %6574 = vmatprep.subr.mxu0 %v6950_v1 }
0x18a4   : > { %4968 = vadd.xlane.f32.xlu0 %v4967_v28  ;;  %v5089_v29 = vpop.permute.xlu0 %5088 }
0x18a5   : > { %6570 = vmatpush3.msra.mxu1 %v5089_v29  ;;  %v8015_v13 = vmul.f32 %v6868_v6, %v4950_v63  ;;  %v5165_v47 = vpop.permute.xlu1 %5164  ;;  %v6869_v63 = vld [vmem:[%s8215_s5 + $0x18] sm:$0xff]  ;;  %v6870_v29 = vld [vmem:[%s8215_s5 + $0x10] sm:$0xff] }
0x18a6   : > { %v6829_v18 = vpop.eup %6828  ;;  %6579 = vmatprep.subr.mxu1 %v6950_v1 }
0x18a7   : > { %v6831_v10 = vpop.eup %6830  ;;  %v4970_v24 = vsel %vm1266_vm3, %v8015_v13, 0.0  ;;  %v4951_v8 = vmul.f32 %v6829_v18, %v6813_v52  ;;  %v6872_v18 = vld [vmem:[%s8219_s9 + $0x18] sm:$0xff] }
0x18a8   : > { %4971 = vadd.xlane.f32.xlu1 %v4970_v24  ;;  %v4952_v15 = vmul.f32 %v6831_v10, %v6815_v33  ;;  %v6873_v10 = vld [vmem:[%s8215_s5] sm:$0xff]  ;;  %v6874_v24 = vld [vmem:[%s8219_s9 + $0x10] sm:$0xff] }
0x18a9   : > { %v8020_v44 = vmul.f32 %v6868_v6, %v4951_v8  ;;  %v5241_v51 = vpop.permute.xlu1 %5240  ;;  %v6875_v8 = vld [vmem:[%s8219_s9 + $0x8] sm:$0xff] }
0x18aa   : > { %v6833_v0 = vpop.eup %6832  ;;  %v8022_v48 = vmul.f32 %v6868_v6, %v4952_v15  ;;  %v6876_v15 = vld [vmem:[%s8219_s9] sm:$0xff] }
0x18ab   : > { %v6835_v14 = vpop.eup %6834  ;;  %v4973_v61 = vsel %vm1266_vm3, %v8020_v44, 0.0  ;;  %v4953_v2 = vmul.f32 %v6833_v0, %v6817_v11 }
0x18ac   : > { %4974 = vadd.xlane.f32.xlu0 %v4973_v61  ;;  %v4976_v49 = vsel %vm1266_vm3, %v8022_v48, 0.0  ;;  %v4954_v3 = vmul.f32 %v6835_v14, %v7984_v42 }
0x18ad   : > { %4977 = vadd.xlane.f32.xlu1 %v4976_v49  ;;  %v8029_v32 = vmul.f32 %v6868_v6, %v4953_v2  ;;  %v5393_v57 = vpop.permute.xlu1 %5392 }
0x18ae   : > { %v6837_v43 = vpop.eup %6836  ;;  %v8031_v62 = vmul.f32 %v6868_v6, %v4954_v3 }
0x18af   : > { %v4979_v46 = vsel %vm1266_vm3, %v8029_v32, 0.0  ;;  %v4955_v4 = vmul.f32 %v6837_v43, %v7989_v58 }
0x18b0   : > { %4980 = vadd.xlane.f32.xlu0 %v4979_v46  ;;  %v4982_v22 = vsel %vm1266_vm3, %v8031_v62, 0.0 }
0x18b1   : > { %4983 = vadd.xlane.f32.xlu1 %v4982_v22  ;;  %v8038_v17 = vmul.f32 %v6868_v6, %v4955_v4 }
0x18b3   : > { %v4985_v41 = vsel %vm1266_vm3, %v8038_v17, 0.0 }
0x18b4   : > { %4986 = vadd.xlane.f32.xlu0 %v4985_v41 }
0x18c2   : > { %5544 = vrot.lane.b32.xlu1 %v7913_v40, %s8300_s23  ;;  %v5317_v40 = vpop.permute.xlu0 %5316 }
0x18ca   : > { %5468 = vrot.lane.b32.xlu0 %v7915_v56, %s8300_s23  ;;  %s8312_s23 = sld [smem:[#allocation9_spill]] }
0x18de   : > { %v4966_v30 = vpop.xlane.xlu1 %4965 }
0x18df   : > { %v4988_v34 = vadd.f32 1e-13, %v4966_v30 }
0x18e1   : > { %6838 = vrcp.f32 %v4988_v34 }
0x18ee   : > { %v6839_v31 = vpop.eup %6838 }
0x18ef   : > { %v4997_v50 = vmul.f32 %v6839_v31, %v8006_v23 }
0x18f1   : > { %6567 = vmatmul.mubr.msk.f32.vlgmr.msra.gmra.mxu0 %vm1266_vm3, %v4997_v50 }
0x18f2   : > { %6575 = vmatpush3.msra.mxu0 %v5165_v47  ;;  %6576 = vmatprep.mubr.msk.f32.mxu0 %vm6951_vm0, %v6950_v1 }
0x18f3   : > { %6584 = vmatprep.subr.mxu0 %v6950_v1 }
0x192d   : > { %v4969_v52 = vpop.xlane.xlu0 %4968 }
0x192e   : > { %v4989_v56 = vadd.f32 1e-13, %v4969_v52 }
0x1930   : > { %6840 = vrcp.f32 %v4989_v56 }
0x1931   : > { %v4972_v33 = vpop.xlane.xlu1 %4971 }
0x1932   : > { %v4990_v36 = vadd.f32 1e-13, %v4972_v33 }
0x1934   : > { %6842 = vrcp.f32 %v4990_v36 }
0x1935   : > { %v4975_v37 = vpop.xlane.xlu0 %4974 }
0x1936   : > { %v4991_v11 = vadd.f32 1e-13, %v4975_v37  ;;  %v4978_v42 = vpop.xlane.xlu1 %4977 }
0x1937   : > { %v4992_v12 = vadd.f32 1e-13, %v4978_v42  ;;  %v6877_v42 = vld [vmem:[%s8221_s11 + $0x18] sm:$0xff] }
0x1938   : > { %6844 = vrcp.f32 %v4991_v11 }
0x1939   : > { %6846 = vrcp.f32 %v4992_v12  ;;  %v4981_v7 = vpop.xlane.xlu0 %4980  ;;  %v6878_v12 = vld [vmem:[%s8221_s11 + $0x10] sm:$0xff] }
0x193a   : > { %v4993_v58 = vadd.f32 1e-13, %v4981_v7  ;;  %v4984_v59 = vpop.xlane.xlu1 %4983  ;;  %v6879_v7 = vld [vmem:[%s8221_s11 + $0x8] sm:$0xff] }
0x193b   : > { %v4994_v19 = vadd.f32 1e-13, %v4984_v59 }
0x193c   : > { %6848 = vrcp.f32 %v4993_v58  ;;  %v6880_v58 = vld [vmem:[%s8221_s11] sm:$0xff] }
0x193d   : > { %v6841_v60 = vpop.eup %6840  ;;  %6850 = vrcp.f32 %v4994_v19  ;;  %v4987_v5 = vpop.xlane.xlu0 %4986  ;;  %v6881_v19 = vld [vmem:[%s8216_s6] ss:$0 sm:$0xff] }
0x193e   : > { %v4995_v6 = vadd.f32 1e-13, %v4987_v5  ;;  %v4999_v23 = vmul.f32 %v6841_v60, %v8010_v25  ;;  %v5545_v25 = vpop.permute.xlu1 %5544 }
0x1940   : > { %6852 = vrcp.f32 %v4995_v6  ;;  %6572 = vmatmul.mubr.msk.f32.vlgmr.msra.gmra.mxu1 %vm1266_vm3, %v4999_v23 }
0x1941   : > { %v6843_v54 = vpop.eup %6842  ;;  %6580 = vmatpush3.msra.mxu1 %v5241_v51  ;;  %6581 = vmatprep.mubr.msk.f32.mxu1 %vm6951_vm0, %v6950_v1  ;;  %v5469_v9 = vpop.permute.xlu0 %5468 }
0x1942   : > { %v5001_v38 = vmul.f32 %v6843_v54, %v8015_v13  ;;  %6589 = vmatprep.subr.mxu1 %v6950_v1  ;;  %v6871_v13 = vld [vmem:[%s8215_s5 + $0x8] sm:$0xff] }
0x1944   : > { %6577 = vmatmul.mubr.msk.f32.vlgmr.msra.gmra.mxu0 %vm1266_vm3, %v5001_v38 }
0x1945   : > { %v6845_v39 = vpop.eup %6844  ;;  %6585 = vmatpush3.msra.mxu0 %v5317_v40  ;;  %6586 = vmatprep.mubr.msk.f32.mxu0 %vm6951_vm0, %v6950_v1 }
0x1946   : > { %v6847_v53 = vpop.eup %6846  ;;  %6594 = vmatprep.subr.mxu0 %v6950_v1  ;;  %v5003_v21 = vmul.f32 %v6845_v39, %v8020_v44 }
0x1947   : > { %v5005_v35 = vmul.f32 %v6847_v53, %v8022_v48 }
0x1948   : > { %6582 = vmatmul.mubr.msk.f32.vlgmr.msra.gmra.mxu1 %vm1266_vm3, %v5003_v21 }
0x1949   : > { %v6849_v55 = vpop.eup %6848  ;;  %6587 = vmatmul.mubr.msk.f32.vlgmr.msra.gmra.mxu0 %vm1266_vm3, %v5005_v35  ;;  %6590 = vmatpush3.msra.mxu1 %v5393_v57 }
0x194a   : > { %v6851_v26 = vpop.eup %6850  ;;  %6595 = vmatpush3.msra.mxu0 %v5469_v9  ;;  %6591 = vmatprep.mubr.msk.f32.mxu1 %vm6951_vm0, %v6950_v1  ;;  %v5007_v45 = vmul.f32 %v6849_v55, %v8029_v32 }
0x194b   : > { %6599 = vmatprep.subr.mxu1 %v6950_v1  ;;  %6596 = vmatprep.mubr.msk.f32.mxu0 %vm6951_vm0, %v6950_v1  ;;  %v5009_v16 = vmul.f32 %v6851_v26, %v8031_v62 }
0x194c   : > { %6592 = vmatmul.mubr.msk.f32.vlgmr.msra.gmra.mxu1 %vm1266_vm3, %v5007_v45  ;;  %6604 = vmatprep.subr.mxu0 %v6950_v1 }
0x194d   : > { %v6853_v27 = vpop.eup %6852  ;;  %6600 = vmatpush3.msra.mxu1 %v5545_v25  ;;  %6597 = vmatmul.mubr.msk.f32.vlgmr.msra.gmra.mxu0 %vm1266_vm3, %v5009_v16  ;;  %v6882_v25 = vld [vmem:[%s8217_s7] ss:$0 sm:$0xff] }
0x194e   : > { %6601 = vmatprep.mubr.msk.f32.mxu1 %vm6951_vm0, %v6950_v1  ;;  %v5011_v28 = vmul.f32 %v6853_v27, %v8038_v17  ;;  %6605 = vmatpush3.msra.mxu0 %v6869_v63 }
0x194f   : > { %6606 = vmatprep.subr.mxu0 %v6950_v1  ;;  %6612 = vmatprep.mubr.msk.f32.mxu0 %vm6951_vm0, %v6950_v1 }
0x1950   : > { %6602 = vmatmul.mubr.msk.f32.vlgmr.msra.gmra.mxu1 %vm1266_vm3, %v5011_v28  ;;  %6607 = vmatpush3.msra.mxu0 %v6870_v29  ;;  %v6883_v29 = vld [vmem:[%s8218_s8] ss:$0 sm:$0xff] }
0x1951   : > { %6608 = vmatprep.subr.mxu0 %v6950_v1  ;;  %6615 = vmatprep.subr.mxu1 %v6950_v1 }
0x1952   : > { %6609 = vmatpush3.msra.mxu0 %v6871_v13  ;;  %6616 = vmatpush3.msra.mxu1 %v6872_v18 }
0x1953   : > { %6610 = vmatprep.subr.mxu0 %v6950_v1  ;;  %6617 = vmatprep.subr.mxu1 %v6950_v1 }
0x1954   : > { %6611 = vmatpush3.msra.mxu0 %v6873_v10  ;;  %6618 = vmatpush3.msra.mxu1 %v6874_v24  ;;  %v6884_v10 = vld [vmem:[%s8309_s10] ss:$0 sm:$0xff] }
0x1955   : > { %6619 = vmatprep.subr.mxu1 %v6950_v1  ;;  %6623 = vmatprep.mubr.msk.f32.mxu1 %vm6951_vm0, %v6950_v1 }
0x1956   : > { %6620 = vmatpush3.msra.mxu1 %v6875_v8  ;;  %6626 = vmatprep.subr.mxu0 %v6950_v1 }
0x1957   : > { %6621 = vmatprep.subr.mxu1 %v6950_v1 }
0x1958   : > { %6622 = vmatpush3.msra.mxu1 %v6876_v15 }
0x19b1   : > { %v5084_v44 = vpop.f32.mrf.mxu0 }
0x19b3   : > { %v6568_v0 = vpop.f32.mrf.mxu0 }
0x19b4   : > { %v6885_v0 = vld [vmem:[%s8310_s22] ss:$0 sm:$0xff]  ;;  %s6892_s22 = sshll.u32 %s6968_s19, 4  ;;  %s6893_s22 = int_to_ptr.vmem [resolvable:$false] %s6892_s22 }
0x1a00   : > { %v5160_v48 = vpop.f32.mrf.mxu1 }
0x1a01   : > { %5621 = vrot.lane.b32.xlu0 %v5160_v48, %s8301_s1  ;;  %s494_s1 = sand.u32 1, %s8311_s13   ;;  %s6894_s13 = scalar_lea.vmem %s6893_s22, 256 }
0x1a02   : > { %v6573_v14 = vpop.f32.mrf.mxu1  ;;  %s5923_s10 = scalar_lea.sflag [#allocation3], %s494_s1 }
0x1a04   : > { %v5236_v61 = vpop.f32.mrf.mxu0 }
0x1a05   : > { %5625 = vrot.lane.b32.xlu1 %v5236_v61, %s8303_s29  ;;  %s6106_s29 = sshll.u32 %s8312_s23, 7 }
0x1a06   : > { %v6578_v2 = vpop.f32.mrf.mxu0  ;;  %s5934_s28 = scalar_lea.hbm %s8316_s17, %s6106_s29 }
0x1a08   : > { %v5312_v49 = vpop.f32.mrf.mxu1 }
0x1a09   : > { %v5388_v3 = vpop.f32.mrf.mxu0  ;;  %5629 = vrot.lane.b32.xlu0 %v5312_v49, %s8302_s2  ;;  %s6008_s2 = sshll.u32 %s494_s1, 3 }
0x1a0a   : > { %5633 = vrot.lane.b32.xlu1 %v5388_v3, %s8305_s21  ;;  %v6583_v32 = vpop.f32.mrf.mxu1  ;;  %s496_s26 = scalar_lea.vmem [#allocation2], %s6008_s2 }
0x1a0b   : > { %v6588_v43 = vpop.f32.mrf.mxu0  ;;  %s5936_s30 = sshll.u32 %s496_s26, 4  ;;  %s5937_s30 = int_to_ptr.vmem [resolvable:$true] %s5936_s30 }
0x1a0c   : > { %v5464_v62 = vpop.f32.mrf.mxu1  ;;  %s6888_s12 = scalar_lea.vmem %s5937_s30, 128  ;;  %p6895_p0 = scmp.lt.s32.totalorder %s5937_s30, %s6893_s22 }
0x1a0d   : > { %5637 = vrot.lane.b32.xlu0 %v5464_v62, %s8304_s18  ;;  %v5540_v46 = vpop.f32.mrf.mxu0  ;;  %s8313_s18 = sld [smem:[#allocation18_spill]]  ;;  %p6889_p11 = scmp.ne.s32.totalorder %s5937_s30, %s6888_s12 }
0x1a0e   : > { %v6593_v4 = vpop.f32.mrf.mxu1  ;;  %5641 = vrot.lane.b32.xlu1 %v5540_v46, %s8306_s15  ;;  %p6896_p1 = scmp.lt.s32.totalorder %s6894_s13, %s6888_s12 }
0x1a0f   : > { %v6598_v22 = vpop.f32.mrf.mxu0  ;;  %p6890_p12 = pnand %p6889_p11, %p7087_p5 }
0x1a10   : > { %v5616_v17 = vpop.f32.mrf.mxu1  ;;  %p6897_p2 = por %p6896_p1, %p6895_p0 }
0x1a11   : > { %5645 = vrot.lane.b32.xlu0 %v5616_v17, %s8307_s14  ;;  %p6891_p13 = pneg %p6890_p12 }
0x1a12   : > { %v6603_v41 = vpop.f32.mrf.mxu1 }
0x1a13   : > { %p6898_p3 = pnand %p6897_p2, %p6891_p13 }
0x1a73   : > { %v5622_v47 = vpop.permute.xlu0 %5621 }
0x1a74   : > { %v5648_v57 = vsel %vm645_vm2, %v5084_v44, %v5622_v47 }
0x1a77   : > { %v5626_v51 = vpop.permute.xlu1 %5625 }
0x1a78   : > { %v5649_v30 = vsel %vm1266_vm3, %v5648_v57, %v5626_v51 }
0x1a7b   : > { %v5630_v34 = vpop.permute.xlu0 %5629 }
0x1a7c   : > { %v5650_v31 = vsel %vm2049_vm4, %v5649_v30, %v5630_v34  ;;  %v5634_v50 = vpop.permute.xlu1 %5633  ;;  %v6886_v30 = vld [vmem:[%s8313_s18] ss:$0 sm:$0xff] }
0x1a7d   : > { %v5651_v40 = vsel %vm2051_vm5, %v5650_v31, %v5634_v50 }
0x1a7f   : > { %v5638_v52 = vpop.permute.xlu0 %5637 }
0x1a80   : > { %v5652_v56 = vsel %vm2053_vm6, %v5651_v40, %v5638_v52  ;;  %v5642_v33 = vpop.permute.xlu1 %5641  ;;  %v6887_v40 = vld [vmem:[%s8315_s25] ss:$0 sm:$0xff] }
0x1a81   : > { %v5653_v36 = vsel %vm2055_vm7, %v5652_v56, %v5642_v33 }
0x1a83   : > { %v5646_v37 = vpop.permute.xlu0 %5645 }
0x1a84   : > { %v5654_v11 = vsel %vm2057_vm8, %v5653_v36, %v5646_v37 }
0x1a85   : > { %6613 = vmatmul.mubr.msk.f32.vlgmr.msra.gmra.mxu0 %vm538_vm1, %v5654_v11 }
0x1a86   : > { %6627 = vmatpush3.msra.mxu0 %v6877_v42  ;;  %6634 = vmatprep.mubr.msk.f32.mxu0 %vm6951_vm0, %v6950_v1 }
0x1a87   : > { %6628 = vmatprep.subr.mxu0 %v6950_v1 }
0x1a88   : > { %6629 = vmatpush3.msra.mxu0 %v6878_v12 }
0x1a89   : > { %6630 = vmatprep.subr.mxu0 %v6950_v1 }
0x1a8a   : > { %6631 = vmatpush3.msra.mxu0 %v6879_v7 }
0x1a8b   : > { %6632 = vmatprep.subr.mxu0 %v6950_v1 }
0x1a8c   : > { %6633 = vmatpush3.msra.mxu0 %v6880_v58 }
0x1b45   : > { %v5724_v59 = vpop.f32.mrf.mxu0 }
0x1b46   : > { %v5725_v60 = vadd.f32 %v6881_v19, %v5724_v59 }
0x1b47   : > { %v6614_v5 = vpop.f32.mrf.mxu0 }
0x1b48   : > { %v5728_v6 = vadd.f32 %v5725_v60, %v7860_v20 }
0x1b4a   : > { %v5729_v23 = vsel %vm538_vm1, %v5728_v6, 0.0 }
0x1b4b   : > { %5730 = vadd.xlane.f32.xlu1 %v5729_v23 }
0x1bd4   : > { %v5731_v54 = vpop.xlane.xlu1 %5730 }
0x1bd5   : > { %v5732_v38 = vmul.f32 0.03125, %v5731_v54 }
0x1bd7   : > { %v5733_v1 = vsub.f32 %v5728_v6, %v5732_v38 }
0x1bd9   : > { %v5734_v39 = vmul.f32 %v5733_v1, %v5733_v1  ;;  %v5746_v27 = vmul.f32 %v6882_v25, %v5733_v1 }
0x1bdb   : > { %v5735_v53 = vsel %vm538_vm1, %v5734_v39, 0.0 }
0x1bdc   : > { %5736 = vadd.xlane.f32.xlu0 %v5735_v53 }
0x1c65   : > { %v5737_v21 = vpop.xlane.xlu0 %5736 }
0x1c66   : > { %v5738_v35 = vmul.f32 0.032258064, %v5737_v21 }
0x1c68   : > { %6854 = vrsqrt.f32 %v5738_v35  ;;  %vm5741_vm0 = vcmp.eq.f32.partialorder %v5738_v35, inf  ;;  %v5744_v26 = vand.u32 2147483648, %v5738_v35  ;;  %vm5743_vm2 = vcmp.eq.f32.partialorder %v5738_v35, 0.0 }
0x1c75   : > { %v6855_v55 = vpop.eup %6854 }
0x1c76   : > { %v5740_v9 = vmul.f32 %v6855_v55, %v5738_v35 }
0x1c78   : > { %v5742_v45 = vsel %vm5741_vm0, %v5738_v35, %v5740_v9 }
0x1c79   : > { %v5745_v20 = vsel %vm5743_vm2, %v5744_v26, %v5742_v45 }
0x1c7a   : > { %v5747_v16 = vadd.f32 1e-06, %v5745_v20 }
0x1c7c   : > { %6856 = vrcp.f32 %v5747_v16 }
0x1c89   : > { %v6857_v28 = vpop.eup %6856 }
0x1c8a   : > { %v5749_v63 = vmul.f32 %v6857_v28, %v5746_v27 }
0x1c8c   : > { %v5750_v13 = vadd.f32 %v6883_v29, %v5749_v63 }
0x1c8e   : > { %6624 = vmatmul.mubr.msk.f32.vlgmr.msra.gmra.mxu1 %vm538_vm1, %v5750_v13 }
0x1d4e   : > { %v5820_v18 = vpop.f32.mrf.mxu1 }
0x1d4f   : > { %v5821_v24 = vadd.f32 %v6884_v10, %v5820_v18 }
0x1d50   : > { %v6625_v8 = vpop.f32.mrf.mxu1 }
0x1d51   : > { %v5824_v15 = vmax.f32 %v5821_v24, 0.0 }
0x1d53   : > { %6635 = vmatmul.mubr.msk.f32.vlgmr.msra.gmra.mxu0 %vm538_vm1, %v5824_v15 }
0x1e13   : > { %v5894_v44 = vpop.f32.mrf.mxu0 }
0x1e14   : > { %v5895_v48 = vadd.f32 %v6885_v0, %v5894_v44 }
0x1e15   : > { %v6636_v14 = vpop.f32.mrf.mxu0 }
0x1e16   : > { %v5898_v61 = vadd.f32 %v5895_v48, %v5750_v13 }
0x1e18   : > { %v5899_v2 = vsel %vm538_vm1, %v5898_v61, 0.0 }
0x1e19   : > { %5900 = vadd.xlane.f32.xlu0 %v5899_v2 }
0x1ea2   : > { %v5901_v49 = vpop.xlane.xlu0 %5900 }
0x1ea3   : > { %v5902_v3 = vmul.f32 0.03125, %v5901_v49 }
0x1ea5   : > { %v5903_v32 = vsub.f32 %v5898_v61, %v5902_v3 }
0x1ea7   : > { %v5904_v43 = vmul.f32 %v5903_v32, %v5903_v32  ;;  %v5916_v34 = vmul.f32 %v6886_v30, %v5903_v32 }
0x1ea9   : > { %v5905_v62 = vsel %vm538_vm1, %v5904_v43, 0.0 }
0x1eaa   : > { %5906 = vadd.xlane.f32.xlu1 %v5905_v62 }
0x1f33   : > { %v5907_v46 = vpop.xlane.xlu1 %5906 }
0x1f34   : > { %v5908_v4 = vmul.f32 0.032258064, %v5907_v46 }
0x1f36   : > { %6858 = vrsqrt.f32 %v5908_v4  ;;  %vm5911_vm3 = vcmp.eq.f32.partialorder %v5908_v4, inf  ;;  %v5914_v41 = vand.u32 2147483648, %v5908_v4  ;;  %vm5913_vm4 = vcmp.eq.f32.partialorder %v5908_v4, 0.0 }
0x1f43   : > { %v6859_v22 = vpop.eup %6858 }
0x1f44   : > { %v5910_v17 = vmul.f32 %v6859_v22, %v5908_v4 }
0x1f46   : > { %v5912_v47 = vsel %vm5911_vm3, %v5908_v4, %v5910_v17 }
0x1f47   : > { %v5915_v51 = vsel %vm5913_vm4, %v5914_v41, %v5912_v47 }
0x1f48   : > { %v5917_v57 = vadd.f32 1e-06, %v5915_v51 }
0x1f4a   : > { %6860 = vrcp.f32 %v5917_v57 }
0x1f57   : > { %v6861_v31 = vpop.eup %6860 }
0x1f58   : > { %v5919_v50 = vmul.f32 %v6861_v31, %v5916_v34 }
0x1f5a   : > { %v5920_v52 = vadd.f32 %v6887_v40, %v5919_v50 }
0x1f5c   : > { %5921 = vst.msk [vmem:[%s496_s26] sm:$0xff] %vm538_vm1, %v5920_v52 }
0x1f5d   : > { %6901 = shalt.err (!%p6898_p3)
}
0x1f5e   : > { %s6902_s23 = scalar_lea.hbm %s5934_s28, 128  ;;  %s6906_s14 = scalar_lea.hbm %s8316_s17, 256 }
0x1f5f   : > { %p6903_p4 = scmp.ne.s32.totalorder %s5934_s28, %s6902_s23  ;;  %p6907_p9 = scmp.lt.s32.totalorder %s5934_s28, %s8316_s17 }
0x1f60   : > { %p6908_p10 = scmp.lt.s32.totalorder %s6906_s14, %s6902_s23 }
0x1f61   : > { %p6904_p7 = pnand %p6903_p4, %p7087_p5 }
0x1f62   : > { %p6909_p11 = por %p6908_p10, %p6907_p9 }
0x1f63   : > { %p6905_p8 = pneg %p6904_p7 }
0x1f65   : > { %p6910_p12 = pnand %p6909_p11, %p6905_p8 }
0x1f67   : > { %6913 = shalt.err (!%p6910_p12)
}
0x1f68   : > { %6637 = dma.vmem_to_hbm [thread:$0]  (%p7087_p5), %s5937_s30, 128, %s5934_s28, %s5923_s10  }
0x1f69 PF: > { %s8317_s29 = sld [smem:[#allocation8_spill]] }
0x1f6a   : > { %s8318_s26 = sld [smem:[#allocation5_spill]] }
0x1f6f   : > { %p6643_p13 = scmp.ge.s32.totalorder %s8317_s29, 2 }
0x1f70   : > { %s5948_s16 = sand.u32 1, %s8318_s26  }
0x1f71   : > { %p6640_p0 = pnand %p6643_p13, %p7091_p6  ;;  %s5949_s25 = scalar_lea.sflag [#allocation3], %s5948_s16 }
0x1f73   : > { %p6641_p1 = pneg %p6640_p0 }
0x1f75   : > { %6931 = dma.done.wait (%p6641_p1), %s5949_s25, 128  }
0x1f76   : > { %6933 = vsyncadd (%p6641_p1), %s5949_s25, 4294967168  ;;  %s8320_s21 = sld [smem:[#allocation10_spill]] }
0x1f77   : > { %s8321_s18 = sld [smem:[#allocation6_spill]] }
0x1f78   : > { %s8322_s19 = sld [smem:[#allocation7_spill]] }
0x1f79   : > { %s8323_s20 = sld [smem:[#allocation11_spill]] }
0x1f7c   : > { %p25_p2 = scmp.ge.s32.totalorder %s8320_s21, 4  }
0x1f7e   :  { %27 = sbr.rel (!%p25_p2) target bundleno = 11 (0xb), region = 120 }
0x1f83   :  { %5954 = vsyncpa [#allocation3], 1 }
0x1f84   :  { %5956 = vsyncpa [#allocation3 + $0x1], 1 }

</bundles_post_ra>
